<compile_context>
chip_gen: v6e
topology: v6e:2x2x1
jax: 0.10.0
libtpu: 0.0.40
codegen_flags: <defaults>
</compile_context>

<pallas_src>
import math
import functools

import jax
import jax.numpy as jnp
from jax.experimental import pallas as pl
from jax.experimental.pallas import tpu as pltpu

_HIGH = jax.lax.Precision.HIGHEST   # only used by the pure-JAX reference


def _pick_block(n, cap=4):
    """Largest per-step sample block (<= cap) that keeps the grid extent even
    (balanced 2-TC split on v7x); falls back to any divisor."""
    for nb in range(cap, 0, -1):
        if n % nb == 0 and (n // nb) % 2 == 0:
            return nb
    for nb in range(cap, 0, -1):
        if n % nb == 0:
            return nb
    return 1


# ---------------------------------------------------------------------------
# Pallas kernel 1: fused classification-feature extractor (channel-first)
#   3x3 clf conv (single fused K=9*Cin bf16 MXU matmul over an in-VMEM
#   im2col) -> prob 1x1-conv MLP -> channel-mean gate -> elementwise multiply
#   -> 1x1 fuse conv (bf16 MXU) -> InstanceL2Norm (f32).
#   NB samples per grid step; output (NB, Cout, HW) with HW on lanes.
# ---------------------------------------------------------------------------
def _feat_extract_kernel(x_ref, prob_ref, wc_ref, wp1_ref, wp2_ref, wf_ref,
                         out_ref, *, H, W, scale, eps):
    NB = x_ref.shape[0]
    Wp = W + 2
    HW = H * W
    HWp = H * Wp
    Pin = wp1_ref.shape[1]

    wc = wc_ref[...]     # (Cout, 9*Cin) bf16
    wp1 = wp1_ref[...]   # (hid, Pin)    f32  (VPU path)
    wp2 = wp2_ref[...]   # (hid, hid)    bf16
    wf = wf_ref[...]     # (Cout, Cout)  bf16
    hid = wp1.shape[0]
    Cout = wc.shape[0]

    for n in range(NB):
        x2d = x_ref[n]                                   # (Cin, Lpad) bf16

        # in-VMEM im2col: 9 lane-shifted slices of the padded slab stacked on
        # sublanes -> ONE fused MXU matmul with K = 9*Cin (fills the MXU
        # contraction depth instead of 9 K=Cin pushes).
        cols = []
        for t in range(9):
            dy, dx = divmod(t, 3)
            s = dy * Wp + dx
            cols.append(x2d[:, s:s + HWp])
        col = jnp.concatenate(cols, axis=0)              # (9*Cin, H*Wp) bf16
        clf_wp = jnp.dot(wc, col,
                         preferred_element_type=jnp.float32)   # (Cout, H*Wp) f32

        # compact row stride Wp -> W: lane-dense (Cout, HW) valid conv output
        clf = jnp.concatenate(
            [clf_wp[:, r * Wp:r * Wp + W] for r in range(H)], axis=1)

        # prob_feature_extractor: 1x1-conv MLP, channel-first (hid, HW)
        prob = prob_ref[n]                               # (Pin, HW) f32
        h = jnp.zeros((hid, HW), jnp.float32)
        for i in range(Pin):                             # K = 3: VPU broadcast-FMAs
            h = h + wp1[:, i:i + 1] * prob[i:i + 1, :]
        h = jnp.maximum(h, 0.0)
        z = jnp.dot(wp2, h.astype(jnp.bfloat16),
                    preferred_element_type=jnp.float32)  # (hid, HW)
        p = pl.reciprocal(1.0 + jnp.exp(-z), approx=True)   # sigmoid on EUP
        gate = jnp.mean(p, axis=0, keepdims=True)        # (1, HW) == torch.mean(dim=1)

        xg = (clf * gate).astype(jnp.bfloat16)           # (Cout, HW)

        # fuse_conv: Conv2d(out_dim, out_dim, 1, bias=False) on the MXU
        y = jnp.dot(wf, xg, preferred_element_type=jnp.float32)   # (Cout, HW)

        # InstanceL2Norm (size_average=True): per-sample over C*H*W
        ss = jnp.sum(y * y)
        norm = scale * jax.lax.rsqrt((ss + eps) / float(HW * Cout))
        out_ref[n] = (y * norm).astype(out_ref.dtype)    # unmasked (Cout, 256) store


def feat_extract_pallas(xpad, prob, wc, wp1, wp2, wf, *, H, W, scale, eps=1e-5):
    N, Cin, Lpad = xpad.shape
    HW = H * W
    Pin = prob.shape[1]
    hid = wp1.shape[0]
    Cout = wc.shape[0]
    NB = _pick_block(N)
    kernel = functools.partial(_feat_extract_kernel, H=H, W=W, scale=scale,
                               eps=eps)
    return pl.pallas_call(
        kernel,
        out_shape=jax.ShapeDtypeStruct((N, Cout, HW), jnp.float32),
        grid=(N // NB,),
        in_specs=[
            pl.BlockSpec((NB, Cin, Lpad), lambda n: (n, 0, 0)),
            pl.BlockSpec((NB, Pin, HW), lambda n: (n, 0, 0)),
            pl.BlockSpec((Cout, 9 * Cin), lambda n: (0, 0)),
            pl.BlockSpec((hid, Pin), lambda n: (0, 0)),
            pl.BlockSpec((hid, hid), lambda n: (0, 0)),
            pl.BlockSpec((Cout, Cout), lambda n: (0, 0)),
        ],
        out_specs=pl.BlockSpec((NB, Cout, HW), lambda n: (n, 0, 0)),
        compiler_params=pltpu.CompilerParams(dimension_semantics=("parallel",)),
    )(xpad, prob, wc, wp1, wp2, wf)


# ---------------------------------------------------------------------------
# Pallas kernel 2: filter_layer.apply_filter (per-sequence grouped conv)
#   features consumed directly in (n_img, n_seq, C, Lslab) layout (no host
#   transpose), one (f*f, C) x (C, Lslab) bf16 matmul per image, f*f
#   lane-shifted row adds, and ONE (n_img, Lout) store per sequence.
# ---------------------------------------------------------------------------
def _apply_filter_kernel(x_ref, w_ref, o_ref, *, n_img, H, Wp, f):
    Lout = H * Wp
    ff = f * f
    w = w_ref[0]                                         # (f*f, C) bf16
    rows = []
    for i in range(n_img):
        xi = x_ref[i, 0]                                 # (C, Lslab) bf16
        p = jnp.dot(w, xi, preferred_element_type=jnp.float32)   # (f*f, Lslab)
        acc = p[0:1, 0:Lout]
        for t in range(1, ff):
            dy, dx = divmod(t, f)
            s = dy * Wp + dx
            acc = acc + p[t:t + 1, s:s + Lout]
        rows.append(acc)
    o_ref[0] = jnp.concatenate(rows, axis=0)             # single (n_img, Lout) store


def apply_filter_pallas(x, w, *, n_img, H, Wp, f):
    _, n_seq, C, Lslab = x.shape
    Lout = H * Wp
    kernel = functools.partial(_apply_filter_kernel, n_img=n_img, H=H, Wp=Wp,
                               f=f)
    return pl.pallas_call(
        kernel,
        out_shape=jax.ShapeDtypeStruct((n_seq, n_img, Lout), jnp.float32),
        grid=(n_seq,),
        in_specs=[
            pl.BlockSpec((n_img, 1, C, Lslab), lambda s: (0, s, 0, 0)),
            pl.BlockSpec((1, f * f, C), lambda s: (s, 0, 0)),
        ],
        out_specs=pl.BlockSpec((1, n_img, Lout), lambda s: (s, 0, 0)),
        compiler_params=pltpu.CompilerParams(dimension_semantics=("parallel",)),
    )(x, w)


# ---------------------------------------------------------------------------
# Plain-JAX glue (no full-tensor transposes, single pads)
# ---------------------------------------------------------------------------
def init_params(key, feature_dim, out_dim, prob_in, hid):
    """Matches the PyTorch __init__: Conv2d weights ~ N(0, sqrt(2/(kH*kW*out))),
    biases zero-initialised (dropped)."""
    cin = 4 * feature_dim
    ks = jax.random.split(key, 4)
    wc = jax.random.normal(ks[0], (out_dim, cin, 3, 3), jnp.float32) * math.sqrt(2.0 / (9 * out_dim))
    # TODO(synk): prob_encoder_mlp comes from external `clf_features`; assumed
    # here as 1x1-conv MLP: Conv(in,hid) -> ReLU -> Conv(hid,hid) -> Sigmoid.
    wp1 = jax.random.normal(ks[1], (hid, prob_in, 1, 1), jnp.float32) * math.sqrt(2.0 / hid)
    wp2 = jax.random.normal(ks[2], (hid, hid, 1, 1), jnp.float32) * math.sqrt(2.0 / hid)
    wf = jax.random.normal(ks[3], (out_dim, out_dim, 1, 1), jnp.float32) * math.sqrt(2.0 / out_dim)
    return {
        # f32 masters (pure-JAX reference)
        'wc': wc, 'wp1': wp1, 'wp2': wp2, 'wf': wf,
        # kernel layouts (channel-first): clf taps stacked on K, MXU operands bf16
        'wc_mat': wc.transpose(0, 2, 3, 1).reshape(out_dim, 9 * cin).astype(jnp.bfloat16),
        'wp1_mat': wp1[:, :, 0, 0],                          # (hid, Pin) f32, VPU path
        'wp2_mat': wp2[:, :, 0, 0].astype(jnp.bfloat16),     # (hid, hid)
        'wf_mat': wf[:, :, 0, 0].astype(jnp.bfloat16),       # (Cout, Cout)
    }


def extract_classification_feat(feat, prob, params, num_sequences, norm_scale):
    """feat: (N, 4*feature_dim, H, W) NCHW, prob: (N, Pin, H, W) NCHW."""
    N, Cin, H, W = feat.shape
    Wp = W + 2
    # padded, flattened channel-first slab; the extra trailing row folds in the
    # guard needed by the lane-shifted im2col reads (no second pad, no transpose)
    Lpad = (H + 3) * Wp
    xpad = jnp.pad(feat, ((0, 0), (0, 0), (1, 2), (1, 1)))
    xpad = xpad.reshape(N, Cin, Lpad).astype(jnp.bfloat16)
    prob_flat = prob.reshape(N, prob.shape[1], H * W).astype(jnp.float32)
    out = feat_extract_pallas(xpad, prob_flat,
                              params['wc_mat'], params['wp1_mat'],
                              params['wp2_mat'], params['wf_mat'],
                              H=H, W=W, scale=norm_scale)        # (N, Cout, HW)
    Cout = out.shape[1]
    out = out.reshape(N, Cout, H, W)                             # pure reshape
    if num_sequences is None:
        return out
    return out.reshape(-1, num_sequences, Cout, H, W)


def simple_filter_initializer(feat, bb, filter_size, stride=16.0):
    # TODO(synk): filter_initializer / filter_optimizer are injected modules not
    # defined in this file; replaced by a deterministic center-crop pooling
    # initializer and filter_optimizer=None (weights_iter = [weights]).
    n_img, n_seq, C, H, W = feat.shape
    mean_feat = jnp.mean(feat, axis=0)                 # (n_seq, C, H, W)
    bb0 = bb[0]                                        # (n_seq, 4) x,y,w,h
    cx = (bb0[:, 0] + 0.5 * bb0[:, 2]) / stride
    cy = (bb0[:, 1] + 0.5 * bb0[:, 3]) / stride
    x0 = jnp.clip(jnp.round(cx - filter_size / 2).astype(jnp.int32), 0, W - filter_size)
    y0 = jnp.clip(jnp.round(cy - filter_size / 2).astype(jnp.int32), 0, H - filter_size)

    def crop(f, y, x):
        return jax.lax.dynamic_slice(f, (0, y, x), (C, filter_size, filter_size))

    w = jax.vmap(crop)(mean_feat, y0, x0)              # (n_seq, C, f, f)
    return w / float(C * filter_size * filter_size)


def classify_pallas(weights, feat):
    """apply_filter: feat (n_img, n_seq, C, H, W), weights (n_seq, C, f, f)
    -> scores (n_img, n_seq, H, W) (odd filter_size -> same spatial size)."""
    n_img, n_seq, C, H, W = feat.shape
    f = weights.shape[-1]
    pad = f // 2
    Wp = W + 2 * pad
    Hp = H + 2 * pad
    Lslab = (Hp + 1) * Wp          # one extra trailing row = shifted-read guard
    x = jnp.pad(feat, ((0, 0), (0, 0), (0, 0), (pad, pad + 1), (pad, pad)))
    x = x.reshape(n_img, n_seq, C, Lslab).astype(jnp.bfloat16)
    # dense (f*f, C) filter layout (taps on sublanes, channels on lanes)
    w = weights.transpose(0, 2, 3, 1).reshape(n_seq, f * f, C).astype(jnp.bfloat16)
    scores = apply_filter_pallas(x, w, n_img=n_img, H=H, Wp=Wp, f=f)   # (n_seq, n_img, H*Wp)
    scores = scores.reshape(n_seq, n_img, H, Wp)[..., :W]              # drop junk columns
    return scores.transpose(1, 0, 2, 3)                                # tiny (4 KB) transpose


def prob_linear_filter_forward(train_feat, test_feat, train_prob, test_prob,
                               train_bb, params, filter_size, norm_scale):
    assert train_bb.ndim == 3
    num_seq = train_bb.shape[1]
    train_cf = extract_classification_feat(train_feat, train_prob, params, num_seq, norm_scale)
    test_cf = extract_classification_feat(test_feat, test_prob, params, num_seq, norm_scale)
    weights = simple_filter_initializer(train_cf, train_bb, filter_size)
    weights_iter = [weights]                     # filter_optimizer is None
    test_scores = [classify_pallas(w, test_cf) for w in weights_iter]
    return test_scores


# ---------------------------------------------------------------------------
# Pure-JAX reference (lax.conv, f32 HIGHEST) for correctness checking
# ---------------------------------------------------------------------------
def _conv_nchw(x, w, pad):
    return jax.lax.conv_general_dilated(
        x, w, window_strides=(1, 1), padding=[(pad, pad), (pad, pad)],
        dimension_numbers=('NCHW', 'OIHW', 'NCHW'), precision=_HIGH)


def _ref_instance_l2_norm(x, scale, eps=1e-5):
    n = x.shape[1] * x.shape[2] * x.shape[3]
    ss = jnp.sum(x * x, axis=(1, 2, 3), keepdims=True)
    return x * (scale * jnp.sqrt(n / (ss + eps)))


def _ref_extract(feat, prob, params, num_seq, scale):
    clf = _conv_nchw(feat, params['wc'], 1)
    h = jnp.maximum(_conv_nchw(prob, params['wp1'], 0), 0.0)
    p = 1.0 / (1.0 + jnp.exp(-_conv_nchw(h, params['wp2'], 0)))
    gate = jnp.mean(p, axis=1, keepdims=True)
    y = _conv_nchw(clf * gate, params['wf'], 0)
    out = _ref_instance_l2_norm(y, scale)
    return out.reshape(-1, num_seq, *out.shape[-3:])


def _ref_forward(train_feat, test_feat, train_prob, test_prob, train_bb,
                 params, filter_size, norm_scale):
    num_seq = train_bb.shape[1]
    train_cf = _ref_extract(train_feat, train_prob, params, num_seq, norm_scale)
    test_cf = _ref_extract(test_feat, test_prob, params, num_seq, norm_scale)
    weights = simple_filter_initializer(train_cf, train_bb, filter_size)
    n_img, n_seq, C, H, W = test_cf.shape
    pad = filter_size // 2
    scores = jax.lax.conv_general_dilated(
        test_cf.reshape(n_img, n_seq * C, H, W), weights, (1, 1),
        [(pad, pad), (pad, pad)], dimension_numbers=('NCHW', 'OIHW', 'NCHW'),
        feature_group_count=n_seq, precision=_HIGH)
    return [scores]


# ---------------------------------------------------------------------------
if __name__ == "__main__":
    key = jax.random.PRNGKey(0)

    # small shapes consistent with the module
    n_img_train, n_img_test, n_seq = 2, 2, 2
    feature_dim = 8                 # backbone channels = 4*feature_dim = 32
    out_dim = 64
    H = W = 16
    filter_size = 3
    norm_scale = 1.0
    prob_in = 3                     # prob_mean=False -> in_dim=3
    hid = 16

    kd, kp = jax.random.split(key)
    k0, k1, k2, k3 = jax.random.split(kd, 4)
    train_feat = jax.random.normal(k0, (n_img_train * n_seq, 4 * feature_dim, H, W), jnp.float32)
    test_feat = jax.random.normal(k1, (n_img_test * n_seq, 4 * feature_dim, H, W), jnp.float32)
    train_prob = jax.nn.softmax(jax.random.normal(k2, (n_img_train * n_seq, prob_in, H, W), jnp.float32), axis=1)
    test_prob = jax.nn.softmax(jax.random.normal(k3, (n_img_test * n_seq, prob_in, H, W), jnp.float32), axis=1)
    train_bb = jnp.array([[[64.0, 64.0, 96.0, 96.0], [32.0, 96.0, 64.0, 80.0]],
                          [[72.0, 56.0, 96.0, 96.0], [40.0, 88.0, 64.0, 80.0]]],
                         dtype=jnp.float32)      # (n_img_train, n_seq, 4)

    params = init_params(kp, feature_dim, out_dim, prob_in, hid)

    scores = prob_linear_filter_forward(train_feat, test_feat, train_prob, test_prob,
                                        train_bb, params, filter_size, norm_scale)
    scores = [jax.block_until_ready(s) for s in scores]

    ref_scores = _ref_forward(train_feat, test_feat, train_prob, test_prob,
                              train_bb, params, filter_size, norm_scale)
    ref_scores = [jax.block_until_ready(s) for s in ref_scores]

    assert len(scores) == len(ref_scores) == 1
    assert scores[0].shape == (n_img_test, n_seq, H, W)
    # bf16 MXU operands + approx-reciprocal sigmoid vs f32 HIGHEST reference
    # -> loosened tolerance (intentional, documented)
    assert jnp.allclose(scores[0], ref_scores[0], rtol=5e-2, atol=5e-3), (
        float(jnp.max(jnp.abs(scores[0] - ref_scores[0]))))

    print("KERNEL_OK")
</pallas_src>

<mosaic_0001>
module attributes {stable_mosaic.version = 11 : i64} {
  func.func @_feat_extract_kernel(%arg0: i32, %arg1: memref<2x32x342xbf16, #tpu.memory_space<vmem>>, %arg2: memref<2x3x256xf32, #tpu.memory_space<vmem>>, %arg3: memref<64x288xbf16, #tpu.memory_space<vmem>>, %arg4: memref<16x3xf32, #tpu.memory_space<vmem>>, %arg5: memref<16x16xbf16, #tpu.memory_space<vmem>>, %arg6: memref<64x64xbf16, #tpu.memory_space<vmem>>, %arg7: memref<2x64x256xf32, #tpu.memory_space<vmem>>) attributes {dimension_semantics = [#tpu.dimension_semantics<parallel>], iteration_bounds = array<i64: 2>, scalar_prefetch = 0 : i64, scratch_operands = 0 : i64, tpu.core_type = #tpu.core_type<tc>, window_params = [{transform_indices = @transform_0, window_bounds = array<i64: 2, 32, 342>}, {transform_indices = @transform_1, window_bounds = array<i64: 2, 3, 256>}, {pipeline_mode = #tpu.pipeline_mode<synchronous>, transform_indices = @transform_2, window_bounds = array<i64: 64, 288>}, {pipeline_mode = #tpu.pipeline_mode<synchronous>, transform_indices = @transform_3, window_bounds = array<i64: 16, 3>}, {pipeline_mode = #tpu.pipeline_mode<synchronous>, transform_indices = @transform_4, window_bounds = array<i64: 16, 16>}, {pipeline_mode = #tpu.pipeline_mode<synchronous>, transform_indices = @transform_5, window_bounds = array<i64: 64, 64>}, {transform_indices = @transform_6, window_bounds = array<i64: 2, 64, 256>}]} {
    %c0 = arith.constant 0 : index
    %c0_0 = arith.constant 0 : index
    %0 = vector.load %arg3[%c0, %c0_0] : memref<64x288xbf16, #tpu.memory_space<vmem>>, vector<64x288xbf16>
    %c0_1 = arith.constant 0 : index
    %c0_2 = arith.constant 0 : index
    %1 = vector.load %arg4[%c0_1, %c0_2] : memref<16x3xf32, #tpu.memory_space<vmem>>, vector<16x3xf32>
    %c0_3 = arith.constant 0 : index
    %c0_4 = arith.constant 0 : index
    %2 = vector.load %arg5[%c0_3, %c0_4] : memref<16x16xbf16, #tpu.memory_space<vmem>>, vector<16x16xbf16>
    %c0_5 = arith.constant 0 : index
    %c0_6 = arith.constant 0 : index
    %3 = vector.load %arg6[%c0_5, %c0_6] : memref<64x64xbf16, #tpu.memory_space<vmem>>, vector<64x64xbf16>
    %c0_7 = arith.constant 0 : index
    %c0_8 = arith.constant 0 : index
    %c0_9 = arith.constant 0 : index
    %4 = vector.load %arg1[%c0_7, %c0_8, %c0_9] : memref<2x32x342xbf16, #tpu.memory_space<vmem>>, vector<1x32x342xbf16>
    %5 = vector.shape_cast %4 : vector<1x32x342xbf16> to vector<32x342xbf16>
    %6 = vector.extract_strided_slice %5 {offsets = [0, 0], sizes = [32, 288], strides = [1, 1]} : vector<32x342xbf16> to vector<32x288xbf16>
    %7 = vector.extract_strided_slice %5 {offsets = [0, 1], sizes = [32, 288], strides = [1, 1]} : vector<32x342xbf16> to vector<32x288xbf16>
    %8 = vector.extract_strided_slice %5 {offsets = [0, 2], sizes = [32, 288], strides = [1, 1]} : vector<32x342xbf16> to vector<32x288xbf16>
    %9 = vector.extract_strided_slice %5 {offsets = [0, 18], sizes = [32, 288], strides = [1, 1]} : vector<32x342xbf16> to vector<32x288xbf16>
    %10 = vector.extract_strided_slice %5 {offsets = [0, 19], sizes = [32, 288], strides = [1, 1]} : vector<32x342xbf16> to vector<32x288xbf16>
    %11 = vector.extract_strided_slice %5 {offsets = [0, 20], sizes = [32, 288], strides = [1, 1]} : vector<32x342xbf16> to vector<32x288xbf16>
    %12 = vector.extract_strided_slice %5 {offsets = [0, 36], sizes = [32, 288], strides = [1, 1]} : vector<32x342xbf16> to vector<32x288xbf16>
    %13 = vector.extract_strided_slice %5 {offsets = [0, 37], sizes = [32, 288], strides = [1, 1]} : vector<32x342xbf16> to vector<32x288xbf16>
    %14 = vector.extract_strided_slice %5 {offsets = [0, 38], sizes = [32, 288], strides = [1, 1]} : vector<32x342xbf16> to vector<32x288xbf16>
    %15 = tpu.concatenate %6, %7, %8, %9, %10, %11, %12, %13, %14 in 0 : vector<32x288xbf16>, vector<32x288xbf16>, vector<32x288xbf16>, vector<32x288xbf16>, vector<32x288xbf16>, vector<32x288xbf16>, vector<32x288xbf16>, vector<32x288xbf16>, vector<32x288xbf16> -> vector<288x288xbf16>
    %cst = arith.constant dense<0.000000e+00> : vector<64x288xf32>
    %16 = tpu.matmul %0, %15, %cst {dimension_numbers = #tpu.dot_dimension_numbers<[1], [0], [0], [1], [0, 0, 1, 1], [], []>} : vector<64x288xbf16>, vector<288x288xbf16>, vector<64x288xf32> -> vector<64x288xf32>
    %17 = vector.extract_strided_slice %16 {offsets = [0, 0], sizes = [64, 16], strides = [1, 1]} : vector<64x288xf32> to vector<64x16xf32>
    %18 = vector.extract_strided_slice %16 {offsets = [0, 18], sizes = [64, 16], strides = [1, 1]} : vector<64x288xf32> to vector<64x16xf32>
    %19 = vector.extract_strided_slice %16 {offsets = [0, 36], sizes = [64, 16], strides = [1, 1]} : vector<64x288xf32> to vector<64x16xf32>
    %20 = vector.extract_strided_slice %16 {offsets = [0, 54], sizes = [64, 16], strides = [1, 1]} : vector<64x288xf32> to vector<64x16xf32>
    %21 = vector.extract_strided_slice %16 {offsets = [0, 72], sizes = [64, 16], strides = [1, 1]} : vector<64x288xf32> to vector<64x16xf32>
    %22 = vector.extract_strided_slice %16 {offsets = [0, 90], sizes = [64, 16], strides = [1, 1]} : vector<64x288xf32> to vector<64x16xf32>
    %23 = vector.extract_strided_slice %16 {offsets = [0, 108], sizes = [64, 16], strides = [1, 1]} : vector<64x288xf32> to vector<64x16xf32>
    %24 = vector.extract_strided_slice %16 {offsets = [0, 126], sizes = [64, 16], strides = [1, 1]} : vector<64x288xf32> to vector<64x16xf32>
    %25 = vector.extract_strided_slice %16 {offsets = [0, 144], sizes = [64, 16], strides = [1, 1]} : vector<64x288xf32> to vector<64x16xf32>
    %26 = vector.extract_strided_slice %16 {offsets = [0, 162], sizes = [64, 16], strides = [1, 1]} : vector<64x288xf32> to vector<64x16xf32>
    %27 = vector.extract_strided_slice %16 {offsets = [0, 180], sizes = [64, 16], strides = [1, 1]} : vector<64x288xf32> to vector<64x16xf32>
    %28 = vector.extract_strided_slice %16 {offsets = [0, 198], sizes = [64, 16], strides = [1, 1]} : vector<64x288xf32> to vector<64x16xf32>
    %29 = vector.extract_strided_slice %16 {offsets = [0, 216], sizes = [64, 16], strides = [1, 1]} : vector<64x288xf32> to vector<64x16xf32>
    %30 = vector.extract_strided_slice %16 {offsets = [0, 234], sizes = [64, 16], strides = [1, 1]} : vector<64x288xf32> to vector<64x16xf32>
    %31 = vector.extract_strided_slice %16 {offsets = [0, 252], sizes = [64, 16], strides = [1, 1]} : vector<64x288xf32> to vector<64x16xf32>
    %32 = vector.extract_strided_slice %16 {offsets = [0, 270], sizes = [64, 16], strides = [1, 1]} : vector<64x288xf32> to vector<64x16xf32>
    %33 = tpu.concatenate %17, %18, %19, %20, %21, %22, %23, %24, %25, %26, %27, %28, %29, %30, %31, %32 in 1 : vector<64x16xf32>, vector<64x16xf32>, vector<64x16xf32>, vector<64x16xf32>, vector<64x16xf32>, vector<64x16xf32>, vector<64x16xf32>, vector<64x16xf32>, vector<64x16xf32>, vector<64x16xf32>, vector<64x16xf32>, vector<64x16xf32>, vector<64x16xf32>, vector<64x16xf32>, vector<64x16xf32>, vector<64x16xf32> -> vector<64x256xf32>
    %c0_10 = arith.constant 0 : index
    %c0_11 = arith.constant 0 : index
    %c0_12 = arith.constant 0 : index
    %34 = vector.load %arg2[%c0_10, %c0_11, %c0_12] : memref<2x3x256xf32, #tpu.memory_space<vmem>>, vector<1x3x256xf32>
    %35 = vector.shape_cast %34 : vector<1x3x256xf32> to vector<3x256xf32>
    %cst_13 = arith.constant 0.000000e+00 : f32
    %36 = vector.broadcast %cst_13 : f32 to vector<16x256xf32>
    %37 = vector.extract_strided_slice %1 {offsets = [0, 0], sizes = [16, 1], strides = [1, 1]} : vector<16x3xf32> to vector<16x1xf32>
    %38 = vector.extract_strided_slice %35 {offsets = [0, 0], sizes = [1, 256], strides = [1, 1]} : vector<3x256xf32> to vector<1x256xf32>
    %39 = vector.broadcast %37 : vector<16x1xf32> to vector<16x256xf32>
    %40 = vector.broadcast %38 : vector<1x256xf32> to vector<16x256xf32>
    %41 = arith.mulf %39, %40 : vector<16x256xf32>
    %42 = arith.addf %36, %41 : vector<16x256xf32>
    %43 = vector.extract_strided_slice %1 {offsets = [0, 1], sizes = [16, 1], strides = [1, 1]} : vector<16x3xf32> to vector<16x1xf32>
    %44 = vector.extract_strided_slice %35 {offsets = [1, 0], sizes = [1, 256], strides = [1, 1]} : vector<3x256xf32> to vector<1x256xf32>
    %45 = vector.broadcast %43 : vector<16x1xf32> to vector<16x256xf32>
    %46 = vector.broadcast %44 : vector<1x256xf32> to vector<16x256xf32>
    %47 = arith.mulf %45, %46 : vector<16x256xf32>
    %48 = arith.addf %42, %47 : vector<16x256xf32>
    %49 = vector.extract_strided_slice %1 {offsets = [0, 2], sizes = [16, 1], strides = [1, 1]} : vector<16x3xf32> to vector<16x1xf32>
    %50 = vector.extract_strided_slice %35 {offsets = [2, 0], sizes = [1, 256], strides = [1, 1]} : vector<3x256xf32> to vector<1x256xf32>
    %51 = vector.broadcast %49 : vector<16x1xf32> to vector<16x256xf32>
    %52 = vector.broadcast %50 : vector<1x256xf32> to vector<16x256xf32>
    %53 = arith.mulf %51, %52 : vector<16x256xf32>
    %54 = arith.addf %48, %53 : vector<16x256xf32>
    %cst_14 = arith.constant 0.000000e+00 : f32
    %55 = vector.broadcast %cst_14 : f32 to vector<16x256xf32>
    %56 = arith.maximumf %54, %55 : vector<16x256xf32>
    %57 = arith.truncf %56 : vector<16x256xf32> to vector<16x256xbf16>
    %cst_15 = arith.constant dense<0.000000e+00> : vector<16x256xf32>
    %58 = tpu.matmul %2, %57, %cst_15 {dimension_numbers = #tpu.dot_dimension_numbers<[1], [0], [0], [1], [0, 0, 1, 1], [], []>} : vector<16x16xbf16>, vector<16x256xbf16>, vector<16x256xf32> -> vector<16x256xf32>
    %cst_16 = arith.constant 0.000000e+00 : f32
    %59 = vector.broadcast %cst_16 : f32 to vector<16x256xf32>
    %60 = arith.subf %59, %58 : vector<16x256xf32>
    %61 = math.exp %60 : vector<16x256xf32>
    %cst_17 = arith.constant 1.000000e+00 : f32
    %62 = vector.broadcast %cst_17 : f32 to vector<16x256xf32>
    %63 = arith.addf %62, %61 : vector<16x256xf32>
    %64 = tpu.reciprocal %63 {approx = true} : vector<16x256xf32> -> vector<16x256xf32>
    %cst_18 = arith.constant dense<0.000000e+00> : vector<256xf32>
    %65 = vector.multi_reduction <add>, %64, %cst_18 [0] : vector<16x256xf32> to vector<256xf32>
    %66 = vector.shape_cast %65 : vector<256xf32> to vector<1x256xf32>
    %cst_19 = arith.constant 1.600000e+01 : f32
    %67 = vector.broadcast %cst_19 : f32 to vector<1x256xf32>
    %68 = arith.divf %66, %67 : vector<1x256xf32>
    %69 = vector.broadcast %68 : vector<1x256xf32> to vector<64x256xf32>
    %70 = arith.mulf %33, %69 : vector<64x256xf32>
    %71 = arith.truncf %70 : vector<64x256xf32> to vector<64x256xbf16>
    %cst_20 = arith.constant dense<0.000000e+00> : vector<64x256xf32>
    %72 = tpu.matmul %3, %71, %cst_20 {dimension_numbers = #tpu.dot_dimension_numbers<[1], [0], [0], [1], [0, 0, 1, 1], [], []>} : vector<64x64xbf16>, vector<64x256xbf16>, vector<64x256xf32> -> vector<64x256xf32>
    %73 = arith.mulf %72, %72 : vector<64x256xf32>
    %74 = vector.shape_cast %73 : vector<64x256xf32> to vector<1x64x256xf32>
    %cst_21 = arith.constant dense<0.000000e+00> : vector<1xf32>
    %75 = vector.multi_reduction <add>, %74, %cst_21 [1, 2] : vector<1x64x256xf32> to vector<1xf32>
    %76 = vector.shape_cast %75 : vector<1xf32> to vector<1x1x1xf32>
    %77 = vector.extract %76[0, 0, 0] : f32 from vector<1x1x1xf32>
    %cst_22 = arith.constant 9.99999974E-6 : f32
    %78 = arith.addf %77, %cst_22 : f32
    %cst_23 = arith.constant 1.638400e+04 : f32
    %79 = arith.divf %78, %cst_23 : f32
    %80 = math.rsqrt %79 : f32
    %cst_24 = arith.constant 1.000000e+00 : f32
    %81 = arith.mulf %cst_24, %80 : f32
    %82 = vector.broadcast %81 : f32 to vector<64x256xf32>
    %83 = arith.mulf %72, %82 : vector<64x256xf32>
    %c0_25 = arith.constant 0 : index
    %c0_26 = arith.constant 0 : index
    %c0_27 = arith.constant 0 : index
    %84 = vector.load %arg7[%c0_25, %c0_26, %c0_27] : memref<2x64x256xf32, #tpu.memory_space<vmem>>, vector<1x64x256xf32>
    %85 = vector.shape_cast %84 : vector<1x64x256xf32> to vector<64x256xf32>
    %86 = vector.shape_cast %83 : vector<64x256xf32> to vector<1x64x256xf32>
    tpu.vector_store %arg7[%c0_25, %c0_26, %c0_27], %86 {strides = array<i32>} : memref<2x64x256xf32, #tpu.memory_space<vmem>>, vector<1x64x256xf32>,
    %c1 = arith.constant 1 : index
    %c0_28 = arith.constant 0 : index
    %c0_29 = arith.constant 0 : index
    %87 = vector.load %arg1[%c1, %c0_28, %c0_29] : memref<2x32x342xbf16, #tpu.memory_space<vmem>>, vector<1x32x342xbf16>
    %88 = vector.shape_cast %87 : vector<1x32x342xbf16> to vector<32x342xbf16>
    %89 = vector.extract_strided_slice %88 {offsets = [0, 0], sizes = [32, 288], strides = [1, 1]} : vector<32x342xbf16> to vector<32x288xbf16>
    %90 = vector.extract_strided_slice %88 {offsets = [0, 1], sizes = [32, 288], strides = [1, 1]} : vector<32x342xbf16> to vector<32x288xbf16>
    %91 = vector.extract_strided_slice %88 {offsets = [0, 2], sizes = [32, 288], strides = [1, 1]} : vector<32x342xbf16> to vector<32x288xbf16>
    %92 = vector.extract_strided_slice %88 {offsets = [0, 18], sizes = [32, 288], strides = [1, 1]} : vector<32x342xbf16> to vector<32x288xbf16>
    %93 = vector.extract_strided_slice %88 {offsets = [0, 19], sizes = [32, 288], strides = [1, 1]} : vector<32x342xbf16> to vector<32x288xbf16>
    %94 = vector.extract_strided_slice %88 {offsets = [0, 20], sizes = [32, 288], strides = [1, 1]} : vector<32x342xbf16> to vector<32x288xbf16>
    %95 = vector.extract_strided_slice %88 {offsets = [0, 36], sizes = [32, 288], strides = [1, 1]} : vector<32x342xbf16> to vector<32x288xbf16>
    %96 = vector.extract_strided_slice %88 {offsets = [0, 37], sizes = [32, 288], strides = [1, 1]} : vector<32x342xbf16> to vector<32x288xbf16>
    %97 = vector.extract_strided_slice %88 {offsets = [0, 38], sizes = [32, 288], strides = [1, 1]} : vector<32x342xbf16> to vector<32x288xbf16>
    %98 = tpu.concatenate %89, %90, %91, %92, %93, %94, %95, %96, %97 in 0 : vector<32x288xbf16>, vector<32x288xbf16>, vector<32x288xbf16>, vector<32x288xbf16>, vector<32x288xbf16>, vector<32x288xbf16>, vector<32x288xbf16>, vector<32x288xbf16>, vector<32x288xbf16> -> vector<288x288xbf16>
    %cst_30 = arith.constant dense<0.000000e+00> : vector<64x288xf32>
    %99 = tpu.matmul %0, %98, %cst_30 {dimension_numbers = #tpu.dot_dimension_numbers<[1], [0], [0], [1], [0, 0, 1, 1], [], []>} : vector<64x288xbf16>, vector<288x288xbf16>, vector<64x288xf32> -> vector<64x288xf32>
    %100 = vector.extract_strided_slice %99 {offsets = [0, 0], sizes = [64, 16], strides = [1, 1]} : vector<64x288xf32> to vector<64x16xf32>
    %101 = vector.extract_strided_slice %99 {offsets = [0, 18], sizes = [64, 16], strides = [1, 1]} : vector<64x288xf32> to vector<64x16xf32>
    %102 = vector.extract_strided_slice %99 {offsets = [0, 36], sizes = [64, 16], strides = [1, 1]} : vector<64x288xf32> to vector<64x16xf32>
    %103 = vector.extract_strided_slice %99 {offsets = [0, 54], sizes = [64, 16], strides = [1, 1]} : vector<64x288xf32> to vector<64x16xf32>
    %104 = vector.extract_strided_slice %99 {offsets = [0, 72], sizes = [64, 16], strides = [1, 1]} : vector<64x288xf32> to vector<64x16xf32>
    %105 = vector.extract_strided_slice %99 {offsets = [0, 90], sizes = [64, 16], strides = [1, 1]} : vector<64x288xf32> to vector<64x16xf32>
    %106 = vector.extract_strided_slice %99 {offsets = [0, 108], sizes = [64, 16], strides = [1, 1]} : vector<64x288xf32> to vector<64x16xf32>
    %107 = vector.extract_strided_slice %99 {offsets = [0, 126], sizes = [64, 16], strides = [1, 1]} : vector<64x288xf32> to vector<64x16xf32>
    %108 = vector.extract_strided_slice %99 {offsets = [0, 144], sizes = [64, 16], strides = [1, 1]} : vector<64x288xf32> to vector<64x16xf32>
    %109 = vector.extract_strided_slice %99 {offsets = [0, 162], sizes = [64, 16], strides = [1, 1]} : vector<64x288xf32> to vector<64x16xf32>
    %110 = vector.extract_strided_slice %99 {offsets = [0, 180], sizes = [64, 16], strides = [1, 1]} : vector<64x288xf32> to vector<64x16xf32>
    %111 = vector.extract_strided_slice %99 {offsets = [0, 198], sizes = [64, 16], strides = [1, 1]} : vector<64x288xf32> to vector<64x16xf32>
    %112 = vector.extract_strided_slice %99 {offsets = [0, 216], sizes = [64, 16], strides = [1, 1]} : vector<64x288xf32> to vector<64x16xf32>
    %113 = vector.extract_strided_slice %99 {offsets = [0, 234], sizes = [64, 16], strides = [1, 1]} : vector<64x288xf32> to vector<64x16xf32>
    %114 = vector.extract_strided_slice %99 {offsets = [0, 252], sizes = [64, 16], strides = [1, 1]} : vector<64x288xf32> to vector<64x16xf32>
    %115 = vector.extract_strided_slice %99 {offsets = [0, 270], sizes = [64, 16], strides = [1, 1]} : vector<64x288xf32> to vector<64x16xf32>
    %116 = tpu.concatenate %100, %101, %102, %103, %104, %105, %106, %107, %108, %109, %110, %111, %112, %113, %114, %115 in 1 : vector<64x16xf32>, vector<64x16xf32>, vector<64x16xf32>, vector<64x16xf32>, vector<64x16xf32>, vector<64x16xf32>, vector<64x16xf32>, vector<64x16xf32>, vector<64x16xf32>, vector<64x16xf32>, vector<64x16xf32>, vector<64x16xf32>, vector<64x16xf32>, vector<64x16xf32>, vector<64x16xf32>, vector<64x16xf32> -> vector<64x256xf32>
    %c1_31 = arith.constant 1 : index
    %c0_32 = arith.constant 0 : index
    %c0_33 = arith.constant 0 : index
    %117 = vector.load %arg2[%c1_31, %c0_32, %c0_33] : memref<2x3x256xf32, #tpu.memory_space<vmem>>, vector<1x3x256xf32>
    %118 = vector.shape_cast %117 : vector<1x3x256xf32> to vector<3x256xf32>
    %cst_34 = arith.constant 0.000000e+00 : f32
    %119 = vector.broadcast %cst_34 : f32 to vector<16x256xf32>
    %120 = vector.extract_strided_slice %1 {offsets = [0, 0], sizes = [16, 1], strides = [1, 1]} : vector<16x3xf32> to vector<16x1xf32>
    %121 = vector.extract_strided_slice %118 {offsets = [0, 0], sizes = [1, 256], strides = [1, 1]} : vector<3x256xf32> to vector<1x256xf32>
    %122 = vector.broadcast %120 : vector<16x1xf32> to vector<16x256xf32>
    %123 = vector.broadcast %121 : vector<1x256xf32> to vector<16x256xf32>
    %124 = arith.mulf %122, %123 : vector<16x256xf32>
    %125 = arith.addf %119, %124 : vector<16x256xf32>
    %126 = vector.extract_strided_slice %1 {offsets = [0, 1], sizes = [16, 1], strides = [1, 1]} : vector<16x3xf32> to vector<16x1xf32>
    %127 = vector.extract_strided_slice %118 {offsets = [1, 0], sizes = [1, 256], strides = [1, 1]} : vector<3x256xf32> to vector<1x256xf32>
    %128 = vector.broadcast %126 : vector<16x1xf32> to vector<16x256xf32>
    %129 = vector.broadcast %127 : vector<1x256xf32> to vector<16x256xf32>
    %130 = arith.mulf %128, %129 : vector<16x256xf32>
    %131 = arith.addf %125, %130 : vector<16x256xf32>
    %132 = vector.extract_strided_slice %1 {offsets = [0, 2], sizes = [16, 1], strides = [1, 1]} : vector<16x3xf32> to vector<16x1xf32>
    %133 = vector.extract_strided_slice %118 {offsets = [2, 0], sizes = [1, 256], strides = [1, 1]} : vector<3x256xf32> to vector<1x256xf32>
    %134 = vector.broadcast %132 : vector<16x1xf32> to vector<16x256xf32>
    %135 = vector.broadcast %133 : vector<1x256xf32> to vector<16x256xf32>
    %136 = arith.mulf %134, %135 : vector<16x256xf32>
    %137 = arith.addf %131, %136 : vector<16x256xf32>
    %cst_35 = arith.constant 0.000000e+00 : f32
    %138 = vector.broadcast %cst_35 : f32 to vector<16x256xf32>
    %139 = arith.maximumf %137, %138 : vector<16x256xf32>
    %140 = arith.truncf %139 : vector<16x256xf32> to vector<16x256xbf16>
    %cst_36 = arith.constant dense<0.000000e+00> : vector<16x256xf32>
    %141 = tpu.matmul %2, %140, %cst_36 {dimension_numbers = #tpu.dot_dimension_numbers<[1], [0], [0], [1], [0, 0, 1, 1], [], []>} : vector<16x16xbf16>, vector<16x256xbf16>, vector<16x256xf32> -> vector<16x256xf32>
    %cst_37 = arith.constant 0.000000e+00 : f32
    %142 = vector.broadcast %cst_37 : f32 to vector<16x256xf32>
    %143 = arith.subf %142, %141 : vector<16x256xf32>
    %144 = math.exp %143 : vector<16x256xf32>
    %cst_38 = arith.constant 1.000000e+00 : f32
    %145 = vector.broadcast %cst_38 : f32 to vector<16x256xf32>
    %146 = arith.addf %145, %144 : vector<16x256xf32>
    %147 = tpu.reciprocal %146 {approx = true} : vector<16x256xf32> -> vector<16x256xf32>
    %cst_39 = arith.constant dense<0.000000e+00> : vector<256xf32>
    %148 = vector.multi_reduction <add>, %147, %cst_39 [0] : vector<16x256xf32> to vector<256xf32>
    %149 = vector.shape_cast %148 : vector<256xf32> to vector<1x256xf32>
    %cst_40 = arith.constant 1.600000e+01 : f32
    %150 = vector.broadcast %cst_40 : f32 to vector<1x256xf32>
    %151 = arith.divf %149, %150 : vector<1x256xf32>
    %152 = vector.broadcast %151 : vector<1x256xf32> to vector<64x256xf32>
    %153 = arith.mulf %116, %152 : vector<64x256xf32>
    %154 = arith.truncf %153 : vector<64x256xf32> to vector<64x256xbf16>
    %cst_41 = arith.constant dense<0.000000e+00> : vector<64x256xf32>
    %155 = tpu.matmul %3, %154, %cst_41 {dimension_numbers = #tpu.dot_dimension_numbers<[1], [0], [0], [1], [0, 0, 1, 1], [], []>} : vector<64x64xbf16>, vector<64x256xbf16>, vector<64x256xf32> -> vector<64x256xf32>
    %156 = arith.mulf %155, %155 : vector<64x256xf32>
    %157 = vector.shape_cast %156 : vector<64x256xf32> to vector<1x64x256xf32>
    %cst_42 = arith.constant dense<0.000000e+00> : vector<1xf32>
    %158 = vector.multi_reduction <add>, %157, %cst_42 [1, 2] : vector<1x64x256xf32> to vector<1xf32>
    %159 = vector.shape_cast %158 : vector<1xf32> to vector<1x1x1xf32>
    %160 = vector.extract %159[0, 0, 0] : f32 from vector<1x1x1xf32>
    %cst_43 = arith.constant 9.99999974E-6 : f32
    %161 = arith.addf %160, %cst_43 : f32
    %cst_44 = arith.constant 1.638400e+04 : f32
    %162 = arith.divf %161, %cst_44 : f32
    %163 = math.rsqrt %162 : f32
    %cst_45 = arith.constant 1.000000e+00 : f32
    %164 = arith.mulf %cst_45, %163 : f32
    %165 = vector.broadcast %164 : f32 to vector<64x256xf32>
    %166 = arith.mulf %155, %165 : vector<64x256xf32>
    %c1_46 = arith.constant 1 : index
    %c0_47 = arith.constant 0 : index
    %c0_48 = arith.constant 0 : index
    %167 = vector.load %arg7[%c1_46, %c0_47, %c0_48] : memref<2x64x256xf32, #tpu.memory_space<vmem>>, vector<1x64x256xf32>
    %168 = vector.shape_cast %167 : vector<1x64x256xf32> to vector<64x256xf32>
    %169 = vector.shape_cast %166 : vector<64x256xf32> to vector<1x64x256xf32>
    tpu.vector_store %arg7[%c1_46, %c0_47, %c0_48], %169 {strides = array<i32>} : memref<2x64x256xf32, #tpu.memory_space<vmem>>, vector<1x64x256xf32>,
    return
  }
  func.func @transform_0(%arg0: i32) -> (i32, i32, i32) {
    %c0_i32 = arith.constant 0 : i32
    %c0_i32_0 = arith.constant 0 : i32
    %c0_i32_1 = arith.constant 0 : i32
    return %arg0, %c0_i32, %c0_i32_0 : i32, i32, i32
  }
  func.func @transform_1(%arg0: i32) -> (i32, i32, i32) {
    %c0_i32 = arith.constant 0 : i32
    %c0_i32_0 = arith.constant 0 : i32
    %c0_i32_1 = arith.constant 0 : i32
    return %arg0, %c0_i32, %c0_i32_0 : i32, i32, i32
  }
  func.func @transform_2(%arg0: i32) -> (i32, i32) {
    %c0_i32 = arith.constant 0 : i32
    %c0_i32_0 = arith.constant 0 : i32
    %c0_i32_1 = arith.constant 0 : i32
    return %c0_i32, %c0_i32_0 : i32, i32
  }
  func.func @transform_3(%arg0: i32) -> (i32, i32) {
    %c0_i32 = arith.constant 0 : i32
    %c0_i32_0 = arith.constant 0 : i32
    %c0_i32_1 = arith.constant 0 : i32
    return %c0_i32, %c0_i32_0 : i32, i32
  }
  func.func @transform_4(%arg0: i32) -> (i32, i32) {
    %c0_i32 = arith.constant 0 : i32
    %c0_i32_0 = arith.constant 0 : i32
    %c0_i32_1 = arith.constant 0 : i32
    return %c0_i32, %c0_i32_0 : i32, i32
  }
  func.func @transform_5(%arg0: i32) -> (i32, i32) {
    %c0_i32 = arith.constant 0 : i32
    %c0_i32_0 = arith.constant 0 : i32
    %c0_i32_1 = arith.constant 0 : i32
    return %c0_i32, %c0_i32_0 : i32, i32
  }
  func.func @transform_6(%arg0: i32) -> (i32, i32, i32) {
    %c0_i32 = arith.constant 0 : i32
    %c0_i32_0 = arith.constant 0 : i32
    %c0_i32_1 = arith.constant 0 : i32
    return %arg0, %c0_i32, %c0_i32_0 : i32, i32, i32
  }
}

</mosaic_0001>

<bundles_post_ra>
// kernel: tpu_custom_call.1
= control target key start
LH: loop header
LB: loop body
LE: loop exit
PB: predicated region body
PF: predicated region fallthrough
CT: control target
= control target key end

     0   :  { %s6498_s0 = inlined_call_operand.hbm [shape: bf16[4,32,342], index: 0, kind: input, shape index: {}]   ;;  %s6499_s1 = inlined_call_operand.vmem [shape: f32[4,3,256], index: 1, kind: input, shape index: {}]   ;;  %s6500_s2 = inlined_call_operand.hbm [shape: bf16[64,288], index: 2, kind: input, shape index: {}]   ;;  %s6501_s3 = inlined_call_operand.vmem [shape: f32[16,3], index: 3, kind: input, shape index: {}]   ;;  %s6502_s4 = inlined_call_operand.vmem [shape: bf16[16,16], index: 4, kind: input, shape index: {}]   ;;  %s6503_s5 = inlined_call_operand.vmem [shape: bf16[64,64], index: 5, kind: input, shape index: {}]   ;;  %s6504_s6 = inlined_call_operand.hbm [shape: f32[4,64,256], index: 6, kind: output, shape index: {}]  }
   0x1   :  { %6573 = sst [smem:[#allocation91_spill]] %s6498_s0 }
   0x2   :  { %11 = vsyncpa [#allocation3], 0 }
   0x3   :  { %13 = vsyncpa [#allocation3 + $0x1], 0 }
   0x4   :  { %14 = vsyncpa [#allocation6], 0 }
   0x5   :  { %15 = vsyncpa [#allocation4], 0 }
   0x6   :  { %17 = vsyncpa [#allocation4 + $0x1], 0  ;;  %s3987_s21 = smov 0   ;;  %s3989_s22 = smov 0  }
   0x7   :  { %s3991_s23 = smov 0   ;;  %s3993_s24 = smov 0  }
   0x8 LB: > { %s4008_s25 = sadd.s32 4294967295, %s3920_s24   ;;  %s3367_s26 = sadd.s32 4294967294, %s3920_s24   ;;  %s3920_s24 = sphi %s3993_s24, %s6853_s24   ;;  %s3916_s23 = sphi %s3991_s23, %s6852_s23   ;;  %s3912_s22 = sphi %s3989_s22, %s6851_s22   ;;  %s3908_s21 = sphi %s3987_s21, %s6850_s21  }
   0x9   : > { %p43_p0 = scmp.ne.s32.totalorder %s3912_s22, %s3908_s21  ;;  %p6507_p1 = scmp.eq.s32.totalorder %s4008_s25, 0 }
   0xa   : > { %p183_p3 = scmp.eq.s32.totalorder %s3367_s26, 1  ;;  %p3368_p5 = scmp.ge.s32.totalorder %s3920_s24, 1 }
   0xb   : > { %p4017_p4 = por %p6507_p1, %p43_p0  ;;  %p190_p7 = scmp.lt.s32.totalorder %s3920_s24, 3 }
   0xc   : > { %p4022_p6 = por %p183_p3, %p43_p0  ;;  %s3922_s30 = smov [#allocation5]  }
   0xd   : > { %s6574_s27 = scalar_select %p4017_p4, 1, 0 }
   0xe   : > { %s6575_s28 = scalar_select %p4022_p6, 1, 0 }
   0xf   : > { %p4027_p8 = pnand %p3368_p5, %p190_p7  ;;  %s202_s7 = sshll.u32 %s3922_s30, 4  ;;  %s203_s7 = int_to_ptr.vmem [resolvable:$true] %s202_s7 }
  0x10   : > { %s4041_s9 = sadd.s32 1, %s3920_s24   ;;  %s30_s10 = sadd.s32 1, %s3916_s23 }
  0x11   : > { %s6576_s29 = scalar_select %p4027_p8, 1, 0 }
  0x12   : > { %p3620_p9 = pneg %p4027_p8  ;;  %s27_s11 = ssub.s32 %s3920_s24, %s4041_s9 }
  0x13   : > { %s3809_s12 = scalar_lea.vmem %s203_s7, 1536  ;;  %p3817_p5 = scmp.lt.s32.totalorder %s203_s7, %s203_s7 }
  0x14   : > { %p4036_p11 = pnand %p3620_p9, %p6507_p1  ;;  %p3810_p13 = scmp.ne.s32.totalorder %s203_s7, %s3809_s12 }
  0x15   : > { %p3818_p7 = scmp.lt.s32.totalorder %s3809_s12, %s3809_s12 }
  0x16   : > { %p3800_p12 = pneg %p4036_p11 }
  0x17   : > { %p3819_p10 = por %p3818_p7, %p3817_p5 }
  0x18   : > { %p3812_p0 = pnand %p3810_p13, %p3800_p12 }
  0x1a   : > { %p3813_p3 = pneg %p3812_p0 }
  0x1c   : > { %p3820_p2 = pnand %p3819_p10, %p3813_p3 }
  0x1e   : > { %3823 = shalt.err (!%p3820_p2)
}
  0x1f   : > { %s6505_s13 = smov 192   ;;  %s6506_s14 = smov 12  }
  0x20   : > { %3623 = dma.hbm_to_vmem [thread:$0]  (!%p4036_p11), %s6500_s2, 1536, %s203_s7, [#allocation6], %s6505_s13, %s6505_s13, %s6506_s14  }
  0x21   : > { %p28_p2 = scmp.eq.s32.totalorder %s27_s11, 0  ;;  %p37_p9 = scmp.ne.s32.totalorder %s3916_s23, %s3912_s22 }
  0x22   : > { %p38_p10 = scmp.eq.s32.totalorder %s3920_s24, 0  ;;  %p3633_p12 = scmp.lt.s32.totalorder %s3920_s24, 2 }
  0x23   : > { %s4061_s17 = scalar_select %p28_p2, %s3916_s23, %s30_s10  }
  0x24   : > { %p39_p13 = por %p38_p10, %p37_p9  ;;  %p6578_p0 = scmp.eq.s32.totalorder %s4008_s25, 1 }
  0x25   : > { %s225_s19 = sand.u32 1, %s3916_s23   ;;  %s3602_s20 = smul.u32 1536, %s3920_s24 }
  0x26   : > { %p4065_p3 = por %p6578_p0, %p37_p9  ;;  %s3601_s26 = smul.u32 96, %s225_s19 }
  0x27   : > { %p4071_p5 = pnand %p3633_p12, %p39_p13  ;;  %s6581_s0 = sld [smem:[#allocation91_spill]] }
  0x28   : > { %s6579_s18 = scalar_select %p4065_p3, 1, 0 }
  0x29   : > { %s229_s10 = scalar_lea.vmem [#allocation2], %s3601_s26  ;;  %s4082_s15 = scalar_lea.sflag [#allocation3], %s225_s19 }
  0x2a   : > { %s237_s12 = sshll.u32 %s229_s10, 4  ;;  %p3826_p7 = pneg %p4071_p5  ;;  %s4080_s12 = int_to_ptr.vmem [resolvable:$true] %s237_s12 }
  0x2d   : > { %s4078_s11 = scalar_lea.hbm %s6581_s0, %s3602_s20  ;;  %s3829_s20 = scalar_lea.hbm %s6581_s0, 3072 }
  0x2e   : > { %s3824_s16 = scalar_lea.hbm %s4078_s11, 1536  ;;  %p3830_p10 = scmp.lt.s32.totalorder %s4078_s11, %s6581_s0 }
  0x2f   : > { %p3825_p11 = scmp.ne.s32.totalorder %s4078_s11, %s3824_s16  ;;  %p3831_p12 = scmp.lt.s32.totalorder %s3829_s20, %s3824_s16 }
  0x31   : > { %p3827_p2 = pnand %p3826_p7, %p3825_p11  ;;  %p3832_p13 = por %p3831_p12, %p3830_p10 }
  0x33   : > { %p3828_p9 = pneg %p3827_p2 }
  0x35   : > { %p3833_p0 = pnand %p3832_p13, %p3828_p9 }
  0x37   : > { %3836 = shalt.err (!%p3833_p0)
}
  0x38   : > { %s3837_s19 = scalar_lea.vmem %s4080_s12, 1536  ;;  %s3925_s26 = smov [#allocation2]  }
  0x39   : > { %p3838_p1 = scmp.ne.s32.totalorder %s4080_s12, %s3837_s19  ;;  %s3842_s10 = sshll.u32 %s3925_s26, 4  ;;  %s3843_s10 = int_to_ptr.vmem [resolvable:$false] %s3842_s10 }
  0x3a   : > { %s3844_s13 = scalar_lea.vmem %s3843_s10, 3072  ;;  %p3845_p2 = scmp.lt.s32.totalorder %s4080_s12, %s3843_s10 }
  0x3b   : > { %p3840_p6 = pnand %p3838_p1, %p3826_p7  ;;  %p3846_p3 = scmp.lt.s32.totalorder %s3844_s13, %s3837_s19 }
  0x3d   : > { %p3841_p11 = pneg %p3840_p6  ;;  %p3847_p4 = por %p3846_p3, %p3845_p2 }
  0x3f   : > { %p3848_p8 = pnand %p3847_p4, %p3841_p11 }
  0x41   : > { %3851 = shalt.err (!%p3848_p8)
}
  0x42   : > { %s6582_s14 = smov 12   ;;  %s6583_s16 = smov 192  }
  0x43   : > { %3627 = dma.hbm_to_vmem [thread:$0]  (!%p4071_p5), %s4078_s11, 1536, %s4080_s12, %s4082_s15, %s6583_s16, %s6583_s16, %s6582_s14  }
  0x44   : > { %p6584_p1 = scmp.ne.s32.totalorder %s6576_s29, 0 }
  0x46   : > { %259 = sbr.rel (%p6584_p1) target bundleno = 2081 (0x821), region = 44 }
  0x4b   : > { %s4109_s7 = sand.u32 1, %s3912_s22   ;;  %p6585_p4 = scmp.ne.s32.totalorder %s6574_s27, 0 }
  0x4c   : > { %s3603_s20 = smul.u32 96, %s4109_s7  ;;  %s262_s8 = scalar_lea.sflag [#allocation3], %s4109_s7 }
  0x4e   : > { %s4113_s19 = scalar_lea.vmem [#allocation2], %s3603_s20 }
  0x4f   : > { %3895 = dma.done.wait (%p6585_p4), %s262_s8, 1536  }
  0x50   : > { %3897 = vsyncadd (%p6585_p4), %s262_s8, 4294965760  ;;  %p6586_p6 = scmp.eq.s32.totalorder %s4008_s25, 0 }
  0x52   : > { %3899 = dma.done.wait (%p6586_p6), [#allocation6], 1536   ;;  %p6587_p8 = pmov %p6586_p6 }
  0x53   : > { %v4124_v0 = vld [vmem:[%s4113_s19 + $0x1c] ss:$12 sps:$4 sm:$0xff]   ;;  %v4127_v1 = vld [vmem:[%s4113_s19 + $0x18] ss:$12 sps:$4 sm:$0xff]   ;;  %s6554_s29 = smov 110   ;;  %s6532_s27 = smov 126   ;;  %v1479_v22 = vlaneseq }
  0x54   : > { %3901 = vsyncadd (%p6587_p8), [#allocation6], 4294965760  ;;  %436 = vrot.lane.b32.xlu0 %v4124_v0, %s6554_s29  ;;  %v4132_v2 = vld [vmem:[%s4113_s19 + $0x20] ss:$12 sps:$4 sm:$0xff]   ;;  %434 = vrot.lane.b32.xlu1 %v4127_v1, %s6554_s29  ;;  %v4137_v3 = vld [vmem:[%s4113_s19 + $0x4] ss:$12 sps:$4 sm:$0xff]  }
  0x55   : > { %v4140_v4 = vld [vmem:[%s4113_s19 + $0x8] ss:$12 sps:$4 sm:$0xff]   ;;  %v4143_v5 = vld [vmem:[%s4113_s19] ss:$12 sps:$4 sm:$0xff]   ;;  %s6517_s30 = smov 127   ;;  %s6518_s11 = smov 91  }
  0x56   : > { %s6515_s12 = smov 90   ;;  %s6513_s15 = smov 92   ;;  %v6538_v6 = vmov 0   ;;  %v4228_v7 = vld [vmem:[#allocation5 + $0x4] ss:$12 sps:$4 sm:$0xff]   ;;  %v331_v8 = vld [vmem:[%s6501_s3 + $0x8] sm:$0xff] }
  0x57   : > { %744 = vmatprep.mubr.bf16.mxu1 %v6538_v6  ;;  %3697 = vset.pattern.permute.xlu1 %v6538_v6  ;;  %s6558_s26 = smov 108   ;;  %s6511_s10 = smov 109   ;;  %v330_v9 = vld [vmem:[%s6501_s3] sm:$0xff]  ;;  %v3935_v10 = vmov 1   ;;  %v3936_v11 = vmov 2   ;;  %vm440_vm0 = vcmask 900096  }
  0x58   : > { %438 = vrot.lane.b32.xlu0 %v4132_v2, %s6554_s29  ;;  %430 = vrot.lane.b32.xlu1 %v4137_v3, %s6554_s29  ;;  %s3377_s8 = sshll.u32 %s4008_s25, 1  ;;  %vm417_vm1 = vcmask 1031168   ;;  %v4260_v24 = vshrl.u32 %v1479_v22, 7  ;;  %vm394_vm2 = vcmask 1039360   ;;  %vm532_vm3 = vcmask 744448   ;;  %s6528_s14 = smov 98  }
  0x59   : > { %3696 = vset.pattern.permute.xlu0 %v6538_v6  ;;  %671 = vmatprep.mubr.bf16.mxu0 %v4228_v7  ;;  %p306_p3 = scmp.lt.s32.totalorder %s3377_s8, 3  ;;  %vm555_vm4 = vcmask 736256   ;;  %vm509_vm5 = vcmask 752640   ;;  %vm626_vm6 = vcmask 261120   ;;  %vm486_vm7 = vcmask 883712   ;;  %s6536_s16 = smov 100  }
  0x5a   : > { %v4272_v28 = vsub.s32 0, %v4260_v24  ;;  %v1485_v29 = vsub.s32 4, %v4260_v24  ;;  %v4280_v33 = vsub.s32 1, %v4260_v24  ;;  %v1519_v34 = vsub.s32 5, %v4260_v24  ;;  %s6667_s0 = smov 92   ;;  %p6847_p7 = scmp.ne.s32.totalorder %s6579_s18, 0 }
  0x5b   : > { %s6855_s8 = smov (!%p306_p3, %s3377_s8), 3  ;;  %vm463_vm8 = vcmask 891904   ;;  %vm1349_vm9 = vcmask 130048   ;;  %vm1366_vm10 = vcmask 392192   ;;  %vm1375_vm11 = vcmask 523264  }
  0x5c   : > { %432 = vrot.lane.b32.xlu0 %v4140_v4, %s6554_s29  ;;  %428 = vrot.lane.b32.xlu1 %v4143_v5, %s6554_s29  ;;  %s3466_s13 = sshll.u32 %s6855_s8, 3  ;;  %s6526_s8 = smov 118   ;;  %vm1384_vm12 = vcmask 654336   ;;  %vm1107_vm13 = vcmask 932864   ;;  %vm1393_vm14 = vcmask 785408   ;;  %vm1402_vm15 = vcmask 916480  }
  0x5d   : > { %s4269_s20 = scalar_lea.vmem %s6499_s1, %s3466_s13  ;;  %s6552_s13 = smov 124  }
  0x5e   : > { %v4277_v32 = vld [vmem:[%s4269_s20 + $0x8] sm:$0x77] }
  0x5f   : > { %v2919_v35 = vrot.slane %v4277_v32, %v4272_v28  ;;  %v2923_v36 = vrot.slane %v4277_v32, %v1485_v29  ;;  %v2945_v37 = vrot.slane %v4277_v32, %v4280_v33  ;;  %v2949_v38 = vrot.slane %v4277_v32, %v1519_v34 }
  0x60   : > { %413 = vrot.lane.b32.xlu0 %v4124_v0, %s6532_s27  ;;  %415 = vrot.lane.b32.xlu1 %v4132_v2, %s6532_s27 }
  0x61   : > { %v4296_v40 = vrot.slane %v2919_v35, %v4272_v28  ;;  %v4299_v41 = vrot.slane %v2923_v36, %v4272_v28  ;;  %v4304_v44 = vrot.slane %v2945_v37, %v4280_v33  ;;  %v4308_v46 = vrot.slane %v2949_v38, %v4280_v33 }
  0x64   : > { %411 = vrot.lane.b32.xlu0 %v4127_v1, %s6532_s27  ;;  %407 = vrot.lane.b32.xlu1 %v4137_v3, %s6532_s27 }
  0x68   : > { %409 = vrot.lane.b32.xlu0 %v4140_v4, %s6532_s27  ;;  %405 = vrot.lane.b32.xlu1 %v4143_v5, %s6532_s27 }
  0x6c   : > { %390 = vrot.lane.b32.xlu0 %v4124_v0, %s6517_s30  ;;  %392 = vrot.lane.b32.xlu1 %v4132_v2, %s6517_s30 }
  0x70   : > { %388 = vrot.lane.b32.xlu0 %v4127_v1, %s6517_s30  ;;  %384 = vrot.lane.b32.xlu1 %v4137_v3, %s6517_s30 }
  0x74   : > { %386 = vrot.lane.b32.xlu0 %v4140_v4, %s6517_s30  ;;  %382 = vrot.lane.b32.xlu1 %v4143_v5, %s6517_s30 }
  0x78   : > { %528 = vrot.lane.b32.xlu0 %v4124_v0, %s6518_s11  ;;  %530 = vrot.lane.b32.xlu1 %v4132_v2, %s6518_s11 }
  0x7c   : > { %526 = vrot.lane.b32.xlu0 %v4127_v1, %s6518_s11  ;;  %522 = vrot.lane.b32.xlu1 %v4137_v3, %s6518_s11 }
  0x80   : > { %524 = vrot.lane.b32.xlu0 %v4140_v4, %s6518_s11  ;;  %551 = vrot.lane.b32.xlu1 %v4124_v0, %s6515_s12 }
  0x84   : > { %553 = vrot.lane.b32.xlu0 %v4132_v2, %s6515_s12  ;;  %520 = vrot.lane.b32.xlu1 %v4143_v5, %s6518_s11  ;;  %s6530_s11 = smov 102  }
  0x88   : > { %549 = vrot.lane.b32.xlu0 %v4127_v1, %s6515_s12  ;;  %505 = vrot.lane.b32.xlu1 %v4124_v0, %s6513_s15 }
  0x8c   : > { %507 = vrot.lane.b32.xlu0 %v4132_v2, %s6513_s15  ;;  %545 = vrot.lane.b32.xlu1 %v4137_v3, %s6515_s12 }
  0x90   : > { %547 = vrot.lane.b32.xlu0 %v4140_v4, %s6515_s12  ;;  %503 = vrot.lane.b32.xlu1 %v4127_v1, %s6513_s15 }
  0x94   : > { %543 = vrot.lane.b32.xlu0 %v4143_v5, %s6515_s12  ;;  %499 = vrot.lane.b32.xlu1 %v4137_v3, %s6513_s15  ;;  %s6556_s12 = smov 114  }
  0x98   : > { %501 = vrot.lane.b32.xlu0 %v4140_v4, %s6513_s15  ;;  %497 = vrot.lane.b32.xlu1 %v4143_v5, %s6513_s15  ;;  %s6541_s15 = smov 122  }
  0x9c   : > { %482 = vrot.lane.b32.xlu0 %v4124_v0, %s6558_s26  ;;  %484 = vrot.lane.b32.xlu1 %v4132_v2, %s6558_s26 }
  0xa0   : > { %480 = vrot.lane.b32.xlu0 %v4127_v1, %s6558_s26  ;;  %476 = vrot.lane.b32.xlu1 %v4137_v3, %s6558_s26 }
  0xa4   : > { %478 = vrot.lane.b32.xlu0 %v4140_v4, %s6558_s26  ;;  %474 = vrot.lane.b32.xlu1 %v4143_v5, %s6558_s26 }
  0xa8   : > { %459 = vrot.lane.b32.xlu0 %v4124_v0, %s6511_s10  ;;  %461 = vrot.lane.b32.xlu1 %v4132_v2, %s6511_s10 }
  0xac   : > { %457 = vrot.lane.b32.xlu0 %v4127_v1, %s6511_s10  ;;  %453 = vrot.lane.b32.xlu1 %v4137_v3, %s6511_s10 }
  0xb0   : > { %455 = vrot.lane.b32.xlu0 %v4140_v4, %s6511_s10  ;;  %451 = vrot.lane.b32.xlu1 %v4143_v5, %s6511_s10  ;;  %s6520_s10 = smov 116  }
  0xb4   : > { %1470 = vperm.xlu0 %3696, %v330_v9   ;;  %1475 = vperm.xlu1 %3697, %v331_v8  }
  0xb8   : > { %3699 = vset.pattern.permute.xlu0 %v3935_v10  ;;  %3698 = vset.pattern.permute.xlu1 %v3935_v10 }
  0xb9   : > { %1510 = vperm.xlu0 %3699, %v331_v8   ;;  %1506 = vperm.xlu1 %3698, %v330_v9  }
  0xbd   : > { %3701 = vset.pattern.permute.xlu0 %v3936_v11  ;;  %3700 = vset.pattern.permute.xlu1 %v3936_v11 }
  0xbe   : > { %1540 = vperm.xlu1 %3700, %v330_v9  }
  0xc2   : > { %1544 = vperm.xlu1 %3700, %v331_v8  }
  0xc6   : > { %v437_v12 = vpop.permute.xlu0 %436  ;;  %v435_v13 = vpop.permute.xlu1 %434 }
  0xc7   : > { %v443_v17 = vsel %vm440_vm0, %v435_v13, %v437_v12 }
  0xca   : > { %v4249_v14 = vpop.permute.xlu0 %438  ;;  %v431_v15 = vpop.permute.xlu1 %430 }
  0xcb   : > { %v444_v16 = vsel %vm440_vm0, %v437_v12, %v4249_v14 }
  0xcc   : > { %639 = vmatprep.subr.bf16.mxu0 %v444_v16 }
  0xcd   : > { %640 = vmatpush1.bf16.msra.mxu0 %v443_v17 }
  0xce   : > { %v4254_v18 = vpop.permute.xlu0 %432  ;;  %v429_v19 = vpop.permute.xlu1 %428 }
  0xcf   : > { %v442_v20 = vsel %vm440_vm0, %v431_v15, %v4254_v18  ;;  %v441_v21 = vsel %vm440_vm0, %v429_v19, %v431_v15 }
  0xd0   : > { %641 = vmatprep.subr.bf16.mxu0 %v442_v20 }
  0xd1   : > { %642 = vmatpush1.bf16.msra.mxu0 %v441_v21 }
  0xd2   : > { %v414_v23 = vpop.permute.xlu0 %413  ;;  %v4262_v25 = vpop.permute.xlu1 %415 }
  0xd3   : > { %v421_v26 = vsel %vm417_vm1, %v414_v23, %v4262_v25 }
  0xd4   : > { %643 = vmatprep.subr.bf16.mxu0 %v421_v26 }
  0xd6   : > { %v412_v27 = vpop.permute.xlu0 %411  ;;  %v408_v30 = vpop.permute.xlu1 %407 }
  0xd7   : > { %v420_v31 = vsel %vm417_vm1, %v412_v27, %v414_v23  ;;  %v4349_v27 = vld [vmem:[#allocation5 + $0x8] ss:$12 sps:$4 sm:$0xff]  }
  0xd8   : > { %644 = vmatpush1.bf16.msra.mxu0 %v420_v31 }
  0xda   : > { %v4293_v39 = vpop.permute.xlu0 %409  ;;  %v406_v42 = vpop.permute.xlu1 %405 }
  0xdb   : > { %v419_v43 = vsel %vm417_vm1, %v408_v30, %v4293_v39  ;;  %v418_v45 = vsel %vm417_vm1, %v406_v42, %v408_v30  ;;  %v4364_v42 = vld [vmem:[#allocation5 + $0x20] ss:$12 sps:$4 sm:$0xff]  }
  0xdc   : > { %645 = vmatprep.subr.bf16.mxu0 %v419_v43 }
  0xdd   : > { %646 = vmatpush1.bf16.msra.mxu0 %v418_v45 }
  0xde   : > { %v391_v47 = vpop.permute.xlu0 %390  ;;  %v4310_v48 = vpop.permute.xlu1 %392 }
  0xdf   : > { %v398_v49 = vsel %vm394_vm2, %v391_v47, %v4310_v48 }
  0xe0   : > { %647 = vmatprep.subr.bf16.mxu0 %v398_v49 }
  0xe2   : > { %v389_v50 = vpop.permute.xlu0 %388  ;;  %v385_v51 = vpop.permute.xlu1 %384 }
  0xe3   : > { %v397_v52 = vsel %vm394_vm2, %v389_v50, %v391_v47 }
  0xe4   : > { %648 = vmatpush1.bf16.msra.mxu0 %v397_v52 }
  0xe6   : > { %v4315_v53 = vpop.permute.xlu0 %386  ;;  %v383_v54 = vpop.permute.xlu1 %382 }
  0xe7   : > { %v396_v55 = vsel %vm394_vm2, %v385_v51, %v4315_v53  ;;  %v395_v56 = vsel %vm394_vm2, %v383_v54, %v385_v51  ;;  %v4380_v54 = vld [vmem:[#allocation5 + $0x38] ss:$12 sps:$4 sm:$0xff]  }
  0xe8   : > { %649 = vmatprep.subr.bf16.mxu0 %v396_v55 }
  0xe9   : > { %650 = vmatpush1.bf16.msra.mxu0 %v395_v56 }
  0xea   : > { %v529_v57 = vpop.permute.xlu0 %528  ;;  %651 = vmatprep.subr.bf16.mxu0 %v4124_v0  ;;  %v4321_v58 = vpop.permute.xlu1 %530 }
  0xeb   : > { %v536_v61 = vsel %vm532_vm3, %v529_v57, %v4321_v58 }
  0xed   : > { %652 = vmatpush1.bf16.msra.mxu0 %v4127_v1 }
  0xee   : > { %v527_v59 = vpop.permute.xlu0 %526  ;;  %653 = vmatprep.subr.bf16.mxu0 %v4137_v3  ;;  %v523_v60 = vpop.permute.xlu1 %522 }
  0xef   : > { %v535_v0 = vsel %vm532_vm3, %v527_v59, %v529_v57 }
  0xf1   : > { %654 = vmatpush1.bf16.msra.mxu0 %v4143_v5 }
  0xf2   : > { %v4328_v62 = vpop.permute.xlu0 %524  ;;  %655 = vmatprep.subr.bf16.mxu0 %v536_v61  ;;  %v552_v63 = vpop.permute.xlu1 %551 }
  0xf3   : > { %v534_v1 = vsel %vm532_vm3, %v523_v60, %v4328_v62 }
  0xf5   : > { %656 = vmatpush2.bf16.msra.mxu0 %v535_v0  ;;  %v4395_v0 = vld [vmem:[#allocation5 + $0x50] ss:$12 sps:$4 sm:$0xff]  }
  0xf6   : > { %v4333_v8 = vpop.permute.xlu0 %553  ;;  %657 = vmatprep.subr.bf16.mxu0 %v534_v1  ;;  %v521_v3 = vpop.permute.xlu1 %520 }
  0xf7   : > { %v559_v5 = vsel %vm555_vm4, %v552_v63, %v4333_v8  ;;  %v533_v9 = vsel %vm532_vm3, %v521_v3, %v523_v60  ;;  %v3719_v3 = vld [vmem:[#allocation5 + $0x34] ss:$12 sps:$4 sm:$0xff]  }
  0xf8   : > { %724 = vmatprep.subr.bf16.mxu1 %v559_v5 }
  0xf9   : > { %658 = vmatpush2.bf16.msra.mxu0 %v533_v9 }
  0xfa   : > { %v550_v10 = vpop.permute.xlu0 %549  ;;  %v506_v11 = vpop.permute.xlu1 %505 }
  0xfb   : > { %v558_v12 = vsel %vm555_vm4, %v550_v10, %v552_v63 }
  0xfc   : > { %725 = vmatpush1.bf16.msra.mxu1 %v558_v12  ;;  %v4411_v12 = vld [vmem:[#allocation5 + $0x1c] ss:$12 sps:$4 sm:$0xff]  }
  0xfe   : > { %v4339_v13 = vpop.permute.xlu0 %507  ;;  %v546_v15 = vpop.permute.xlu1 %545 }
  0xff   : > { %v513_v16 = vsel %vm509_vm5, %v506_v11, %v4339_v13 }
 0x100   : > { %659 = vmatprep.subr.bf16.mxu0 %v513_v16  ;;  %v3723_v16 = vld [vmem:[#allocation5 + $0x4c] ss:$12 sps:$4 sm:$0xff]  }
 0x102   : > { %v4343_v17 = vpop.permute.xlu0 %547  ;;  %v504_v19 = vpop.permute.xlu1 %503 }
 0x103   : > { %v557_v20 = vsel %vm555_vm4, %v546_v15, %v4343_v17  ;;  %v512_v21 = vsel %vm509_vm5, %v504_v19, %v506_v11  ;;  %v4407_v11 = vld [vmem:[#allocation5] ss:$12 sps:$4 sm:$0xff]  }
 0x104   : > { %726 = vmatprep.subr.bf16.mxu1 %v557_v20  ;;  %660 = vmatpush2.bf16.msra.mxu0 %v512_v21  ;;  %v1467_v19 = vld [vmem:[%s4269_s20] sm:$0x77]  ;;  %s6534_s20 = smov 120  }
 0x105   : > { %v1482_v20 = vrot.slane %v1467_v19, %v4272_v28  ;;  %v1520_v21 = vrot.slane %v1467_v19, %v1519_v34 }
 0x106   : > { %v544_v22 = vpop.permute.xlu0 %543  ;;  %v500_v23 = vpop.permute.xlu1 %499 }
 0x107   : > { %v556_v26 = vsel %vm555_vm4, %v544_v22, %v546_v15  ;;  %v3717_v15 = vld [vmem:[#allocation5 + $0x30] ss:$12 sps:$4 sm:$0xff]  }
 0x108   : > { %727 = vmatpush1.bf16.msra.mxu1 %v556_v26 }
 0x109   : > { %3585 = vmatprep.subr.bf16.mxu1 %v4321_v58 }
 0x10a   : > { %v4352_v30 = vpop.permute.xlu0 %501  ;;  %v498_v31 = vpop.permute.xlu1 %497 }
 0x10b   : > { %3398 = vmatmul.mubr.msk.bf16.vlgmr.msra.gmra.mxu1 %vm626_vm6, %v4349_v27  ;;  %v511_v35 = vsel %vm509_vm5, %v500_v23, %v4352_v30  ;;  %v510_v36 = vsel %vm509_vm5, %v498_v31, %v500_v23  ;;  %v4435_v23 = vsub.s32 2, %v4260_v24  ;;  %v1530_v31 = vrot.slane %v1520_v21, %v4280_v33 }
 0x10c   : > { %3593 = vmatpush3.bf16.msra.mxu1 %v4249_v14  ;;  %661 = vmatprep.subr.bf16.mxu0 %v511_v35 }
 0x10d   : > { %3586 = vmatprep.subr.bf16.mxu1 %v4328_v62  ;;  %662 = vmatpush2.bf16.msra.mxu0 %v510_v36 }
 0x10e   : > { %v483_v37 = vpop.permute.xlu0 %482  ;;  %754 = vmatprep.mubr.bf16.mxu1 %v6538_v6  ;;  %v4362_v38 = vpop.permute.xlu1 %484 }
 0x10f   : > { %v490_v43 = vsel %vm486_vm7, %v483_v37, %v4362_v38 }
 0x110   : > { %3594 = vmatpush3.bf16.msra.mxu1 %v4254_v18  ;;  %663 = vmatprep.subr.bf16.mxu0 %v490_v43 }
 0x111   : > { %3587 = vmatprep.subr.bf16.mxu1 %v4339_v13 }
 0x112   : > { %v481_v45 = vpop.permute.xlu0 %480  ;;  %v477_v47 = vpop.permute.xlu1 %476 }
 0x113   : > { %3399 = vmatmul.mubr.msk.bf16.gmra.mxu1 %vm626_vm6, %v4364_v42  ;;  %v489_v49 = vsel %vm486_vm7, %v481_v45, %v483_v37 }
 0x114   : > { %664 = vmatpush2.bf16.msra.mxu0 %v489_v49  ;;  %3595 = vmatpush3.bf16.msra.mxu1 %v4262_v25 }
 0x115   : > { %3588 = vmatprep.subr.bf16.mxu1 %v4352_v30  ;;  %764 = vmatprep.mubr.bf16.mxu1 %v6538_v6 }
 0x116   : > { %v4376_v50 = vpop.permute.xlu0 %478  ;;  %v475_v51 = vpop.permute.xlu1 %474 }
 0x117   : > { %v488_v52 = vsel %vm486_vm7, %v477_v47, %v4376_v50  ;;  %v487_v55 = vsel %vm486_vm7, %v475_v51, %v477_v47 }
 0x118   : > { %3596 = vmatpush3.bf16.msra.mxu1 %v4293_v39  ;;  %665 = vmatprep.subr.bf16.mxu0 %v488_v52 }
 0x119   : > { %3589 = vmatprep.subr.bf16.mxu1 %v4362_v38  ;;  %666 = vmatpush2.bf16.msra.mxu0 %v487_v55 }
 0x11a   : > { %v460_v56 = vpop.permute.xlu0 %459  ;;  %v4385_v57 = vpop.permute.xlu1 %461 }
 0x11b   : > { %3400 = vmatmul.mubr.msk.bf16.gmra.mxu1 %vm626_vm6, %v4380_v54  ;;  %v467_v59 = vsel %vm463_vm8, %v460_v56, %v4385_v57 }
 0x11c   : > { %3597 = vmatpush3.bf16.msra.mxu1 %v4310_v48  ;;  %774 = vmatprep.mubr.bf16.mxu1 %v6538_v6 }
 0x11d   : > { %3590 = vmatprep.subr.bf16.mxu1 %v4376_v50  ;;  %667 = vmatprep.subr.bf16.mxu0 %v467_v59 }
 0x11e   : > { %v458_v60 = vpop.permute.xlu0 %457  ;;  %v454_v61 = vpop.permute.xlu1 %453 }
 0x11f   : > { %v466_v63 = vsel %vm463_vm8, %v458_v60, %v460_v56 }
 0x120   : > { %668 = vmatpush2.bf16.msra.mxu0 %v466_v63  ;;  %3598 = vmatpush3.bf16.msra.mxu1 %v4315_v53 }
 0x121   : > { %3591 = vmatprep.subr.bf16.mxu1 %v4385_v57 }
 0x122   : > { %v4399_v1 = vpop.permute.xlu0 %455  ;;  %v452_v5 = vpop.permute.xlu1 %451 }
 0x123   : > { %3401 = vmatmul.mubr.msk.bf16.gmra.mxu1 %vm626_vm6, %v4395_v0  ;;  %v465_v9 = vsel %vm463_vm8, %v454_v61, %v4399_v1  ;;  %v464_v10 = vsel %vm463_vm8, %v452_v5, %v454_v61 }
 0x124   : > { %669 = vmatprep.subr.bf16.mxu0 %v465_v9  ;;  %3599 = vmatpush3.bf16.msra.mxu1 %v4132_v2 }
 0x125   : > { %670 = vmatpush2.bf16.msra.mxu0 %v464_v10  ;;  %3592 = vmatprep.subr.bf16.mxu1 %v4399_v1 }
 0x126   : > { %3469 = vmatprep.subr.bf16.mxu0 %v4321_v58  ;;  %833 = vmatprep.mubr.bf16.mxu1 %v3719_v3  ;;  %v4421_v58 = vld [vmem:[#allocation5 + $0x18] ss:$12 sps:$4 sm:$0xff]  }
 0x128   : > { %672 = vmatmul.mubr.bf16.vlgmr.msra.gmra.mxu0 %v4407_v11  ;;  %3600 = vmatpush3.bf16.msra.mxu1 %v4140_v4 }
 0x129   : > { %3470 = vmatpush3.bf16.msra.mxu0 %v4249_v14  ;;  %3561 = vmatprep.subr.bf16.mxu1 %v4333_v8  ;;  %v1486_v14 = vrot.slane %v1467_v19, %v1485_v29 }
 0x12a   : > { %3471 = vmatprep.subr.bf16.mxu0 %v4328_v62  ;;  %681 = vmatprep.mubr.bf16.mxu0 %v4411_v12  ;;  %v1516_v62 = vrot.slane %v1467_v19, %v4280_v33 }
 0x12b   : > { %834 = vmatmul.mubr.bf16.vlgmr.msra.gmra.mxu1 %v3717_v15  ;;  %v1496_v34 = vrot.slane %v1486_v14, %v4272_v28  ;;  %v2971_v14 = vrot.slane %v4277_v32, %v4435_v23 }
 0x12c   : > { %3562 = vmatpush3.bf16.msra.mxu1 %v4333_v8  ;;  %841 = vmatprep.mubr.bf16.mxu1 %v3723_v16  ;;  %v3725_v8 = vld [vmem:[#allocation5 + $0x48] ss:$12 sps:$4 sm:$0xff]   ;;  %v1526_v26 = vrot.slane %v1516_v62, %v4280_v33 }
 0x12d   : > { %3472 = vmatpush3.bf16.msra.mxu0 %v4254_v18  ;;  %3563 = vmatprep.subr.bf16.mxu1 %v4343_v17  ;;  %v1553_v18 = vsub.s32 6, %v4260_v24  ;;  %v2981_v62 = vrot.slane %v2971_v14, %v4435_v23 }
 0x12e   : > { %3473 = vmatprep.subr.bf16.mxu0 %v4339_v13  ;;  %v1492_v13 = vrot.slane %v1482_v20, %v4272_v28 }
 0x12f   : > { %v4432_v22 = vpop.permute.xlu0 %1470  ;;  %v4440_v29 = vpop.permute.xlu1 %1475 }
 0x130   : > { %682 = vmatmul.mubr.bf16.gmra.mxu0 %v4421_v58  ;;  %3564 = vmatpush3.bf16.msra.mxu1 %v4343_v17  ;;  %v2936_v35 = vmul.f32 %v4296_v40, %v4440_v29  ;;  %v1550_v17 = vrot.slane %v1467_v19, %v4435_v23  ;;  %v2934_v28 = vmul.f32 %v4296_v40, %v4432_v22 }
 0x131   : > { %3474 = vmatpush3.bf16.msra.mxu0 %v4262_v25  ;;  %691 = vmatprep.mubr.bf16.mxu0 %v3719_v3  ;;  %v1554_v25 = vrot.slane %v1467_v19, %v1553_v18  ;;  %v1497_v36 = vmul.f32 %v1492_v13, %v4432_v22  ;;  %v1498_v37 = vmul.f32 %v1496_v34, %v4432_v22 }
 0x132   : > { %3475 = vmatprep.subr.bf16.mxu0 %v4352_v30  ;;  %v1499_v51 = vmul.f32 %v1492_v13, %v4440_v29  ;;  %v1500_v52 = vmul.f32 %v1496_v34, %v4440_v29  ;;  %v2937_v21 = vmul.f32 %v4299_v41, %v4440_v29  ;;  %v2935_v13 = vmul.f32 %v4299_v41, %v4432_v22 }
 0x133   : > { %842 = vmatmul.mubr.bf16.gmra.mxu1 %v3725_v8  ;;  %v1564_v49 = vrot.slane %v1554_v25, %v4435_v23 }
 0x134   : > { %3565 = vmatprep.mubr.msk.bf16.mxu1 %vm626_vm6, %v4349_v27  ;;  %v4457_v30 = vpop.permute.xlu0 %1510  ;;  %v4460_v33 = vpop.permute.xlu1 %1506 }
 0x135   : > { %3476 = vmatpush3.bf16.msra.mxu0 %v4293_v39  ;;  %v2962_v43 = vmul.f32 %v4304_v44, %v4457_v30  ;;  %v1531_v27 = vmul.f32 %v1526_v26, %v4460_v33  ;;  %v1532_v45 = vmul.f32 %v1530_v31, %v4460_v33  ;;  %v2960_v40 = vmul.f32 %v4304_v44, %v4460_v33 }
 0x136   : > { %3477 = vmatprep.subr.bf16.mxu0 %v4362_v38  ;;  %v1560_v39 = vrot.slane %v1550_v17, %v4435_v23  ;;  %v1533_v38 = vmul.f32 %v1526_v26, %v4457_v30  ;;  %v1534_v44 = vmul.f32 %v1530_v31, %v4457_v30  ;;  %v2963_v34 = vmul.f32 %v4308_v46, %v4457_v30 }
 0x137   : > { %v4472_v47 = vadd.f32 %v2962_v43, %v2936_v35  ;;  %v4477_v55 = vadd.f32 %v2960_v40, %v2934_v28  ;;  %v1535_v56 = vadd.f32 %v1531_v27, %v1497_v36  ;;  %v1536_v59 = vadd.f32 %v1532_v45, %v1498_v37 }
 0x138   : > { %692 = vmatmul.mubr.bf16.gmra.mxu0 %v3717_v15  ;;  %v1538_v3 = vadd.f32 %v1534_v44, %v1500_v52  ;;  %v2975_v26 = vrot.slane %v4277_v32, %v1553_v18  ;;  %v2967_v25 = vadd.f32 %v2963_v34, %v2937_v21 }
 0x139   : > { %3478 = vmatpush3.bf16.msra.mxu0 %v4310_v48  ;;  %701 = vmatprep.mubr.bf16.mxu0 %v3723_v16  ;;  %v4483_v60 = vpop.permute.xlu1 %1540  ;;  %v1537_v48 = vadd.f32 %v1533_v38, %v1499_v51 }
 0x13a   : > { %3479 = vmatprep.subr.bf16.mxu0 %v4376_v50  ;;  %v1565_v61 = vmul.f32 %v1560_v39, %v4483_v60  ;;  %v1566_v63 = vmul.f32 %v1564_v49, %v4483_v60  ;;  %v2986_v31 = vmul.f32 %v2981_v62, %v4483_v60  ;;  %v2985_v17 = vrot.slane %v2975_v26, %v4435_v23 }
 0x13b   : > { %3566 = vmatmul.mubr.msk.bf16.vlgmr.msra.gmra.mxu1 %vm626_vm6, %v4364_v42 }
 0x13c   : > { %3569 = vmatprep.mubr.msk.bf16.mxu1 %vm626_vm6, %v4380_v54  ;;  %v1570_v5 = vadd.f32 %v1566_v63, %v1536_v59  ;;  %v1569_v9 = vadd.f32 %v1565_v61, %v1535_v56  ;;  %v2987_v28 = vmul.f32 %v2985_v17, %v4483_v60  ;;  %v2990_v24 = vadd.f32 %v2986_v31, %v4477_v55 }
 0x13d   : > { %3480 = vmatpush3.bf16.msra.mxu0 %v4315_v53  ;;  %v4493_v50 = vpop.permute.xlu1 %1544 }
 0x13e   : > { %3481 = vmatprep.subr.bf16.mxu0 %v4385_v57  ;;  %v1567_v10 = vmul.f32 %v1560_v39, %v4493_v50  ;;  %v1568_v42 = vmul.f32 %v1564_v49, %v4493_v50  ;;  %v1574_v15 = vmax.f32 %v1570_v5, 0.0  ;;  %v1573_v16 = vmax.f32 %v1569_v9, 0.0 }
 0x13f   : > { %v2988_v35 = vmul.f32 %v2981_v62, %v4493_v50  ;;  %v2994_v37 = vmax.f32 %v2990_v24, 0.0 }
 0x140   : > { %702 = vmatmul.mubr.bf16.gmra.mxu0 %v3725_v8  ;;  %v1572_v54 = vadd.f32 %v1568_v42, %v1538_v3  ;;  %v1571_v53 = vadd.f32 %v1567_v10, %v1537_v48  ;;  %v2961_v8 = vmul.f32 %v4308_v46, %v4460_v33  ;;  %v2989_v33 = vmul.f32 %v2985_v17, %v4493_v50 }
 0x141   : > { %3482 = vmatpush3.bf16.msra.mxu0 %v4132_v2  ;;  %817 = vmatprep.mubr.bf16.mxu0 %v4228_v7  ;;  %v2992_v32 = vadd.f32 %v2988_v35, %v4472_v47 }
 0x142   : > { %3483 = vmatprep.subr.bf16.mxu0 %v4399_v1  ;;  %v1576_v57 = vmax.f32 %v1572_v54, 0.0  ;;  %v1575_v19 = vmax.f32 %v1571_v53, 0.0  ;;  %v3726_v1 = vld [vmem:[%s6502_s4] sm:$0xff]   ;;  %v2965_v29 = vadd.f32 %v2961_v8, %v2935_v13  ;;  %v2993_v46 = vadd.f32 %v2989_v33, %v2967_v25 }
 0x143   : > { %3570 = vmatmul.mubr.msk.bf16.gmra.mxu1 %vm626_vm6, %v4395_v0  ;;  %v4519_v0 = vld [vmem:[%s4113_s19 + $0x50] ss:$12 sps:$4 sm:$0xff]   ;;  %v2996_v23 = vmax.f32 %v2992_v32, 0.0 }
 0x144   : > { %1619 = vmatprep.mubr.bf16.mxu1 %v6538_v6  ;;  %v1578_v2 = vpack.c.bf16 %v1576_v57, %v1574_v15  ;;  %v1577_v20 = vpack.c.bf16 %v1575_v19, %v1573_v16  ;;  %1971 = vrot.lane.b32.xlu1 %v4519_v0, %s6554_s29  ;;  %v2991_v22 = vadd.f32 %v2987_v28, %v2965_v29  ;;  %v2997_v36 = vmax.f32 %v2993_v46, 0.0 }
 0x145   : > { %3484 = vmatpush3.bf16.msra.mxu0 %v4140_v4  ;;  %v4514_v4 = vld [vmem:[%s4113_s19 + $0x4c] ss:$12 sps:$4 sm:$0xff]   ;;  %v4594_v45 = vpack.c.bf16 %v2996_v23, %v2994_v37 }
 0x146   : > { %1601 = vmatprep.subr.bf16.mxu1 %v1578_v2  ;;  %1969 = vrot.lane.b32.xlu0 %v4514_v4, %s6554_s29  ;;  %v2995_v30 = vmax.f32 %v2991_v22, 0.0 }
 0x147   : > { %1602 = vmatpush1.bf16.msra.mxu1 %v1577_v20  ;;  %6589 = vst [vmem:[#allocation12_spill] sm:$0xff] %v4594_v45 }
 0x148   : > { %818 = vmatmul.mubr.bf16.vlgmr.msra.gmra.mxu0 %v4407_v11  ;;  %v4524_v11 = vld [vmem:[%s4113_s19 + $0x48] ss:$12 sps:$4 sm:$0xff]   ;;  %v4592_v27 = vpack.c.bf16 %v2997_v36, %v2995_v30 }
 0x149   : > { %825 = vmatprep.mubr.bf16.mxu0 %v4411_v12  ;;  %v4534_v12 = vld [vmem:[%s4113_s19 + $0x38] ss:$12 sps:$4 sm:$0xff]  }
 0x14a   : > { %1967 = vrot.lane.b32.xlu0 %v4524_v11, %s6554_s29  ;;  %6588 = vst [vmem:[#allocation11_spill] sm:$0xff] %v4592_v27 }
 0x14b   : > { %3407 = vmatmul.mubr.msk.bf16.vlgmr.msra.gmra.mxu1 %vm1349_vm9, %v3726_v1 }
 0x14c   : > { %2125 = vmatprep.mubr.bf16.mxu1 %v4228_v7  ;;  %v4529_v7 = vld [vmem:[%s4113_s19 + $0x34] ss:$12 sps:$4 sm:$0xff]  }
 0x14d   : > { %1963 = vrot.lane.b32.xlu1 %v4529_v7, %s6554_s29 }
 0x14e   : > { %1965 = vrot.lane.b32.xlu0 %v4534_v12, %s6554_s29 }
 0x150   : > { %826 = vmatmul.mubr.bf16.gmra.mxu0 %v4421_v58  ;;  %v4537_v58 = vld [vmem:[%s4113_s19 + $0x30] ss:$12 sps:$4 sm:$0xff]  }
 0x151   : > { %1755 = vmatprep.mubr.bf16.mxu0 %v6538_v6  ;;  %1961 = vrot.lane.b32.xlu1 %v4537_v58, %s6554_s29 }
 0x152   : > { %1947 = vrot.lane.b32.xlu0 %v4514_v4, %s6532_s27 }
 0x155   : > { %1949 = vrot.lane.b32.xlu1 %v4519_v0, %s6532_s27 }
 0x156   : > { %1945 = vrot.lane.b32.xlu0 %v4524_v11, %s6532_s27 }
 0x159   : > { %1941 = vrot.lane.b32.xlu1 %v4529_v7, %s6532_s27 }
 0x15a   : > { %1943 = vrot.lane.b32.xlu0 %v4534_v12, %s6532_s27 }
 0x15d   : > { %1939 = vrot.lane.b32.xlu1 %v4537_v58, %s6532_s27 }
 0x15e   : > { %1925 = vrot.lane.b32.xlu0 %v4514_v4, %s6517_s30 }
 0x161   : > { %1927 = vrot.lane.b32.xlu1 %v4519_v0, %s6517_s30 }
 0x162   : > { %1923 = vrot.lane.b32.xlu0 %v4524_v11, %s6517_s30 }
 0x165   : > { %1919 = vrot.lane.b32.xlu1 %v4529_v7, %s6517_s30 }
 0x166   : > { %1921 = vrot.lane.b32.xlu0 %v4534_v12, %s6517_s30  ;;  %s6522_s30 = smov 112  }
 0x1b6   : > { %v4602_v47 = vpop.permute.xlu1 %1971 }
 0x1b7   : > { %6590 = vst [vmem:[#allocation13_spill] sm:$0xff] %v4602_v47 }
 0x1b8   : > { %v1970_v49 = vpop.permute.xlu0 %1969 }
 0x1b9   : > { %v1976_v52 = vsel %vm440_vm0, %v1970_v49, %v4602_v47 }
 0x1ba   : > { %2093 = vmatprep.subr.bf16.mxu1 %v1976_v52 }
 0x1bc   : > { %v1968_v38 = vpop.permute.xlu0 %1967 }
 0x1bd   : > { %v1975_v56 = vsel %vm440_vm0, %v1968_v38, %v1970_v49 }
 0x1be   : > { %2094 = vmatpush1.bf16.msra.mxu1 %v1975_v56 }
 0x1bf   : > { %v1964_v59 = vpop.permute.xlu1 %1963 }
 0x1c0   : > { %v4613_v61 = vpop.permute.xlu0 %1965 }
 0x1c1   : > { %6591 = vst [vmem:[#allocation14_spill] sm:$0xff] %v4613_v61  ;;  %v1974_v3 = vsel %vm440_vm0, %v1964_v59, %v4613_v61 }
 0x1c2   : > { %2095 = vmatprep.subr.bf16.mxu1 %v1974_v3 }
 0x1c3   : > { %v1962_v48 = vpop.permute.xlu1 %1961 }
 0x1c4   : > { %v1973_v5 = vsel %vm440_vm0, %v1962_v48, %v1964_v59  ;;  %v1948_v50 = vpop.permute.xlu0 %1947  ;;  %vm1308_vm0 = vcmask 818176  }
 0x1c5   : > { %2096 = vmatpush1.bf16.msra.mxu1 %v1973_v5 }
 0x1c7   : > { %v4624_v42 = vpop.permute.xlu1 %1949 }
 0x1c8   : > { %6592 = vst [vmem:[#allocation15_spill] sm:$0xff] %v4624_v42  ;;  %v1954_v54 = vsel %vm417_vm1, %v1948_v50, %v4624_v42  ;;  %v1946_v53 = vpop.permute.xlu0 %1945 }
 0x1c9   : > { %2097 = vmatprep.subr.bf16.mxu1 %v1954_v54  ;;  %v1953_v57 = vsel %vm417_vm1, %v1946_v53, %v1948_v50 }
 0x1ca   : > { %2098 = vmatpush1.bf16.msra.mxu1 %v1953_v57 }
 0x1cb   : > { %v4584_v41 = vpop.f32.mrf.mxu1  ;;  %v1942_v19 = vpop.permute.xlu1 %1941 }
 0x1cc   : > { %v4635_v20 = vpop.permute.xlu0 %1943 }
 0x1cd   : > { %v4588_v18 = vpop.f32.mrf.mxu1  ;;  %6593 = vst [vmem:[#allocation16_spill] sm:$0xff] %v4635_v20  ;;  %v1952_v62 = vsel %vm417_vm1, %v1942_v19, %v4635_v20 }
 0x1ce   : > { %2099 = vmatprep.subr.bf16.mxu1 %v1952_v62 }
 0x1cf   : > { %v4590_v43 = vpop.f32.mrf.mxu1  ;;  %v1940_v14 = vpop.permute.xlu1 %1939 }
 0x1d0   : > { %v1951_v21 = vsel %vm417_vm1, %v1940_v14, %v1942_v19  ;;  %v1926_v13 = vpop.permute.xlu0 %1925 }
 0x1d1   : > { %v4596_v40 = vpop.f32.mrf.mxu1  ;;  %2100 = vmatpush1.bf16.msra.mxu1 %v1951_v21 }
 0x1d3   : > { %v4598_v39 = vpop.f32.mrf.mxu1  ;;  %v4642_v26 = vpop.permute.xlu1 %1927 }
 0x1d4   : > { %6594 = vst [vmem:[#allocation17_spill] sm:$0xff] %v4642_v26  ;;  %v1932_v31 = vsel %vm394_vm2, %v1926_v13, %v4642_v26  ;;  %v1924_v17 = vpop.permute.xlu0 %1923 }
 0x1d5   : > { %v4600_v51 = vpop.f32.mrf.mxu1  ;;  %2101 = vmatprep.subr.bf16.mxu1 %v1932_v31  ;;  %v1931_v25 = vsel %vm394_vm2, %v1924_v17, %v1926_v13 }
 0x1d6   : > { %2102 = vmatpush1.bf16.msra.mxu1 %v1931_v25 }
 0x1d7   : > { %v4606_v55 = vpop.f32.mrf.mxu1  ;;  %v4649_v33 = vpop.permute.xlu1 %1919 }
 0x1d8   : > { %6595 = vst [vmem:[#allocation18_spill] sm:$0xff] %v4649_v33  ;;  %v4651_v46 = vpop.permute.xlu0 %1921 }
 0x1d9   : > { %v4609_v44 = vpop.f32.mrf.mxu1  ;;  %6596 = vst [vmem:[#allocation19_spill] sm:$0xff] %v4651_v46  ;;  %v1930_v32 = vsel %vm394_vm2, %v4649_v33, %v4651_v46 }
 0x1da   : > { %2103 = vmatprep.subr.bf16.mxu1 %v1930_v32 }
 0x1db   : > { %v4611_v60 = vpop.f32.mrf.mxu1 }
 0x1dd   : > { %v4615_v63 = vpop.f32.mrf.mxu1 }
 0x1df   : > { %v4620_v9 = vpop.f32.mrf.mxu1 }
 0x1e1   : > { %v4622_v10 = vpop.f32.mrf.mxu1 }
 0x1e3   : > { %v4628_v15 = vpop.f32.mrf.mxu1 }
 0x1e5   : > { %v4630_v16 = vpop.f32.mrf.mxu1 }
 0x1e7   : > { %v4633_v2 = vpop.f32.mrf.mxu1 }
 0x1e8   : > { %v673_v48 = vpop.f32.mrf.mxu0 }
 0x1e9   : > { %v4637_v1 = vpop.f32.mrf.mxu1  ;;  %v4667_v3 = vadd.f32 %v4584_v41, %v673_v48 }
 0x1ea   : > { %v675_v54 = vpop.f32.mrf.mxu0 }
 0x1eb   : > { %v3497_v8 = vpop.f32.mrf.mxu1  ;;  %v749_v53 = vadd.f32 %v4588_v18, %v675_v54 }
 0x1ec   : > { %v677_v18 = vpop.f32.mrf.mxu0 }
 0x1ed   : > { %v3498_v34 = vpop.f32.mrf.mxu1  ;;  %v4696_v62 = vadd.f32 %v4590_v43, %v677_v18 }
 0x1ee   : > { %v3499_v50 = vadd.f32 %v3498_v34, %v3497_v8  ;;  %v679_v21 = vpop.f32.mrf.mxu0 }
 0x1ef   : > { %v3500_v35 = vpop.f32.mrf.mxu1  ;;  %v753_v8 = vadd.f32 %v4596_v40, %v679_v21 }
 0x1f0   : > { %v683_v34 = vpop.f32.mrf.mxu0 }
 0x1f1   : > { %v3501_v29 = vpop.f32.mrf.mxu1  ;;  %v4720_v31 = vadd.f32 %v4598_v39, %v683_v34 }
 0x1f2   : > { %v4647_v28 = vadd.f32 %v3501_v29, %v3500_v35  ;;  %v685_v40 = vpop.f32.mrf.mxu0 }
 0x1f3   : > { %v3503_v22 = vpop.f32.mrf.mxu1  ;;  %v759_v39 = vadd.f32 %v4600_v51, %v685_v40 }
 0x1f4   : > { %v687_v35 = vpop.f32.mrf.mxu0 }
 0x1f5   : > { %v3504_v24 = vpop.f32.mrf.mxu1  ;;  %v4745_v17 = vadd.f32 %v4606_v55, %v687_v35 }
 0x1f6   : > { %v3505_v38 = vadd.f32 %v3504_v24, %v3503_v22  ;;  %v689_v51 = vpop.f32.mrf.mxu0 }
 0x1f7   : > { %v3506_v30 = vpop.f32.mrf.mxu1  ;;  %6601 = vst [vmem:[#allocation20_spill] sm:$0xff] %v4745_v17  ;;  %v763_v55 = vadd.f32 %v4609_v44, %v689_v51 }
 0x1f8   : > { %v693_v32 = vpop.f32.mrf.mxu0 }
 0x1f9   : > { %v3507_v36 = vpop.f32.mrf.mxu1 }
 0x1fa   : > { %v3508_v19 = vadd.f32 %v3507_v36, %v3506_v30  ;;  %v4786_v30 = vadd.f32 %v4611_v60, %v693_v32 }
 0x1fb   : > { %v4656_v37 = vpop.f32.mrf.mxu1 }
 0x1fd   : > { %v4658_v23 = vpop.f32.mrf.mxu1 }
 0x1ff   : > { %v4660_v49 = vpop.f32.mrf.mxu1 }
 0x201   : > { %v4662_v52 = vpop.f32.mrf.mxu1 }
 0x203   : > { %v3571_v56 = vpop.f32.mrf.mxu1 }
 0x204   : > { %v909_v59 = vadd.f32 %v3571_v56, %v3505_v38 }
 0x205   : > { %v900_v5 = vpop.f32.mrf.mxu1 }
 0x206   : > { %1337 = vrot.lane.b32.xlu0 %v909_v59, %s6528_s14  ;;  %1302 = vrot.lane.b32.xlu1 %v909_v59, %s6536_s16  ;;  %v901_v41 = vadd.f32 %v3499_v50, %v900_v5 }
 0x207   : > { %v3572_v57 = vpop.f32.mrf.mxu1 }
 0x208   : > { %v912_v14 = vadd.f32 %v3572_v57, %v3508_v19 }
 0x209   : > { %v903_v43 = vpop.f32.mrf.mxu1 }
 0x20a   : > { %995 = vrot.lane.b32.xlu1 %v4667_v3, %s6534_s20  ;;  %923 = vrot.lane.b32.xlu0 %v4667_v3, %s6532_s27  ;;  %v904_v13 = vadd.f32 %v4647_v28, %v903_v43 }
 0x20e   : > { %1019 = vrot.lane.b32.xlu1 %v4667_v3, %s6526_s8  ;;  %947 = vrot.lane.b32.xlu0 %v4667_v3, %s6552_s13 }
 0x212   : > { %1043 = vrot.lane.b32.xlu1 %v4667_v3, %s6520_s10  ;;  %971 = vrot.lane.b32.xlu0 %v4667_v3, %s6541_s15  ;;  %s6549_s10 = smov 106  }
 0x216   : > { %1075 = vrot.lane.b32.xlu1 %v4667_v3, %s6556_s12  ;;  %1333 = vrot.lane.b32.xlu0 %v901_v41, %s6528_s14 }
 0x21a   : > { %1294 = vrot.lane.b32.xlu1 %v901_v41, %s6536_s16  ;;  %1124 = vrot.lane.b32.xlu0 %v749_v53, %s6522_s30  ;;  %s6524_s30 = smov 104   ;;  %v695_v41 = vpop.f32.mrf.mxu0 }
 0x21b   : > { %v769_v54 = vadd.f32 %v4615_v63, %v695_v41 }
 0x21c   : > { %v697_v19 = vpop.f32.mrf.mxu0 }
 0x21e   : > { %1244 = vrot.lane.b32.xlu1 %v749_v53, %s6530_s11  ;;  %1148 = vrot.lane.b32.xlu0 %v749_v53, %s6554_s29 }
 0x222   : > { %1276 = vrot.lane.b32.xlu1 %v749_v53, %s6536_s16  ;;  %1172 = vrot.lane.b32.xlu0 %v749_v53, %s6558_s26 }
 0x226   : > { %1306 = vrot.lane.b32.xlu1 %v912_v14, %s6536_s16  ;;  %1196 = vrot.lane.b32.xlu0 %v749_v53, %s6549_s10 }
 0x22a   : > { %1339 = vrot.lane.b32.xlu1 %v912_v14, %s6528_s14  ;;  %1220 = vrot.lane.b32.xlu0 %v749_v53, %s6524_s30  ;;  %s6597_s30 = smov 116   ;;  %v4825_v14 = vadd.f32 %v4620_v9, %v697_v19 }
 0x22e   : > { %1077 = vrot.lane.b32.xlu0 %v749_v53, %s6556_s12  ;;  %925 = vrot.lane.b32.xlu1 %v4696_v62, %s6532_s27 }
 0x232   : > { %997 = vrot.lane.b32.xlu0 %v4696_v62, %s6534_s20  ;;  %949 = vrot.lane.b32.xlu1 %v4696_v62, %s6552_s13 }
 0x236   : > { %1021 = vrot.lane.b32.xlu0 %v4696_v62, %s6526_s8  ;;  %973 = vrot.lane.b32.xlu1 %v4696_v62, %s6541_s15  ;;  %s6598_s8 = smov 112  }
 0x23a   : > { %1045 = vrot.lane.b32.xlu0 %v4696_v62, %s6597_s30  ;;  %1079 = vrot.lane.b32.xlu1 %v4696_v62, %s6556_s12 }
 0x23e   : > { %1298 = vrot.lane.b32.xlu1 %v904_v13, %s6536_s16  ;;  %1246 = vrot.lane.b32.xlu0 %v753_v8, %s6530_s11  ;;  %s6600_s11 = smov 118  }
 0x242   : > { %1335 = vrot.lane.b32.xlu1 %v904_v13, %s6528_s14  ;;  %1081 = vrot.lane.b32.xlu0 %v753_v8, %s6556_s12  ;;  %s6599_s14 = smov 104  }
 0x246   : > { %1126 = vrot.lane.b32.xlu1 %v753_v8, %s6598_s8  ;;  %927 = vrot.lane.b32.xlu0 %v4720_v31, %s6532_s27 }
 0x24a   : > { %1150 = vrot.lane.b32.xlu1 %v753_v8, %s6554_s29  ;;  %951 = vrot.lane.b32.xlu0 %v4720_v31, %s6552_s13 }
 0x24e   : > { %1174 = vrot.lane.b32.xlu1 %v753_v8, %s6558_s26  ;;  %975 = vrot.lane.b32.xlu0 %v4720_v31, %s6541_s15 }
 0x252   : > { %1198 = vrot.lane.b32.xlu1 %v753_v8, %s6549_s10  ;;  %999 = vrot.lane.b32.xlu0 %v4720_v31, %s6534_s20 }
 0x256   : > { %1222 = vrot.lane.b32.xlu1 %v753_v8, %s6599_s14  ;;  %1023 = vrot.lane.b32.xlu0 %v4720_v31, %s6600_s11 }
 0x25a   : > { %1280 = vrot.lane.b32.xlu1 %v753_v8, %s6536_s16  ;;  %1047 = vrot.lane.b32.xlu0 %v4720_v31, %s6597_s30 }
 0x25e   : > { %1083 = vrot.lane.b32.xlu0 %v4720_v31, %s6556_s12  ;;  %1085 = vrot.lane.b32.xlu1 %v759_v39, %s6556_s12 }
 0x262   : > { %1128 = vrot.lane.b32.xlu0 %v759_v39, %s6598_s8  ;;  %929 = vrot.lane.b32.xlu1 %v4745_v17, %s6532_s27  ;;  %s6602_s27 = smov 102  }
 0x266   : > { %1152 = vrot.lane.b32.xlu0 %v759_v39, %s6554_s29  ;;  %953 = vrot.lane.b32.xlu1 %v4745_v17, %s6552_s13 }
 0x26a   : > { %1176 = vrot.lane.b32.xlu0 %v759_v39, %s6558_s26  ;;  %977 = vrot.lane.b32.xlu1 %v4745_v17, %s6541_s15 }
 0x26e   : > { %1200 = vrot.lane.b32.xlu0 %v759_v39, %s6549_s10  ;;  %1001 = vrot.lane.b32.xlu1 %v4745_v17, %s6534_s20  ;;  %s6606_s20 = smov 126  }
 0x272   : > { %1224 = vrot.lane.b32.xlu0 %v759_v39, %s6599_s14  ;;  %1025 = vrot.lane.b32.xlu1 %v4745_v17, %s6600_s11 }
 0x276   : > { %1248 = vrot.lane.b32.xlu0 %v759_v39, %s6602_s27  ;;  %1049 = vrot.lane.b32.xlu1 %v4745_v17, %s6597_s30 }
 0x278   : > { %v4766_v29 = vpop.permute.xlu0 %1337  ;;  %v4768_v25 = vpop.permute.xlu1 %1302 }
 0x279   : > { %6603 = vst [vmem:[#allocation21_spill] sm:$0xff] %v4766_v29  ;;  %6604 = vst [vmem:[#allocation22_spill] sm:$0xff] %v4768_v25 }
 0x27a   : > { %1284 = vrot.lane.b32.xlu0 %v759_v39, %s6536_s16  ;;  %1130 = vrot.lane.b32.xlu1 %v763_v55, %s6598_s8 }
 0x27c   : > { %v4772_v28 = vpop.permute.xlu1 %995  ;;  %v4774_v22 = vpop.permute.xlu0 %923 }
 0x27e   : > { %1087 = vrot.lane.b32.xlu0 %v4745_v17, %s6556_s12  ;;  %1154 = vrot.lane.b32.xlu1 %v763_v55, %s6554_s29 }
 0x280   : > { %v4779_v24 = vpop.permute.xlu1 %1019  ;;  %v4781_v44 = vpop.permute.xlu0 %947 }
 0x282   : > { %1288 = vrot.lane.b32.xlu0 %v763_v55, %s6536_s16  ;;  %1178 = vrot.lane.b32.xlu1 %v763_v55, %s6558_s26  ;;  %s6608_s16 = smov 120  }
 0x284   : > { %v4788_v36 = vpop.permute.xlu1 %1043  ;;  %v4790_v38 = vpop.permute.xlu0 %971 }
 0x285   : > { %6605 = vst [vmem:[#allocation23_spill] sm:$0xff] %v4788_v36 }
 0x286   : > { %1202 = vrot.lane.b32.xlu1 %v763_v55, %s6549_s10  ;;  %931 = vrot.lane.b32.xlu0 %v4786_v30, %s6606_s20 }
 0x288   : > { %v4795_v56 = vpop.permute.xlu1 %1075  ;;  %v4797_v59 = vpop.permute.xlu0 %1333 }
 0x289   : > { %6607 = vst [vmem:[#allocation24_spill] sm:$0xff] %v4797_v59 }
 0x28a   : > { %1226 = vrot.lane.b32.xlu1 %v763_v55, %s6599_s14  ;;  %955 = vrot.lane.b32.xlu0 %v4786_v30, %s6552_s13 }
 0x28c   : > { %v4802_v60 = vpop.permute.xlu1 %1294  ;;  %v4804_v48 = vpop.permute.xlu0 %1124 }
 0x28e   : > { %1250 = vrot.lane.b32.xlu1 %v763_v55, %s6602_s27  ;;  %979 = vrot.lane.b32.xlu0 %v4786_v30, %s6541_s15 }
 0x290   : > { %v4809_v5 = vpop.permute.xlu1 %1244  ;;  %v4811_v50 = vpop.permute.xlu0 %1148 }
 0x292   : > { %1089 = vrot.lane.b32.xlu1 %v763_v55, %s6556_s12  ;;  %1003 = vrot.lane.b32.xlu0 %v4786_v30, %s6608_s16  ;;  %v699_v55 = vpop.f32.mrf.mxu0 }
 0x293   : > { %v773_v32 = vadd.f32 %v4622_v10, %v699_v55 }
 0x294   : > { %v4817_v53 = vpop.permute.xlu1 %1276  ;;  %v4819_v57 = vpop.permute.xlu0 %1172 }
 0x295   : > { %6609 = vst [vmem:[#allocation25_spill] sm:$0xff] %v4817_v53  ;;  %v703_v42 = vpop.f32.mrf.mxu0 }
 0x296   : > { %1027 = vrot.lane.b32.xlu0 %v4786_v30, %s6600_s11  ;;  %1093 = vrot.lane.b32.xlu1 %v769_v54, %s6556_s12 }
 0x298   : > { %v4827_v18 = vpop.permute.xlu1 %1306  ;;  %v4829_v21 = vpop.permute.xlu0 %1196 }
 0x299   : > { %6610 = vst [vmem:[#allocation26_spill] sm:$0xff] %v4827_v18 }
 0x29a   : > { %1051 = vrot.lane.b32.xlu0 %v4786_v30, %s6597_s30  ;;  %933 = vrot.lane.b32.xlu1 %v4825_v14, %s6606_s20 }
 0x29c   : > { %v4835_v63 = vpop.permute.xlu1 %1339  ;;  %v4837_v43 = vpop.permute.xlu0 %1220 }
 0x29d   : > { %6611 = vst [vmem:[#allocation27_spill] sm:$0xff] %v4835_v63 }
 0x29e   : > { %1091 = vrot.lane.b32.xlu0 %v4786_v30, %s6556_s12  ;;  %957 = vrot.lane.b32.xlu1 %v4825_v14, %s6552_s13 }
 0x2a0   : > { %v4843_v9 = vpop.permute.xlu0 %1077  ;;  %v4845_v8 = vpop.permute.xlu1 %925 }
 0x2a2   : > { %1132 = vrot.lane.b32.xlu0 %v769_v54, %s6598_s8  ;;  %981 = vrot.lane.b32.xlu1 %v4825_v14, %s6541_s15  ;;  %s6616_s15 = smov 100  }
 0x2a4   : > { %v4850_v13 = vpop.permute.xlu0 %997  ;;  %v4852_v34 = vpop.permute.xlu1 %949 }
 0x2a6   : > { %1156 = vrot.lane.b32.xlu0 %v769_v54, %s6554_s29  ;;  %1005 = vrot.lane.b32.xlu1 %v4825_v14, %s6608_s16 }
 0x2a8   : > { %v4857_v40 = vpop.permute.xlu0 %1021  ;;  %v4859_v39 = vpop.permute.xlu1 %973 }
 0x2aa   : > { %1180 = vrot.lane.b32.xlu0 %v769_v54, %s6558_s26  ;;  %1029 = vrot.lane.b32.xlu1 %v4825_v14, %s6600_s11 }
 0x2ac   : > { %v4864_v35 = vpop.permute.xlu0 %1045  ;;  %v4866_v51 = vpop.permute.xlu1 %1079 }
 0x2ad   : > { %6612 = vst [vmem:[#allocation28_spill] sm:$0xff] %v4864_v35  ;;  %v705_v35 = vpop.f32.mrf.mxu0 }
 0x2ae   : > { %1204 = vrot.lane.b32.xlu0 %v769_v54, %s6549_s10  ;;  %1053 = vrot.lane.b32.xlu1 %v4825_v14, %s6597_s30 }
 0x2b0   : > { %v4872_v41 = vpop.permute.xlu1 %1298  ;;  %v4874_v19 = vpop.permute.xlu0 %1246 }
 0x2b1   : > { %6613 = vst [vmem:[#allocation29_spill] sm:$0xff] %v4872_v41  ;;  %6614 = vst [vmem:[#allocation30_spill] sm:$0xff] %v4874_v19  ;;  %v707_v19 = vpop.f32.mrf.mxu0 }
 0x2b2   : > { %1228 = vrot.lane.b32.xlu0 %v769_v54, %s6599_s14  ;;  %1134 = vrot.lane.b32.xlu1 %v773_v32, %s6598_s8 }
 0x2b4   : > { %v4878_v6 = vpop.permute.xlu1 %1335  ;;  %v4880_v45 = vpop.permute.xlu0 %1081 }
 0x2b5   : > { %6615 = vst [vmem:[#allocation31_spill] sm:$0xff] %v4878_v6 }
 0x2b6   : > { %1252 = vrot.lane.b32.xlu0 %v769_v54, %s6602_s27  ;;  %1158 = vrot.lane.b32.xlu1 %v773_v32, %s6554_s29 }
 0x2b8   : > { %v4884_v27 = vpop.permute.xlu1 %1126  ;;  %v4886_v46 = vpop.permute.xlu0 %927 }
 0x2ba   : > { %1292 = vrot.lane.b32.xlu0 %v769_v54, %s6616_s15  ;;  %1182 = vrot.lane.b32.xlu1 %v773_v32, %s6558_s26  ;;  %v4904_v54 = vadd.f32 %v4628_v15, %v703_v42  ;;  %v779_v42 = vadd.f32 %v4630_v16, %v705_v35 }
 0x2bc   : > { %v4890_v10 = vpop.permute.xlu1 %1150  ;;  %v4892_v55 = vpop.permute.xlu0 %951  ;;  %6619 = vst [vmem:[#allocation34_spill] sm:$0xff] %v4904_v54 }
 0x2be   : > { %1095 = vrot.lane.b32.xlu0 %v4825_v14, %s6556_s12  ;;  %1206 = vrot.lane.b32.xlu1 %v773_v32, %s6549_s10  ;;  %s6626_s10 = smov 122  }
 0x2c0   : > { %v4897_v26 = vpop.permute.xlu1 %1174  ;;  %v4899_v20 = vpop.permute.xlu0 %975 }
 0x2c1   : > { %6617 = vst [vmem:[#allocation32_spill] sm:$0xff] %v4897_v26  ;;  %6618 = vst [vmem:[#allocation33_spill] sm:$0xff] %v4899_v20 }
 0x2c2   : > { %1296 = vrot.lane.b32.xlu0 %v773_v32, %s6616_s15  ;;  %1230 = vrot.lane.b32.xlu1 %v773_v32, %s6599_s14 }
 0x2c4   : > { %v4906_v61 = vpop.permute.xlu1 %1198  ;;  %v4908_v47 = vpop.permute.xlu0 %999 }
 0x2c5   : > { %6620 = vst [vmem:[#allocation35_spill] sm:$0xff] %v4906_v61  ;;  %6621 = vst [vmem:[#allocation36_spill] sm:$0xff] %v4908_v47 }
 0x2c6   : > { %1254 = vrot.lane.b32.xlu1 %v773_v32, %s6602_s27  ;;  %935 = vrot.lane.b32.xlu0 %v4904_v54, %s6606_s20 }
 0x2c8   : > { %v4913_v33 = vpop.permute.xlu1 %1222  ;;  %v4915_v36 = vpop.permute.xlu0 %1023 }
 0x2c9   : > { %6622 = vst [vmem:[#allocation37_spill] sm:$0xff] %v4913_v33  ;;  %6623 = vst [vmem:[#allocation38_spill] sm:$0xff] %v4915_v36  ;;  %v4929_v36 = vadd.f32 %v4633_v2, %v707_v19 }
 0x2ca   : > { %1097 = vrot.lane.b32.xlu1 %v773_v32, %s6556_s12  ;;  %959 = vrot.lane.b32.xlu0 %v4904_v54, %s6552_s13 }
 0x2cb   : > { %6627 = vst [vmem:[#allocation41_spill] sm:$0xff] %v4929_v36 }
 0x2cc   : > { %v4921_v15 = vpop.permute.xlu1 %1280  ;;  %v4923_v53 = vpop.permute.xlu0 %1047 }
 0x2cd   : > { %6624 = vst [vmem:[#allocation39_spill] sm:$0xff] %v4921_v15  ;;  %6625 = vst [vmem:[#allocation40_spill] sm:$0xff] %v4923_v53 }
 0x2ce   : > { %983 = vrot.lane.b32.xlu0 %v4904_v54, %s6626_s10  ;;  %1101 = vrot.lane.b32.xlu1 %v779_v42, %s6556_s12 }
 0x2d0   : > { %v4931_v47 = vpop.permute.xlu0 %1083  ;;  %v4933_v32 = vpop.permute.xlu1 %1085 }
 0x2d1   : > { %6628 = vst [vmem:[#allocation42_spill] sm:$0xff] %v4931_v47  ;;  %6629 = vst [vmem:[#allocation43_spill] sm:$0xff] %v4933_v32 }
 0x2d2   : > { %1007 = vrot.lane.b32.xlu0 %v4904_v54, %s6608_s16  ;;  %937 = vrot.lane.b32.xlu1 %v4929_v36, %s6606_s20 }
 0x2d4   : > { %v4939_v16 = vpop.permute.xlu0 %1128  ;;  %v4941_v35 = vpop.permute.xlu1 %929 }
 0x2d5   : > { %6630 = vst [vmem:[#allocation44_spill] sm:$0xff] %v4939_v16  ;;  %6631 = vst [vmem:[#allocation45_spill] sm:$0xff] %v4941_v35 }
 0x2d6   : > { %1031 = vrot.lane.b32.xlu0 %v4904_v54, %s6600_s11  ;;  %961 = vrot.lane.b32.xlu1 %v4929_v36, %s6552_s13  ;;  %s6644_s13 = smov 106  }
 0x2d8   : > { %v4947_v2 = vpop.permute.xlu0 %1152  ;;  %v4949_v19 = vpop.permute.xlu1 %953 }
 0x2d9   : > { %6632 = vst [vmem:[#allocation46_spill] sm:$0xff] %v4947_v2  ;;  %6633 = vst [vmem:[#allocation47_spill] sm:$0xff] %v4949_v19 }
 0x2da   : > { %1055 = vrot.lane.b32.xlu0 %v4904_v54, %s6597_s30  ;;  %985 = vrot.lane.b32.xlu1 %v4929_v36, %s6626_s10 }
 0x2dc   : > { %v4955_v53 = vpop.permute.xlu0 %1176  ;;  %v4957_v47 = vpop.permute.xlu1 %977 }
 0x2dd   : > { %6634 = vst [vmem:[#allocation48_spill] sm:$0xff] %v4955_v53  ;;  %6635 = vst [vmem:[#allocation49_spill] sm:$0xff] %v4957_v47  ;;  %v709_v47 = vpop.f32.mrf.mxu0 }
 0x2de   : > { %1099 = vrot.lane.b32.xlu0 %v4904_v54, %s6556_s12  ;;  %1009 = vrot.lane.b32.xlu1 %v4929_v36, %s6608_s16  ;;  %v783_v16 = vadd.f32 %v4637_v1, %v709_v47 }
 0x2df   : > { %v3485_v2 = vpop.f32.mrf.mxu0 }
 0x2e0   : > { %v4963_v32 = vpop.permute.xlu0 %1200  ;;  %v4965_v15 = vpop.permute.xlu1 %1001 }
 0x2e1   : > { %6636 = vst [vmem:[#allocation50_spill] sm:$0xff] %v4963_v32  ;;  %6637 = vst [vmem:[#allocation51_spill] sm:$0xff] %v4965_v15  ;;  %v3486_v17 = vpop.f32.mrf.mxu0 }
 0x2e2   : > { %1136 = vrot.lane.b32.xlu0 %v779_v42, %s6598_s8  ;;  %1033 = vrot.lane.b32.xlu1 %v4929_v36, %s6600_s11 }
 0x2e3   : > { %v3488_v1 = vpop.f32.mrf.mxu0 }
 0x2e4   : > { %v4970_v19 = vpop.permute.xlu0 %1224  ;;  %v4972_v53 = vpop.permute.xlu1 %1025 }
 0x2e5   : > { %6638 = vst [vmem:[#allocation52_spill] sm:$0xff] %v4970_v19  ;;  %6639 = vst [vmem:[#allocation53_spill] sm:$0xff] %v4972_v53 }
 0x2e6   : > { %1160 = vrot.lane.b32.xlu0 %v779_v42, %s6554_s29  ;;  %1057 = vrot.lane.b32.xlu1 %v4929_v36, %s6597_s30 }
 0x2e8   : > { %v4978_v32 = vpop.permute.xlu0 %1248  ;;  %v4980_v15 = vpop.permute.xlu1 %1049 }
 0x2e9   : > { %6640 = vst [vmem:[#allocation54_spill] sm:$0xff] %v4978_v32  ;;  %6641 = vst [vmem:[#allocation55_spill] sm:$0xff] %v4980_v15 }
 0x2ea   : > { %1184 = vrot.lane.b32.xlu0 %v779_v42, %s6558_s26  ;;  %1138 = vrot.lane.b32.xlu1 %v783_v16, %s6598_s8 }
 0x2ec   : > { %v4984_v19 = vpop.permute.xlu0 %1284  ;;  %v4986_v53 = vpop.permute.xlu1 %1130 }
 0x2ed   : > { %6642 = vst [vmem:[#allocation56_spill] sm:$0xff] %v4984_v19  ;;  %6643 = vst [vmem:[#allocation57_spill] sm:$0xff] %v4986_v53  ;;  %v3489_v19 = vpop.f32.mrf.mxu0 }
 0x2ee   : > { %1208 = vrot.lane.b32.xlu0 %v779_v42, %s6644_s13  ;;  %1162 = vrot.lane.b32.xlu1 %v783_v16, %s6554_s29  ;;  %s6653_s29 = smov 98  }
 0x2f0   : > { %v4990_v35 = vpop.permute.xlu0 %1087  ;;  %v4992_v47 = vpop.permute.xlu1 %1154 }
 0x2f1   : > { %6645 = vst [vmem:[#allocation58_spill] sm:$0xff] %v4990_v35  ;;  %6646 = vst [vmem:[#allocation59_spill] sm:$0xff] %v4992_v47  ;;  %v3491_v35 = vpop.f32.mrf.mxu0 }
 0x2f2   : > { %1232 = vrot.lane.b32.xlu0 %v779_v42, %s6599_s14  ;;  %1186 = vrot.lane.b32.xlu1 %v783_v16, %s6558_s26  ;;  %s6660_s26 = smov 127  }
 0x2f4   : > { %v4996_v32 = vpop.permute.xlu0 %1288  ;;  %v4998_v15 = vpop.permute.xlu1 %1178 }
 0x2f5   : > { %6647 = vst [vmem:[#allocation60_spill] sm:$0xff] %v4996_v32  ;;  %6648 = vst [vmem:[#allocation61_spill] sm:$0xff] %v4998_v15  ;;  %v3492_v32 = vpop.f32.mrf.mxu0  ;;  %v3487_v15 = vadd.f32 %v3486_v17, %v3485_v2 }
 0x2f6   : > { %1256 = vrot.lane.b32.xlu0 %v779_v42, %s6602_s27  ;;  %1210 = vrot.lane.b32.xlu1 %v783_v16, %s6644_s13  ;;  %v3493_v63 = vadd.f32 %v3492_v32, %v3491_v35 }
 0x2f7   : > { %v3494_v26 = vpop.f32.mrf.mxu0 }
 0x2f8   : > { %v5002_v53 = vpop.permute.xlu1 %1202  ;;  %v5004_v33 = vpop.permute.xlu0 %931  ;;  %v893_v2 = vadd.f32 %v4656_v37, %v3493_v63 }
 0x2f9   : > { %6649 = vst [vmem:[#allocation62_spill] sm:$0xff] %v5002_v53  ;;  %v3495_v29 = vpop.f32.mrf.mxu0 }
 0x2fa   : > { %1300 = vrot.lane.b32.xlu0 %v779_v42, %s6616_s15  ;;  %1234 = vrot.lane.b32.xlu1 %v783_v16, %s6599_s14  ;;  %v885_v42 = vadd.f32 %v3487_v15, %v4658_v23 }
 0x2fc   : > { %v5008_v47 = vpop.permute.xlu1 %1226  ;;  %v5010_v61 = vpop.permute.xlu0 %955 }
 0x2fd   : > { %6650 = vst [vmem:[#allocation63_spill] sm:$0xff] %v5008_v47  ;;  %v3490_v47 = vadd.f32 %v3489_v19, %v3488_v1 }
 0x2fe   : > { %1103 = vrot.lane.b32.xlu0 %v4929_v36, %s6556_s12  ;;  %1258 = vrot.lane.b32.xlu1 %v783_v16, %s6602_s27 }
 0x2ff   : > { %v888_v17 = vadd.f32 %v3490_v47, %v4662_v52  ;;  %v1621_v52 = vpop.f32.mrf.mxu1 }
 0x300   : > { %v5015_v20 = vpop.permute.xlu1 %1250  ;;  %v5017_v53 = vpop.permute.xlu0 %979  ;;  %v1630_v1 = vsub.f32 0.0, %v1621_v52 }
 0x301   : > { %6651 = vst [vmem:[#allocation64_spill] sm:$0xff] %v5015_v20  ;;  %v3496_v20 = vadd.f32 %v3495_v29, %v3494_v26 }
 0x302   : > { %1304 = vrot.lane.b32.xlu0 %v783_v16, %s6616_s15  ;;  %1105 = vrot.lane.b32.xlu1 %v783_v16, %s6556_s12  ;;  %s6659_s12 = smov 91  }
 0x303   : > { %v896_v23 = vadd.f32 %v4660_v49, %v3496_v20  ;;  %v1623_v49 = vpop.f32.mrf.mxu1 }
 0x304   : > { %v5022_v59 = vpop.permute.xlu1 %1089  ;;  %v5024_v18 = vpop.permute.xlu0 %1003 }
 0x305   : > { %6652 = vst [vmem:[#allocation65_spill] sm:$0xff] %v5022_v59  ;;  %v1625_v19 = vpop.f32.mrf.mxu1 }
 0x306   : > { %1278 = vrot.lane.b32.xlu0 %v885_v42, %s6616_s15  ;;  %1325 = vrot.lane.b32.xlu1 %v885_v42, %s6653_s29 }
 0x307   : > { %v1627_v47 = vpop.f32.mrf.mxu1 }
 0x308   : > { %v5030_v6 = vpop.permute.xlu0 %1027  ;;  %v5032_v16 = vpop.permute.xlu1 %1093  ;;  %v1633_v59 = vsub.f32 0.0, %v1627_v47 }
 0x309   : > { %6654 = vst [vmem:[#allocation66_spill] sm:$0xff] %v5032_v16 }
 0x30a   : > { %1282 = vrot.lane.b32.xlu0 %v888_v17, %s6616_s15  ;;  %1286 = vrot.lane.b32.xlu1 %v893_v2, %s6616_s15 }
 0x30c   : > { %v5037_v15 = vpop.permute.xlu0 %1051  ;;  %v5039_v32 = vpop.permute.xlu1 %933 }
 0x30d   : > { %6655 = vst [vmem:[#allocation67_spill] sm:$0xff] %v5037_v15  ;;  %v1634_v15 = vmul.f32 1.442695, %v1630_v1 }
 0x30e   : > { %1327 = vrot.lane.b32.xlu0 %v888_v17, %s6653_s29  ;;  %1290 = vrot.lane.b32.xlu1 %v896_v23, %s6616_s15 }
 0x30f   : > { %3739 = vpow2.f32 %v1634_v15 }
 0x310   : > { %v5043_v37 = vpop.permute.xlu0 %1091  ;;  %v5045_v26 = vpop.permute.xlu1 %957 }
 0x311   : > { %6656 = vst [vmem:[#allocation68_spill] sm:$0xff] %v5043_v37  ;;  %6657 = vst [vmem:[#allocation69_spill] sm:$0xff] %v5045_v26 }
 0x312   : > { %1329 = vrot.lane.b32.xlu0 %v893_v2, %s6653_s29  ;;  %1331 = vrot.lane.b32.xlu1 %v896_v23, %s6653_s29  ;;  %v1632_v2 = vsub.f32 0.0, %v1625_v19  ;;  %v1631_v23 = vsub.f32 0.0, %v1623_v49  ;;  %v1640_v49 = vmul.f32 1.442695, %v1633_v59 }
 0x314   : > { %v5049_v29 = vpop.permute.xlu0 %1132  ;;  %v5051_v20 = vpop.permute.xlu1 %981  ;;  %v1638_v54 = vmul.f32 1.442695, %v1632_v2  ;;  %v1636_v52 = vmul.f32 1.442695, %v1631_v23 }
 0x315   : > { %6658 = vst [vmem:[#allocation70_spill] sm:$0xff] %v5051_v20 }
 0x316   : > { %2057 = vrot.lane.b32.xlu0 %v4514_v4, %s6659_s12  ;;  %1917 = vrot.lane.b32.xlu1 %v4537_v58, %s6660_s26  ;;  %s6664_s26 = smov 90   ;;  %3741 = vpow2.f32 %v1638_v54 }
 0x317   : > { %3743 = vpow2.f32 %v1636_v52 }
 0x318   : > { %v5057_v63 = vpop.permute.xlu0 %1156  ;;  %v5059_v35 = vpop.permute.xlu1 %1005  ;;  %3745 = vpow2.f32 %v1640_v49 }
 0x319   : > { %6661 = vst [vmem:[#allocation71_spill] sm:$0xff] %v5059_v35 }
 0x31a   : > { %2055 = vrot.lane.b32.xlu0 %v4524_v11, %s6659_s12  ;;  %2059 = vrot.lane.b32.xlu1 %v4519_v0, %s6659_s12 }
 0x31c   : > { %v5065_v42 = vpop.permute.xlu0 %1180  ;;  %v5067_v17 = vpop.permute.xlu1 %1029 }
 0x31d   : > { %6662 = vst [vmem:[#allocation72_spill] sm:$0xff] %v5067_v17  ;;  %v3740_v23 = vpop.eup %3739 }
 0x31e   : > { %2053 = vrot.lane.b32.xlu0 %v4534_v12, %s6659_s12  ;;  %2051 = vrot.lane.b32.xlu1 %v4529_v7, %s6659_s12  ;;  %v1642_v35 = vadd.f32 1.0, %v3740_v23 }
 0x320   : > { %v5073_v25 = vpop.permute.xlu0 %1204  ;;  %v5075_v36 = vpop.permute.xlu1 %1053  ;;  %3747 = vrcp.f32 %v1642_v35 }
 0x321   : > { %6663 = vst [vmem:[#allocation73_spill] sm:$0xff] %v5075_v36 }
 0x322   : > { %2081 = vrot.lane.b32.xlu0 %v4519_v0, %s6664_s26  ;;  %2079 = vrot.lane.b32.xlu1 %v4514_v4, %s6664_s26 }
 0x323   : > { %v3742_v52 = vpop.eup %3741 }
 0x324   : > { %v5081_v19 = vpop.permute.xlu0 %1228  ;;  %v5083_v17 = vpop.permute.xlu1 %1134 }
 0x325   : > { %6665 = vst [vmem:[#allocation74_spill] sm:$0xff] %v5081_v19  ;;  %v3744_v49 = vpop.eup %3743 }
 0x326   : > { %2077 = vrot.lane.b32.xlu0 %v4524_v11, %s6664_s26  ;;  %2049 = vrot.lane.b32.xlu1 %v4537_v58, %s6659_s12  ;;  %v3746_v36 = vpop.eup %3745  ;;  %v1643_v20 = vadd.f32 1.0, %v3744_v49  ;;  %s6671_s12 = smov 108  }
 0x328   : > { %v5089_v47 = vpop.permute.xlu0 %1252  ;;  %v5091_v1 = vpop.permute.xlu1 %1158 }
 0x329   : > { %6666 = vst [vmem:[#allocation75_spill] sm:$0xff] %v5089_v47  ;;  %v1644_v47 = vadd.f32 1.0, %v3742_v52 }
 0x32a   : > { %2037 = vrot.lane.b32.xlu0 %v4519_v0, %s6667_s0  ;;  %2035 = vrot.lane.b32.xlu1 %v4514_v4, %s6667_s0 }
 0x32b   : > { %3749 = vrcp.f32 %v1644_v47 }
 0x32c   : > { %v5097_v59 = vpop.permute.xlu0 %1292  ;;  %v5099_v54 = vpop.permute.xlu1 %1182  ;;  %3751 = vrcp.f32 %v1643_v20 }
 0x32e   : > { %2075 = vrot.lane.b32.xlu0 %v4534_v12, %s6664_s26  ;;  %2073 = vrot.lane.b32.xlu1 %v4529_v7, %s6664_s26 }
 0x330   : > { %v5105_v15 = vpop.permute.xlu0 %1095  ;;  %v5107_v2 = vpop.permute.xlu1 %1206 }
 0x331   : > { %6668 = vst [vmem:[#allocation76_spill] sm:$0xff] %v5105_v15  ;;  %v1645_v15 = vadd.f32 1.0, %v3746_v36 }
 0x332   : > { %2071 = vrot.lane.b32.xlu0 %v4537_v58, %s6664_s26  ;;  %2033 = vrot.lane.b32.xlu1 %v4524_v11, %s6667_s0  ;;  %s6777_s26 = smov 114  }
 0x333   : > { %3753 = vrcp.f32 %v1645_v15  ;;  %v3748_v15 = vpop.eup %3747 }
 0x334   : > { %v5113_v37 = vpop.permute.xlu0 %1296  ;;  %v5115_v16 = vpop.permute.xlu1 %1230 }
 0x335   : > { %6669 = vst [vmem:[#allocation77_spill] sm:$0xff] %v5113_v37 }
 0x336   : > { %2031 = vrot.lane.b32.xlu0 %v4534_v12, %s6667_s0  ;;  %2029 = vrot.lane.b32.xlu1 %v4529_v7, %s6667_s0 }
 0x338   : > { %v5121_v41 = vpop.permute.xlu1 %1254  ;;  %v5123_v19 = vpop.permute.xlu0 %935 }
 0x339   : > { %6670 = vst [vmem:[#allocation78_spill] sm:$0xff] %v5123_v19  ;;  %v3750_v49 = vpop.eup %3749 }
 0x33a   : > { %2013 = vrot.lane.b32.xlu0 %v4514_v4, %s6671_s12  ;;  %2027 = vrot.lane.b32.xlu1 %v4537_v58, %s6667_s0  ;;  %s6678_s0 = smov 109   ;;  %v1650_v19 = vadd.f32 %v3750_v49, %v3748_v15 }
 0x33c   : > { %v5129_v23 = vpop.permute.xlu1 %1097  ;;  %v5131_v52 = vpop.permute.xlu0 %959  ;;  %v1651_v37 = vrot.slane %v1650_v19, 4 }
 0x33d   : > { %6672 = vst [vmem:[#allocation79_spill] sm:$0xff] %v5129_v23  ;;  %6673 = vst [vmem:[#allocation80_spill] sm:$0xff] %v5131_v52  ;;  %v3752_v23 = vpop.eup %3751 }
 0x33e   : > { %2011 = vrot.lane.b32.xlu0 %v4524_v11, %s6671_s12  ;;  %2015 = vrot.lane.b32.xlu1 %v4519_v0, %s6671_s12 }
 0x340   : > { %v5137_v36 = vpop.permute.xlu0 %983  ;;  %v5139_v20 = vpop.permute.xlu1 %1101 }
 0x341   : > { %6674 = vst [vmem:[#allocation81_spill] sm:$0xff] %v5137_v36  ;;  %6675 = vst [vmem:[#allocation82_spill] sm:$0xff] %v5139_v20  ;;  %v3754_v20 = vpop.eup %3753 }
 0x342   : > { %2009 = vrot.lane.b32.xlu0 %v4534_v12, %s6671_s12  ;;  %2007 = vrot.lane.b32.xlu1 %v4529_v7, %s6671_s12 }
 0x344   : > { %v5145_v35 = vpop.permute.xlu0 %1007  ;;  %v5147_v47 = vpop.permute.xlu1 %937 }
 0x345   : > { %6676 = vst [vmem:[#allocation83_spill] sm:$0xff] %v5145_v35  ;;  %6677 = vst [vmem:[#allocation84_spill] sm:$0xff] %v5147_v47  ;;  %v1657_v35 = vadd.f32 %v3754_v20, %v3752_v23 }
 0x346   : > { %1991 = vrot.lane.b32.xlu0 %v4514_v4, %s6678_s0  ;;  %2005 = vrot.lane.b32.xlu1 %v4537_v58, %s6671_s12 }
 0x348   : > { %v5153_v36 = vpop.permute.xlu0 %1031  ;;  %v5155_v52 = vpop.permute.xlu1 %961 }
 0x349   : > { %6679 = vst [vmem:[#allocation85_spill] sm:$0xff] %v5153_v36  ;;  %6680 = vst [vmem:[#allocation86_spill] sm:$0xff] %v5155_v52  ;;  %v1658_v36 = vrot.slane %v1657_v35, 4 }
 0x34a   : > { %1989 = vrot.lane.b32.xlu0 %v4524_v11, %s6678_s0  ;;  %1993 = vrot.lane.b32.xlu1 %v4519_v0, %s6678_s0  ;;  %v1652_v11 = vadd.f32 %v1651_v37, %v1650_v19 }
 0x34b   : > { %v1659_v0 = vadd.f32 %v1658_v36, %v1657_v35  ;;  %v1351_v36 = vsel %vm1349_vm9, %v4696_v62, %v4845_v8 }
 0x34c   : > { %v5161_v47 = vpop.permute.xlu0 %1055  ;;  %v5163_v4 = vpop.permute.xlu1 %985 }
 0x34d   : > { %6681 = vst [vmem:[#allocation87_spill] sm:$0xff] %v5161_v47  ;;  %6682 = vst [vmem:[#allocation88_spill] sm:$0xff] %v5163_v4  ;;  %v1653_v47 = vrot.slane %v1652_v11, 2  ;;  %v1660_v4 = vrot.slane %v1659_v0, 2 }
 0x34e   : > { %1987 = vrot.lane.b32.xlu0 %v4534_v12, %s6678_s0  ;;  %1985 = vrot.lane.b32.xlu1 %v4529_v7, %s6678_s0 }
 0x34f   : > { %v1654_v7 = vadd.f32 %v1653_v47, %v1652_v11  ;;  %v1661_v26 = vadd.f32 %v1660_v4, %v1659_v0  ;;  %v1411_v4 = vsel %vm1349_vm9, %v4804_v48, %v4811_v50  ;;  %v1359_v11 = vsel %vm626_vm6, %v1351_v36, %v4852_v34 }
 0x350   : > { %v5169_v15 = vpop.permute.xlu0 %1099  ;;  %v5171_v49 = vpop.permute.xlu1 %1009  ;;  %v1419_v0 = vsel %vm626_vm6, %v1411_v4, %v4819_v57  ;;  %v1368_v62 = vsel %vm1366_vm10, %v1359_v11, %v4859_v39  ;;  %v6693_v11 = vld [vmem:[#allocation71_spill] sm:$0xff] }
 0x351   : > { %6683 = vst [vmem:[#allocation89_spill] sm:$0xff] %v5169_v15  ;;  %6684 = vst [vmem:[#allocation90_spill] sm:$0xff] %v5171_v49  ;;  %v1655_v37 = vrot.slane %v1654_v7, 1  ;;  %v1662_v35 = vrot.slane %v1661_v26, 1  ;;  %v1377_v34 = vsel %vm1375_vm11, %v1368_v62, %v4850_v13 }
 0x352   : > { %1983 = vrot.lane.b32.xlu1 %v4537_v58, %s6678_s0  ;;  %v1350_v58 = vsel %vm1349_vm9, %v4667_v3, %v4774_v22  ;;  %v5236_v13 = vsel %vm1384_vm12, %v1377_v34, %v4857_v40  ;;  %v1354_v40 = vsel %vm1349_vm9, %v4786_v30, %v5004_v33  ;;  %v6697_v34 = vld [vmem:[#allocation41_spill] sm:$0xff]  ;;  %s6774_s0 = smov 124  }
 0x353   : > { %v1358_v19 = vsel %vm626_vm6, %v1350_v58, %v4781_v44  ;;  %v1656_v44 = vadd.f32 %v1655_v37, %v1654_v7  ;;  %v1663_v8 = vadd.f32 %v1662_v35, %v1661_v26  ;;  %v6689_v58 = vld [vmem:[#allocation70_spill] sm:$0xff] }
 0x354   : > { %v5175_v23 = vpop.permute.xlu0 %1136  ;;  %v5177_v20 = vpop.permute.xlu1 %1033  ;;  %v1367_v47 = vsel %vm1366_vm10, %v1358_v19, %v4790_v38  ;;  %v1427_v38 = vsel %vm1366_vm10, %v1419_v0, %v4829_v21  ;;  %v5229_v21 = vsel %vm1107_vm13, %v4795_v56, %v4843_v9  ;;  %v5245_v56 = vsel %vm1107_vm13, %v4866_v51, %v4880_v45  ;;  %v6691_v35 = vld [vmem:[#allocation66_spill] sm:$0xff] }
 0x355   : > { %v1376_v48 = vsel %vm1375_vm11, %v1367_v47, %v4772_v28  ;;  %v1435_v50 = vsel %vm1375_vm11, %v1427_v38, %v4837_v43  ;;  %v5216_v37 = vmul.f32 0.0625, %v1656_v44  ;;  %v1416_v43 = vsel %vm1349_vm9, %v5083_v17, %v5091_v1  ;;  %v6692_v47 = vld [vmem:[#allocation68_spill] sm:$0xff]  ;;  %v6694_v38 = vld [vmem:[#allocation78_spill] sm:$0xff] }
 0x356   : > { %v5220_v39 = vsel %vm1384_vm12, %v1376_v48, %v4779_v24  ;;  %v5224_v28 = vsel %vm1384_vm12, %v1435_v50, %v4809_v5  ;;  %v5238_v24 = vmul.f32 0.0625, %v1663_v8  ;;  %v1424_v5 = vsel %vm626_vm6, %v1416_v43, %v5099_v54  ;;  %v6695_v48 = vld [vmem:[#allocation34_spill] sm:$0xff]  ;;  %v6696_v8 = vld [vmem:[#allocation84_spill] sm:$0xff] }
 0x357   : > { %v1352_v9 = vsel %vm1349_vm9, %v4720_v31, %v4886_v46  ;;  %v1432_v26 = vsel %vm1366_vm10, %v1424_v5, %v5107_v2  ;;  %v5258_v54 = vsel %vm1349_vm9, %v4884_v27, %v4890_v10  ;;  %v1362_v45 = vsel %vm626_vm6, %v1354_v40, %v5010_v61  ;;  %v6688_v2 = vld [vmem:[#allocation77_spill] sm:$0xff]  ;;  %v6698_v43 = vld [vmem:[#allocation22_spill] sm:$0xff] }
 0x358   : > { %v5179_v12 = vpop.permute.xlu0 %1160  ;;  %v5181_v52 = vpop.permute.xlu1 %1057  ;;  %v1415_v46 = vsel %vm1349_vm9, %v5049_v29, %v5057_v63  ;;  %v1440_v33 = vsel %vm1375_vm11, %v1432_v26, %v5115_v16  ;;  %v5269_v31 = vsel %vm626_vm6, %v1352_v9, %v4892_v55  ;;  %v1371_v30 = vsel %vm1366_vm10, %v1362_v45, %v5017_v53  ;;  %v6685_v29 = vld [vmem:[#allocation69_spill] sm:$0xff]  ;;  %v6686_v63 = vld [vmem:[#allocation74_spill] sm:$0xff]  ;;  %v6699_v9 = vld [vmem:[#allocation31_spill] sm:$0xff] }
 0x359   : > { %v1423_v27 = vsel %vm626_vm6, %v1415_v46, %v5065_v42  ;;  %v1448_v61 = vsel %vm1384_vm12, %v1440_v33, %v5121_v41  ;;  %v1380_v51 = vsel %vm1375_vm11, %v1371_v30, %v5024_v18  ;;  %v1355_v10 = vsel %vm1349_vm9, %v4825_v14, %v5039_v32  ;;  %v6687_v42 = vld [vmem:[#allocation29_spill] sm:$0xff]  ;;  %v6700_v26 = vld [vmem:[#allocation80_spill] sm:$0xff] }
 0x35a   : > { %v1431_v55 = vsel %vm1366_vm10, %v1423_v27, %v5073_v25  ;;  %v1313_v53 = vsel %vm1308_vm0, %v5097_v59, %v4802_v60  ;;  %v5289_v16 = vsel %vm1384_vm12, %v1380_v51, %v5030_v6  ;;  %v1363_v41 = vsel %vm626_vm6, %v1355_v10, %v6685_v29  ;;  %v6690_v60 = vld [vmem:[#allocation75_spill] sm:$0xff] }
 0x35b   : > { %v1439_v18 = vsel %vm1375_vm11, %v1431_v55, %v6686_v63  ;;  %v1314_v14 = vsel %vm1308_vm0, %v6688_v2, %v6687_v42  ;;  %v1372_v19 = vsel %vm1366_vm10, %v1363_v41, %v6689_v58  ;;  %v1417_v36 = vsel %vm1349_vm9, %v5175_v23, %v5179_v12  ;;  %v6704_v29 = vld [vmem:[#allocation83_spill] sm:$0xff]  ;;  %v6705_v63 = vld [vmem:[#allocation90_spill] sm:$0xff]  ;;  %v6706_v2 = vld [vmem:[#allocation85_spill] sm:$0xff] }
 0x35c   : > { %v5183_v15 = vpop.permute.xlu0 %1184  ;;  %v5185_v49 = vpop.permute.xlu1 %1138  ;;  %v1447_v59 = vsel %vm1384_vm12, %v1439_v18, %v6690_v60  ;;  %v1456_v6 = vsel %vm1393_vm14, %v1448_v61, %v1314_v14  ;;  %v1112_v4 = vsel %vm1107_vm13, %v6692_v47, %v6691_v35  ;;  %v1381_v44 = vsel %vm1375_vm11, %v1372_v19, %v6693_v11  ;;  %v6702_v61 = vld [vmem:[#allocation81_spill] sm:$0xff]  ;;  %v6710_v60 = vld [vmem:[#allocation76_spill] sm:$0xff] }
 0x35d   : > { %v1455_v0 = vsel %vm1393_vm14, %v1447_v59, %v1313_v53  ;;  %v1425_v62 = vsel %vm626_vm6, %v1417_v36, %v5183_v15  ;;  %v1356_v50 = vsel %vm1349_vm9, %v6695_v48, %v6694_v38  ;;  %v1357_v23 = vsel %vm1349_vm9, %v6697_v34, %v6696_v8  ;;  %v6701_v15 = vld [vmem:[#allocation86_spill] sm:$0xff]  ;;  %v6708_v58 = vld [vmem:[#allocation89_spill] sm:$0xff]  ;;  %v6714_v8 = vld [vmem:[#allocation72_spill] sm:$0xff] }
 0x35e   : > { %v1464_v40 = vsel %vm1402_vm15, %v1456_v6, %v6699_v9  ;;  %v1364_v45 = vsel %vm626_vm6, %v1356_v50, %v6700_v26  ;;  %v1365_v46 = vsel %vm626_vm6, %v1357_v23, %v6701_v15  ;;  %v6711_v6 = vld [vmem:[#allocation87_spill] sm:$0xff]  ;;  %v1390_v34 = vsel %vm1384_vm12, %v1381_v44, %v6714_v8 }
 0x35f   : > { %v1373_v51 = vsel %vm1366_vm10, %v1364_v45, %v6702_v61  ;;  %v6717_v26 = vld [vmem:[#allocation27_spill] sm:$0xff]  ;;  %v1678_v61 = vmul.f32 %v5238_v24, %v1464_v40 }
 0x360   : > { %v1209_v3 = vpop.permute.xlu0 %1208  ;;  %v5202_v22 = vpop.permute.xlu1 %1162  ;;  %v1382_v41 = vsel %vm1375_vm11, %v1373_v51, %v6704_v29  ;;  %v6718_v51 = vld [vmem:[#allocation32_spill] sm:$0xff] }
 0x361   : > { %v1433_v12 = vsel %vm1366_vm10, %v1425_v62, %v1209_v3  ;;  %v6703_v3 = vld [vmem:[#allocation88_spill] sm:$0xff]  ;;  %v1418_v55 = vsel %vm1349_vm9, %v5185_v49, %v5202_v22  ;;  %v1391_v14 = vsel %vm1384_vm12, %v1382_v41, %v6706_v2  ;;  %v6712_v62 = vld [vmem:[#allocation21_spill] sm:$0xff]  ;;  %v6721_v41 = vld [vmem:[#allocation35_spill] sm:$0xff] }
 0x362   : > { %v1374_v10 = vsel %vm1366_vm10, %v1365_v46, %v6703_v3  ;;  %v6719_v3 = vld [vmem:[#allocation33_spill] sm:$0xff] }
 0x363   : > { %v6723_v2 = vld [vmem:[#allocation45_spill] sm:$0xff] }
 0x364   : > { %v1233_v7 = vpop.permute.xlu0 %1232  ;;  %v1187_v57 = vpop.permute.xlu1 %1186 }
 0x365   : > { %v1441_v33 = vsel %vm1375_vm11, %v1433_v12, %v1233_v7  ;;  %v1383_v7 = vsel %vm1375_vm11, %v1374_v10, %v6705_v63  ;;  %v1426_v18 = vsel %vm626_vm6, %v1418_v55, %v1187_v57  ;;  %v1400_v57 = vsel %vm1393_vm14, %v1391_v14, %v6711_v6  ;;  %v6715_v12 = vld [vmem:[#allocation73_spill] sm:$0xff]  ;;  %v6720_v55 = vld [vmem:[#allocation67_spill] sm:$0xff]  ;;  %v6724_v14 = vld [vmem:[#allocation20_spill] sm:$0xff] }
 0x366   : > { %v1392_v49 = vsel %vm1384_vm12, %v1383_v7, %v5177_v20  ;;  %v1369_v10 = vsel %vm1366_vm10, %v5269_v31, %v6719_v3  ;;  %v1353_v31 = vsel %vm1349_vm9, %v6724_v14, %v6723_v2  ;;  %v6749_v2 = vld [vmem:[#allocation60_spill] sm:$0xff] }
 0x367   : > { %v1401_v36 = vsel %vm1393_vm14, %v1392_v49, %v5181_v52  ;;  %v6726_v49 = vld [vmem:[#allocation46_spill] sm:$0xff] }
 0x368   : > { %v1257_v17 = vpop.permute.xlu0 %1256  ;;  %v1211_v1 = vpop.permute.xlu1 %1210 }
 0x369   : > { %v1449_v53 = vsel %vm1384_vm12, %v1441_v33, %v1257_v17  ;;  %v1434_v22 = vsel %vm1366_vm10, %v1426_v18, %v1211_v1  ;;  %v6709_v17 = vld [vmem:[#allocation79_spill] sm:$0xff]  ;;  %v6713_v1 = vld [vmem:[#allocation26_spill] sm:$0xff] }
 0x36a   : > { %v1113_v59 = vsel %vm1107_vm13, %v6710_v60, %v6709_v17  ;;  %v6728_v17 = vld [vmem:[#allocation47_spill] sm:$0xff] }
 0x36b   : > { %v1361_v60 = vsel %vm626_vm6, %v1353_v31, %v6728_v17  ;;  %v6750_v31 = vld [vmem:[#allocation63_spill] sm:$0xff] }
 0x36c   : > { %v1301_v32 = vpop.permute.xlu0 %1300  ;;  %v1235_v25 = vpop.permute.xlu1 %1234 }
 0x36d   : > { %v1315_v5 = vsel %vm1308_vm0, %v1301_v32, %v6698_v43  ;;  %v6707_v32 = vld [vmem:[#allocation82_spill] sm:$0xff]  ;;  %v1442_v35 = vsel %vm1375_vm11, %v1434_v22, %v1235_v25  ;;  %v1399_v43 = vsel %vm1393_vm14, %v1390_v34, %v6715_v12  ;;  %v6727_v22 = vld [vmem:[#allocation44_spill] sm:$0xff]  ;;  %v6734_v34 = vld [vmem:[#allocation51_spill] sm:$0xff] }
 0x36e   : > { %v1457_v42 = vsel %vm1393_vm14, %v1449_v53, %v1315_v5  ;;  %v1114_v19 = vsel %vm1107_vm13, %v6708_v58, %v6707_v32  ;;  %v6716_v5 = vld [vmem:[#allocation24_spill] sm:$0xff]  ;;  %v1408_v46 = vsel %vm1402_vm15, %v1399_v43, %v1113_v59  ;;  %v1398_v53 = vsel %vm1393_vm14, %v5289_v16, %v6720_v55  ;;  %v6737_v43 = vld [vmem:[#allocation65_spill] sm:$0xff] }
 0x36f   : > { %v1465_v38 = vsel %vm1402_vm15, %v1457_v42, %v6712_v62  ;;  %v1409_v23 = vsel %vm1402_vm15, %v1400_v57, %v1114_v19  ;;  %v1463_v9 = vsel %vm1402_vm15, %v1455_v0, %v6716_v5  ;;  %v1420_v0 = vsel %vm626_vm6, %v5258_v54, %v6718_v51  ;;  %v6722_v42 = vld [vmem:[#allocation37_spill] sm:$0xff]  ;;  %v6725_v58 = vld [vmem:[#allocation36_spill] sm:$0xff]  ;;  %v6738_v5 = vld [vmem:[#allocation58_spill] sm:$0xff] }
 0x370   : > { %v1104_v30 = vpop.permute.xlu0 %1103  ;;  %v1259_v27 = vpop.permute.xlu1 %1258  ;;  %v1679_v29 = vmul.f32 %v5216_v37, %v1409_v23  ;;  %v1428_v63 = vsel %vm1366_vm10, %v1420_v0, %v6721_v41  ;;  %v1407_v7 = vsel %vm1402_vm15, %v1398_v53, %v1112_v4  ;;  %v1676_v18 = vmul.f32 %v5238_v24, %v1463_v9  ;;  %v6731_v62 = vld [vmem:[#allocation49_spill] sm:$0xff]  ;;  %v6743_v0 = vld [vmem:[#allocation52_spill] sm:$0xff] }
 0x371   : > { %v1450_v20 = vsel %vm1384_vm12, %v1442_v35, %v1259_v27  ;;  %v1436_v54 = vsel %vm1375_vm11, %v1428_v63, %v6722_v42  ;;  %v1677_v32 = vmul.f32 %v5216_v37, %v1408_v46  ;;  %v1378_v19 = vsel %vm1375_vm11, %v1369_v10, %v6725_v58  ;;  %v6740_v46 = vld [vmem:[#allocation39_spill] sm:$0xff]  ;;  %v6744_v10 = vld [vmem:[#allocation53_spill] sm:$0xff]  ;;  %v6748_v42 = vld [vmem:[#allocation56_spill] sm:$0xff] }
 0x372   : > { %v1413_v4 = vsel %vm1349_vm9, %v6727_v22, %v6726_v49  ;;  %v1688_v57 = vpack.c.bf16 %v1678_v61, %v1676_v18  ;;  %v1111_v9 = vsel %vm1107_vm13, %v6738_v5, %v6737_v43  ;;  %v6742_v61 = vld [vmem:[#allocation42_spill] sm:$0xff]  ;;  %v6745_v53 = vld [vmem:[#allocation61_spill] sm:$0xff]  ;;  %v6751_v49 = vld [vmem:[#allocation40_spill] sm:$0xff] }
 0x374   : > { %v1305_v47 = vpop.permute.xlu0 %1304  ;;  %v1106_v11 = vpop.permute.xlu1 %1105 }
 0x375   : > { %v1316_v48 = vsel %vm1308_vm0, %v1305_v47, %v6713_v1  ;;  %v1115_v50 = vsel %vm1107_vm13, %v1104_v30, %v1106_v11  ;;  %v1680_v30 = vmul.f32 %v5238_v24, %v1465_v38  ;;  %v6730_v47 = vld [vmem:[#allocation48_spill] sm:$0xff]  ;;  %v1370_v38 = vsel %vm1366_vm10, %v1361_v60, %v6731_v62  ;;  %v6732_v1 = vld [vmem:[#allocation30_spill] sm:$0xff] }
 0x376   : > { %v1458_v52 = vsel %vm1393_vm14, %v1450_v20, %v1316_v48  ;;  %v1410_v25 = vsel %vm1402_vm15, %v1401_v36, %v1115_v50  ;;  %v6729_v36 = vld [vmem:[#allocation38_spill] sm:$0xff]  ;;  %v1421_v11 = vsel %vm626_vm6, %v1413_v4, %v6730_v47  ;;  %v1675_v20 = vmul.f32 %v5216_v37, %v1407_v7  ;;  %v6746_v7 = vld [vmem:[#allocation55_spill] sm:$0xff]  ;;  %v6753_v60 = vld [vmem:[#allocation64_spill] sm:$0xff] }
 0x377   : > { %v1466_v45 = vsel %vm1402_vm15, %v1458_v52, %v6717_v26  ;;  %v1681_v15 = vmul.f32 %v5216_v37, %v1410_v25  ;;  %v1387_v35 = vsel %vm1384_vm12, %v1378_v19, %v6729_v36  ;;  %v1444_v48 = vsel %vm1384_vm12, %v1436_v54, %v6732_v1  ;;  %v6733_v50 = vld [vmem:[#allocation50_spill] sm:$0xff]  ;;  %v6735_v52 = vld [vmem:[#allocation59_spill] sm:$0xff]  ;;  %v6736_v25 = vld [vmem:[#allocation57_spill] sm:$0xff] }
 0x378   : > { %v1279_v44 = vpop.permute.xlu0 %1278  ;;  %v5379_v33 = vpop.permute.xlu1 %1325  ;;  %v1682_v27 = vmul.f32 %v5238_v24, %v1466_v45  ;;  %v1429_v8 = vsel %vm1366_vm10, %v1421_v11, %v6733_v50  ;;  %v1379_v23 = vsel %vm1375_vm11, %v1370_v38, %v6734_v34  ;;  %v1414_v12 = vsel %vm1349_vm9, %v6736_v25, %v6735_v52  ;;  %v6739_v45 = vld [vmem:[#allocation25_spill] sm:$0xff]  ;;  %v6752_v4 = vld [vmem:[#allocation54_spill] sm:$0xff] }
 0x379   : > { %v1689_v16 = vpack.c.bf16 %v1681_v15, %v1679_v29  ;;  %v1687_v26 = vpack.c.bf16 %v1677_v32, %v1675_v20  ;;  %v1309_v15 = vsel %vm1308_vm0, %v6739_v45, %v1279_v44  ;;  %v1437_v3 = vsel %vm1375_vm11, %v1429_v8, %v6743_v0  ;;  %v6756_v45 = vld [vmem:[#allocation18_spill] sm:$0xff]  ;;  %v3777_v0 = vld [vmem:[%s4113_s19 + $0x34] ss:$12 sps:$4 sm:$0xff]  }
 0x37a   : > { %v1690_v40 = vpack.c.bf16 %v1682_v27, %v1680_v30  ;;  %v6741_v27 = vld [vmem:[#allocation43_spill] sm:$0xff]  ;;  %v1388_v55 = vsel %vm1384_vm12, %v1379_v23, %v6744_v10  ;;  %v1422_v29 = vsel %vm626_vm6, %v1414_v12, %v6745_v53  ;;  %v1451_v58 = vsel %vm1393_vm14, %v5224_v28, %v1309_v15 }
 0x37b   : > { %v1110_v51 = vsel %vm1107_vm13, %v6742_v61, %v6741_v27  ;;  %v1397_v44 = vsel %vm1393_vm14, %v1388_v55, %v6746_v7  ;;  %v1396_v22 = vsel %vm1393_vm14, %v1387_v35, %v6751_v49  ;;  %v1445_v17 = vsel %vm1384_vm12, %v1437_v3, %v6752_v4  ;;  %v6755_v23 = vld [vmem:[#allocation23_spill] sm:$0xff]  ;;  %v3776_v61 = vld [vmem:[%s4113_s19 + $0x48] ss:$12 sps:$4 sm:$0xff]  }
 0x37c   : > { %v1283_v59 = vpop.permute.xlu0 %1282  ;;  %1731 = vmatprep.subr.bf16.mxu0 %v1690_v40  ;;  %v1287_v6 = vpop.permute.xlu1 %1286  ;;  %v6747_v40 = vld [vmem:[#allocation62_spill] sm:$0xff]  ;;  %v1405_v47 = vsel %vm1402_vm15, %v1396_v22, %v1110_v51  ;;  %v1459_v20 = vsel %vm1402_vm15, %v1451_v58, %v5379_v33  ;;  %v1394_v52 = vsel %vm1393_vm14, %v5220_v39, %v6755_v23  ;;  %v3735_v51 = vld [vmem:[%s6503_s5] sm:$0xff]   ;;  %v6757_v53 = vmov 0  }
 0x37d   : > { %1732 = vmatpush1.bf16.msra.mxu0 %v1689_v16  ;;  %v1310_v30 = vsel %vm1308_vm0, %v6740_v46, %v1283_v59  ;;  %v1430_v18 = vsel %vm1366_vm10, %v1422_v29, %v6747_v40  ;;  %v1311_v54 = vsel %vm1308_vm0, %v6748_v42, %v1287_v6  ;;  %v1406_v16 = vsel %vm1402_vm15, %v1397_v44, %v1111_v9  ;;  %v3736_v40 = vld [vmem:[%s6503_s5 + $0x8] sm:$0xff]  }
 0x37e   : > { %1733 = vmatprep.subr.bf16.mxu0 %v1688_v57  ;;  %v1438_v32 = vsel %vm1375_vm11, %v1430_v18, %v6750_v31  ;;  %v1452_v19 = vsel %vm1393_vm14, %v1444_v48, %v1310_v30  ;;  %v6754_v57 = vld [vmem:[#allocation28_spill] sm:$0xff]  ;;  %v1453_v11 = vsel %vm1393_vm14, %v1445_v17, %v1311_v54  ;;  %v1673_v38 = vmul.f32 %v5216_v37, %v1406_v16  ;;  %v3737_v16 = vld [vmem:[%s6503_s5 + $0x10] sm:$0xff]  }
 0x37f   : > { %v1446_v59 = vsel %vm1384_vm12, %v1438_v32, %v6753_v60  ;;  %v1395_v36 = vsel %vm1393_vm14, %v5236_v13, %v6754_v57  ;;  %v1671_v33 = vmul.f32 %v5216_v37, %v1405_v47  ;;  %v1403_v25 = vsel %vm1402_vm15, %v1394_v52, %v5229_v21  ;;  %v3775_v21 = vld [vmem:[%s4113_s19 + $0x4c] ss:$12 sps:$4 sm:$0xff]  }
 0x380   : > { %v1328_v41 = vpop.permute.xlu0 %1327  ;;  %v1291_v63 = vpop.permute.xlu1 %1290  ;;  %v1404_v13 = vsel %vm1402_vm15, %v1395_v36, %v5245_v56  ;;  %v1668_v12 = vmul.f32 %v5238_v24, %v1459_v20  ;;  %v1667_v46 = vmul.f32 %v5216_v37, %v1403_v25  ;;  %v5544_v25 = vld [vmem:[#allocation5 + $0x20] ss:$12 sps:$4 sm:$0xff]  }
 0x381   : > { %v1312_v14 = vsel %vm1308_vm0, %v6749_v2, %v1291_v63  ;;  %1734 = vmatpush1.bf16.msra.mxu0 %v1687_v26  ;;  %v1460_v6 = vsel %vm1402_vm15, %v1452_v19, %v1328_v41  ;;  %v1669_v9 = vmul.f32 %v5216_v37, %v1404_v13  ;;  %v1685_v26 = vpack.c.bf16 %v1673_v38, %v1671_v33  ;;  %v3778_v37 = vld [vmem:[%s4113_s19 + $0x30] ss:$12 sps:$4 sm:$0xff]  }
 0x382   : > { %v1454_v62 = vsel %vm1393_vm14, %v1446_v59, %v1312_v14  ;;  %v1670_v50 = vmul.f32 %v5238_v24, %v1460_v6  ;;  %v3738_v59 = vld [vmem:[%s6503_s5 + $0x18] sm:$0xff]  }
 0x383   : > { %v1683_v27 = vpack.c.bf16 %v1669_v9, %v1667_v46  ;;  %v3781_v46 = vld [vmem:[#allocation5 + $0x38] ss:$12 sps:$4 sm:$0xff]  }
 0x384   : > { %v1330_v28 = vpop.permute.xlu0 %1329  ;;  %v1332_v35 = vpop.permute.xlu1 %1331  ;;  %v1684_v39 = vpack.c.bf16 %v1670_v50, %v1668_v12  ;;  %v6760_v12 = vld [vmem:[#allocation15_spill] sm:$0xff] }
 0x385   : > { %v1461_v1 = vsel %vm1402_vm15, %v1453_v11, %v1330_v28  ;;  %v1462_v48 = vsel %vm1402_vm15, %v1454_v62, %v1332_v35 }
 0x386   : > { %v1672_v8 = vmul.f32 %v5238_v24, %v1461_v1  ;;  %v1674_v34 = vmul.f32 %v5238_v24, %v1462_v48  ;;  %v5535_v1 = vld [vmem:[#allocation5 + $0x8] ss:$12 sps:$4 sm:$0xff]  }
 0x387   : > { %v6758_v48 = vld [vmem:[#allocation13_spill] sm:$0xff] }
 0x388   : > { %v2058_v43 = vpop.permute.xlu0 %2057  ;;  %v1918_v56 = vpop.permute.xlu1 %1917  ;;  %v1686_v5 = vpack.c.bf16 %v1674_v34, %v1672_v8  ;;  %v6759_v34 = vld [vmem:[#allocation14_spill] sm:$0xff] }
 0x389   : > { %v1929_v15 = vsel %vm394_vm2, %v1918_v56, %v6756_v45 }
 0x38a   : > { %1735 = vmatprep.subr.bf16.mxu0 %v1686_v5  ;;  %2104 = vmatpush1.bf16.msra.mxu1 %v1929_v15 }
 0x38b   : > { %1736 = vmatpush1.bf16.msra.mxu0 %v1685_v26  ;;  %2105 = vmatprep.subr.bf16.mxu1 %v3775_v21  ;;  %v6761_v26 = vld [vmem:[#allocation16_spill] sm:$0xff]  ;;  %v6762_v21 = vld [vmem:[#allocation17_spill] sm:$0xff] }
 0x38c   : > { %v2056_v24 = vpop.permute.xlu0 %2055  ;;  %1737 = vmatprep.subr.bf16.mxu0 %v1684_v39  ;;  %v2060_v30 = vpop.permute.xlu1 %2059 }
 0x38d   : > { %v2064_v55 = vsel %vm532_vm3, %v2058_v43, %v2060_v30  ;;  %v2063_v63 = vsel %vm532_vm3, %v2056_v24, %v2058_v43 }
 0x38e   : > { %2106 = vmatpush1.bf16.msra.mxu1 %v3776_v61  ;;  %v3782_v61 = vld [vmem:[#allocation5] ss:$12 sps:$4 sm:$0xff]  }
 0x38f   : > { %1738 = vmatpush1.bf16.msra.mxu0 %v1683_v27  ;;  %2107 = vmatprep.subr.bf16.mxu1 %v3777_v0  ;;  %v6763_v27 = vld [vmem:[#allocation19_spill] sm:$0xff]  ;;  %v3784_v0 = vld [vmem:[%s4113_s19 + $0x50] ss:$12 sps:$4 sm:$0xff]  }
 0x390   : > { %v2054_v3 = vpop.permute.xlu0 %2053  ;;  %v2052_v10 = vpop.permute.xlu1 %2051 }
 0x391   : > { %v2062_v44 = vsel %vm532_vm3, %v2052_v10, %v2054_v3 }
 0x392   : > { %3412 = vmatmul.mubr.msk.bf16.vlgmr.msra.gmra.mxu0 %vm1375_vm11, %v3735_v51  ;;  %2108 = vmatpush1.bf16.msra.mxu1 %v3778_v37  ;;  %v3783_v51 = vld [vmem:[#allocation5 + $0x50] ss:$12 sps:$4 sm:$0xff]   ;;  %v3787_v37 = vld [vmem:[%s4113_s19 + $0x38] ss:$12 sps:$4 sm:$0xff]   ;;  %s6776_s19 = smov 110  }
 0x393   : > { %2109 = vmatprep.subr.bf16.mxu1 %v2064_v55  ;;  %1765 = vmatprep.mubr.bf16.mxu0 %v6757_v53  ;;  %v6764_v55 = vld [vmem:[#allocation11_spill] sm:$0xff] }
 0x394   : > { %v5501_v29 = vpop.permute.xlu0 %2081  ;;  %v2080_v41 = vpop.permute.xlu1 %2079 }
 0x395   : > { %v2086_v7 = vsel %vm555_vm4, %v2080_v41, %v5501_v29 }
 0x396   : > { %2110 = vmatpush2.bf16.msra.mxu1 %v2063_v63  ;;  %2178 = vmatprep.subr.bf16.mxu0 %v2086_v7  ;;  %v3789_v63 = vld [vmem:[#allocation5 + $0x34] ss:$12 sps:$4 sm:$0xff]   ;;  %v3790_v7 = vld [vmem:[#allocation5 + $0x30] ss:$12 sps:$4 sm:$0xff]  }
 0x397   : > { %2111 = vmatprep.subr.bf16.mxu1 %v2062_v44  ;;  %v3791_v44 = vld [vmem:[#allocation5 + $0x4c] ss:$12 sps:$4 sm:$0xff]  }
 0x398   : > { %v2078_v18 = vpop.permute.xlu0 %2077  ;;  %v2050_v42 = vpop.permute.xlu1 %2049 }
 0x399   : > { %v2085_v54 = vsel %vm555_vm4, %v2078_v18, %v2080_v41  ;;  %v2061_v2 = vsel %vm532_vm3, %v2050_v42, %v2052_v10  ;;  %v3786_v10 = vld [vmem:[#allocation5 + $0x1c] ss:$12 sps:$4 sm:$0xff]   ;;  %v3788_v41 = vld [vmem:[#allocation5 + $0x18] ss:$12 sps:$4 sm:$0xff]  }
 0x39a   : > { %3413 = vmatmul.mubr.msk.bf16.gmra.mxu0 %vm1375_vm11, %v3736_v40  ;;  %2112 = vmatpush2.bf16.msra.mxu1 %v2061_v2  ;;  %v3792_v40 = vld [vmem:[#allocation5 + $0x48] ss:$12 sps:$4 sm:$0xff]   ;;  %v3793_v18 = vld [vmem:[%s6502_s4] sm:$0xff]  }
 0x39b   : > { %2179 = vmatpush1.bf16.msra.mxu0 %v2085_v54  ;;  %1775 = vmatprep.mubr.bf16.mxu0 %v6757_v53 }
 0x39c   : > { %v2038_v14 = vpop.permute.xlu0 %2037  ;;  %v2036_v31 = vpop.permute.xlu1 %2035 }
 0x39d   : > { %v2042_v32 = vsel %vm509_vm5, %v2036_v31, %v2038_v14 }
 0x39e   : > { %2113 = vmatprep.subr.bf16.mxu1 %v2042_v32 }
 0x3a0   : > { %v5518_v58 = vpop.permute.xlu0 %2075  ;;  %v2074_v19 = vpop.permute.xlu1 %2073 }
 0x3a1   : > { %v2084_v49 = vsel %vm555_vm4, %v2074_v19, %v5518_v58 }
 0x3a2   : > { %3414 = vmatmul.mubr.msk.bf16.gmra.mxu0 %vm1375_vm11, %v3737_v16  ;;  %2180 = vmatprep.subr.bf16.mxu0 %v2084_v49 }
 0x3a3   : > { %1785 = vmatprep.mubr.bf16.mxu0 %v6757_v53 }
 0x3a4   : > { %v2072_v22 = vpop.permute.xlu0 %2071  ;;  %v2034_v4 = vpop.permute.xlu1 %2033 }
 0x3a5   : > { %v2083_v17 = vsel %vm555_vm4, %v2072_v22, %v2074_v19  ;;  %v2041_v60 = vsel %vm509_vm5, %v2034_v4, %v2036_v31 }
 0x3a6   : > { %2114 = vmatpush2.bf16.msra.mxu1 %v2041_v60  ;;  %2181 = vmatpush1.bf16.msra.mxu0 %v2083_v17 }
 0x3a7   : > { %3515 = vmatprep.subr.bf16.mxu0 %v2060_v30 }
 0x3a8   : > { %v2032_v6 = vpop.permute.xlu0 %2031  ;;  %v2030_v57 = vpop.permute.xlu1 %2029 }
 0x3a9   : > { %v2040_v36 = vsel %vm509_vm5, %v2030_v57, %v2032_v6 }
 0x3aa   : > { %3415 = vmatmul.mubr.msk.bf16.gmra.mxu0 %vm1375_vm11, %v3738_v59  ;;  %2115 = vmatprep.subr.bf16.mxu1 %v2040_v36 }
 0x3ab   : > { %2198 = vmatprep.mubr.bf16.mxu0 %v6757_v53 }
 0x3ac   : > { %v2014_v47 = vpop.permute.xlu0 %2013  ;;  %v2028_v28 = vpop.permute.xlu1 %2027 }
 0x3ad   : > { %v2039_v11 = vsel %vm509_vm5, %v2028_v28, %v2030_v57 }
 0x3ae   : > { %2116 = vmatpush2.bf16.msra.mxu1 %v2039_v11 }
 0x3b0   : > { %v2012_v62 = vpop.permute.xlu0 %2011  ;;  %v2016_v35 = vpop.permute.xlu1 %2015 }
 0x3b1   : > { %v2019_v38 = vsel %vm486_vm7, %v2012_v62, %v2014_v47  ;;  %v2020_v20 = vsel %vm486_vm7, %v2014_v47, %v2016_v35 }
 0x3b2   : > { %2117 = vmatprep.subr.bf16.mxu1 %v2020_v20  ;;  %3430 = vmatmul.mubr.msk.bf16.vlgmr.msra.gmra.mxu0 %vm626_vm6, %v5535_v1 }
 0x3b3   : > { %3516 = vmatpush3.bf16.msra.mxu0 %v6758_v48  ;;  %2118 = vmatpush2.bf16.msra.mxu1 %v2019_v38 }
 0x3b4   : > { %3517 = vmatprep.subr.bf16.mxu0 %v2054_v3  ;;  %v2010_v13 = vpop.permute.xlu0 %2009  ;;  %v2008_v50 = vpop.permute.xlu1 %2007  ;;  %2208 = vmatprep.mubr.bf16.mxu0 %v6757_v53  ;;  %v3785_v3 = vld [vmem:[#allocation5 + $0x4] ss:$12 sps:$4 sm:$0xff]  }
 0x3b5   : > { %v2018_v8 = vsel %vm486_vm7, %v2008_v50, %v2010_v13 }
 0x3b6   : > { %2119 = vmatprep.subr.bf16.mxu1 %v2018_v8 }
 0x3b7   : > { %3518 = vmatpush3.bf16.msra.mxu0 %v6759_v34 }
 0x3b8   : > { %3519 = vmatprep.subr.bf16.mxu0 %v2038_v14  ;;  %v1992_v23 = vpop.permute.xlu0 %1991  ;;  %v2006_v52 = vpop.permute.xlu1 %2005 }
 0x3b9   : > { %v2017_v33 = vsel %vm486_vm7, %v2006_v52, %v2008_v50 }
 0x3ba   : > { %2120 = vmatpush2.bf16.msra.mxu1 %v2017_v33  ;;  %3431 = vmatmul.mubr.msk.bf16.gmra.mxu0 %vm626_vm6, %v5544_v25 }
 0x3bb   : > { %3520 = vmatpush3.bf16.msra.mxu0 %v6760_v12  ;;  %2218 = vmatprep.mubr.bf16.mxu0 %v6757_v53 }
 0x3bc   : > { %3521 = vmatprep.subr.bf16.mxu0 %v2032_v6  ;;  %v1990_v43 = vpop.permute.xlu0 %1989  ;;  %v1994_v56 = vpop.permute.xlu1 %1993 }
 0x3bd   : > { %v1997_v5 = vsel %vm463_vm8, %v1990_v43, %v1992_v23  ;;  %v1998_v9 = vsel %vm463_vm8, %v1992_v23, %v1994_v56 }
 0x3be   : > { %2121 = vmatprep.subr.bf16.mxu1 %v1998_v9 }
 0x3bf   : > { %3522 = vmatpush3.bf16.msra.mxu0 %v6761_v26  ;;  %2122 = vmatpush2.bf16.msra.mxu1 %v1997_v5 }
 0x3c0   : > { %3523 = vmatprep.subr.bf16.mxu0 %v2016_v35  ;;  %v1988_v45 = vpop.permute.xlu0 %1987  ;;  %v1986_v15 = vpop.permute.xlu1 %1985 }
 0x3c1   : > { %v1996_v39 = vsel %vm463_vm8, %v1986_v15, %v1988_v45 }
 0x3c2   : > { %2123 = vmatprep.subr.bf16.mxu1 %v1996_v39  ;;  %3432 = vmatmul.mubr.msk.bf16.gmra.mxu0 %vm626_vm6, %v3781_v46 }
 0x3c3   : > { %3524 = vmatpush3.bf16.msra.mxu0 %v6762_v21  ;;  %2228 = vmatprep.mubr.bf16.mxu0 %v6757_v53 }
 0x3c4   : > { %3525 = vmatprep.subr.bf16.mxu0 %v2010_v13  ;;  %v1984_v24 = vpop.permute.xlu1 %1983 }
 0x3c5   : > { %v1995_v30 = vsel %vm463_vm8, %v1984_v24, %v1986_v15 }
 0x3c6   : > { %2124 = vmatpush2.bf16.msra.mxu1 %v1995_v30 }
 0x3c7   : > { %3526 = vmatpush3.bf16.msra.mxu0 %v6763_v27  ;;  %3573 = vmatprep.subr.bf16.mxu1 %v5501_v29 }
 0x3c8   : > { %3527 = vmatprep.subr.bf16.mxu0 %v1994_v56 }
 0x3c9   : > { %2126 = vmatmul.mubr.bf16.vlgmr.msra.gmra.mxu1 %v3782_v61 }
 0x3ca   : > { %3433 = vmatmul.mubr.msk.bf16.gmra.mxu0 %vm626_vm6, %v3783_v51  ;;  %3574 = vmatpush3.bf16.msra.mxu1 %v5501_v29  ;;  %v6765_v29 = vld [vmem:[#allocation12_spill] sm:$0xff] }
 0x3cb   : > { %3528 = vmatpush3.bf16.msra.mxu0 %v3784_v0  ;;  %3575 = vmatprep.subr.bf16.mxu1 %v5518_v58 }
 0x3cc   : > { %3529 = vmatprep.subr.bf16.mxu0 %v1988_v45  ;;  %2271 = vmatprep.mubr.bf16.mxu0 %v3785_v3 }
 0x3cd   : > { %2135 = vmatprep.mubr.bf16.mxu1 %v3786_v10 }
 0x3ce   : > { %3576 = vmatpush3.bf16.msra.mxu1 %v5518_v58 }
 0x3cf   : > { %3530 = vmatpush3.bf16.msra.mxu0 %v3787_v37 }
 0x3d0   : > { %3014 = vmatprep.subr.bf16.mxu0 %v6764_v55 }
 0x3d1   : > { %2136 = vmatmul.mubr.bf16.gmra.mxu1 %v3788_v41 }
 0x3d2   : > { %2272 = vmatmul.mubr.bf16.vlgmr.msra.gmra.mxu0 %v3782_v61  ;;  %2145 = vmatprep.mubr.bf16.mxu1 %v3789_v63 }
 0x3d3   : > { %3015 = vmatpush1.bf16.msra.mxu0 %v6765_v29  ;;  %2279 = vmatprep.mubr.bf16.mxu0 %v3786_v10 }
 0x3d9   : > { %2146 = vmatmul.mubr.bf16.gmra.mxu1 %v3790_v7 }
 0x3da   : > { %2280 = vmatmul.mubr.bf16.gmra.mxu0 %v3788_v41  ;;  %2155 = vmatprep.mubr.bf16.mxu1 %v3791_v44 }
 0x3db   : > { %2287 = vmatprep.mubr.bf16.mxu0 %v3789_v63 }
 0x3e1   : > { %2156 = vmatmul.mubr.bf16.gmra.mxu1 %v3792_v40 }
 0x3e2   : > { %2288 = vmatmul.mubr.bf16.gmra.mxu0 %v3790_v7  ;;  %3577 = vmatprep.mubr.msk.bf16.mxu1 %vm626_vm6, %v5535_v1 }
 0x3e3   : > { %2295 = vmatprep.mubr.bf16.mxu0 %v3791_v44 }
 0x3e9   : > { %3578 = vmatmul.mubr.msk.bf16.vlgmr.msra.gmra.mxu1 %vm626_vm6, %v5544_v25 }
 0x3ea   : > { %2296 = vmatmul.mubr.bf16.gmra.mxu0 %v3792_v40  ;;  %3581 = vmatprep.mubr.msk.bf16.mxu1 %vm626_vm6, %v3781_v46 }
 0x3eb   : > { %3032 = vmatprep.mubr.bf16.mxu0 %v6757_v53 }
 0x3f1   : > { %3582 = vmatmul.mubr.msk.bf16.gmra.mxu1 %vm626_vm6, %v3783_v51 }
 0x3f2   : > { %3439 = vmatmul.mubr.msk.bf16.vlgmr.msra.gmra.mxu0 %vm1349_vm9, %v3793_v18  ;;  %3135 = vmatprep.mubr.bf16.mxu1 %v6757_v53 }
 0x452   : > { %v5580_v42 = vpop.f32.mrf.mxu0 }
 0x454   : > { %v5582_v54 = vpop.f32.mrf.mxu0 }
 0x456   : > { %v5584_v2 = vpop.f32.mrf.mxu0 }
 0x458   : > { %v5586_v14 = vpop.f32.mrf.mxu0 }
 0x45a   : > { %v5588_v31 = vpop.f32.mrf.mxu0 }
 0x45c   : > { %v5590_v32 = vpop.f32.mrf.mxu0 }
 0x45e   : > { %v5592_v16 = vpop.f32.mrf.mxu0 }
 0x460   : > { %v5594_v58 = vpop.f32.mrf.mxu0 }
 0x462   : > { %v5596_v19 = vpop.f32.mrf.mxu0 }
 0x463   : > { %6766 = vst [vmem:[#allocation69_spill] sm:$0xff] %v5596_v19 }
 0x464   : > { %v5598_v49 = vpop.f32.mrf.mxu0 }
 0x465   : > { %6767 = vst [vmem:[#allocation74_spill] sm:$0xff] %v5598_v49 }
 0x466   : > { %v5600_v22 = vpop.f32.mrf.mxu0 }
 0x467   : > { %6768 = vst [vmem:[#allocation29_spill] sm:$0xff] %v5600_v22 }
 0x468   : > { %v5602_v4 = vpop.f32.mrf.mxu0 }
 0x469   : > { %6769 = vst [vmem:[#allocation77_spill] sm:$0xff] %v5602_v4 }
 0x46a   : > { %v5604_v17 = vpop.f32.mrf.mxu0 }
 0x46b   : > { %6770 = vst [vmem:[#allocation70_spill] sm:$0xff] %v5604_v17 }
 0x46c   : > { %v5606_v60 = vpop.f32.mrf.mxu0 }
 0x46d   : > { %6771 = vst [vmem:[#allocation75_spill] sm:$0xff] %v5606_v60 }
 0x46e   : > { %v5608_v59 = vpop.f32.mrf.mxu0 }
 0x46f   : > { %6772 = vst [vmem:[#allocation66_spill] sm:$0xff] %v5608_v59 }
 0x470   : > { %v5610_v6 = vpop.f32.mrf.mxu0 }
 0x471   : > { %6773 = vst [vmem:[#allocation68_spill] sm:$0xff] %v5610_v6 }
 0x472   : > { %v2200_v57 = vpop.f32.mrf.mxu0 }
 0x474   : > { %v2202_v36 = vpop.f32.mrf.mxu0 }
 0x476   : > { %v2204_v62 = vpop.f32.mrf.mxu0 }
 0x478   : > { %v2206_v48 = vpop.f32.mrf.mxu0 }
 0x47a   : > { %v2210_v50 = vpop.f32.mrf.mxu0 }
 0x47c   : > { %v2212_v8 = vpop.f32.mrf.mxu0 }
 0x47e   : > { %v2214_v34 = vpop.f32.mrf.mxu0 }
 0x480   : > { %v2216_v23 = vpop.f32.mrf.mxu0 }
 0x482   : > { %v5666_v33 = vpop.f32.mrf.mxu0 }
 0x484   : > { %v2222_v12 = vpop.f32.mrf.mxu0 }
 0x486   : > { %v2224_v5 = vpop.f32.mrf.mxu0 }
 0x488   : > { %v5683_v45 = vpop.f32.mrf.mxu0 }
 0x489   : > { %v2127_v47 = vpop.f32.mrf.mxu1 }
 0x48a   : > { %v5612_v28 = vadd.f32 %v2200_v57, %v2127_v47  ;;  %v5689_v15 = vpop.f32.mrf.mxu0 }
 0x48b   : > { %v2129_v11 = vpop.f32.mrf.mxu1 }
 0x48c   : > { %2377 = vrot.lane.b32.xlu0 %v5612_v28, %s6606_s20  ;;  %v5638_v20 = vadd.f32 %v2202_v36, %v2129_v11  ;;  %v5695_v39 = vpop.f32.mrf.mxu0 }
 0x48d   : > { %v2131_v35 = vpop.f32.mrf.mxu1 }
 0x48e   : > { %v5616_v38 = vadd.f32 %v2204_v62, %v2131_v35  ;;  %v5701_v46 = vpop.f32.mrf.mxu0 }
 0x48f   : > { %v2133_v1 = vpop.f32.mrf.mxu1 }
 0x490   : > { %2401 = vrot.lane.b32.xlu0 %v5612_v28, %s6774_s0  ;;  %2379 = vrot.lane.b32.xlu1 %v5616_v38, %s6606_s20  ;;  %v5644_v13 = vadd.f32 %v2206_v48, %v2133_v1  ;;  %v5707_v21 = vpop.f32.mrf.mxu0 }
 0x491   : > { %v2137_v52 = vpop.f32.mrf.mxu1 }
 0x492   : > { %6775 = vst [vmem:[#allocation71_spill] sm:$0xff] %v5644_v13  ;;  %v5675_v9 = vadd.f32 %v2210_v50, %v2137_v52  ;;  %v5713_v30 = vpop.f32.mrf.mxu0 }
 0x493   : > { %v2139_v25 = vpop.f32.mrf.mxu1 }
 0x494   : > { %2425 = vrot.lane.b32.xlu0 %v5612_v28, %s6626_s10  ;;  %2403 = vrot.lane.b32.xlu1 %v5616_v38, %s6774_s0  ;;  %v2213_v43 = vadd.f32 %v2212_v8, %v2139_v25  ;;  %v5718_v61 = vpop.f32.mrf.mxu0 }
 0x495   : > { %v2141_v56 = vpop.f32.mrf.mxu1 }
 0x496   : > { %v5677_v26 = vadd.f32 %v2214_v34, %v2141_v56  ;;  %v5722_v51 = vpop.f32.mrf.mxu0 }
 0x497   : > { %v2143_v24 = vpop.f32.mrf.mxu1 }
 0x498   : > { %2449 = vrot.lane.b32.xlu0 %v5612_v28, %s6608_s16  ;;  %2427 = vrot.lane.b32.xlu1 %v5616_v38, %s6626_s10  ;;  %v2217_v27 = vadd.f32 %v2216_v23, %v2143_v24  ;;  %v5726_v0 = vpop.f32.mrf.mxu0 }
 0x499   : > { %v2147_v37 = vpop.f32.mrf.mxu1 }
 0x49a   : > { %v5730_v3 = vpop.f32.mrf.mxu0  ;;  %v5767_v47 = vadd.f32 %v5666_v33, %v2147_v37 }
 0x49b   : > { %v2149_v41 = vpop.f32.mrf.mxu1 }
 0x49c   : > { %2473 = vrot.lane.b32.xlu0 %v5612_v28, %s6600_s11  ;;  %2451 = vrot.lane.b32.xlu1 %v5616_v38, %s6608_s16  ;;  %v5734_v10 = vpop.f32.mrf.mxu0  ;;  %v5744_v29 = vadd.f32 %v2222_v12, %v2149_v41 }
 0x49d   : > { %v2151_v7 = vpop.f32.mrf.mxu1 }
 0x49e   : > { %v5738_v55 = vpop.f32.mrf.mxu0  ;;  %v5751_v40 = vadd.f32 %v2224_v5, %v2151_v7 }
 0x49f   : > { %v2153_v25 = vpop.f32.mrf.mxu1 }
 0x4a0   : > { %2497 = vrot.lane.b32.xlu0 %v5612_v28, %s6597_s30  ;;  %2475 = vrot.lane.b32.xlu1 %v5616_v38, %s6600_s11  ;;  %v5742_v63 = vpop.f32.mrf.mxu0 }
 0x4a2   : > { %v5749_v44 = vpop.f32.mrf.mxu0 }
 0x4a4   : > { %2577 = vrot.lane.b32.xlu0 %v5638_v20, %s6598_s8  ;;  %2499 = vrot.lane.b32.xlu1 %v5616_v38, %s6597_s30  ;;  %v5757_v18 = vpop.f32.mrf.mxu0 }
 0x4a6   : > { %v5764_v36 = vpop.f32.mrf.mxu0 }
 0x4a8   : > { %2601 = vrot.lane.b32.xlu0 %v5638_v20, %s6776_s19  ;;  %2579 = vrot.lane.b32.xlu1 %v5644_v13, %s6598_s8  ;;  %v5777_v35 = vpop.f32.mrf.mxu0 }
 0x4aa   : > { %v5787_v50 = vpop.f32.mrf.mxu0 }
 0x4ac   : > { %2625 = vrot.lane.b32.xlu0 %v5638_v20, %s6671_s12  ;;  %2603 = vrot.lane.b32.xlu1 %v5644_v13, %s6776_s19  ;;  %v5797_v23 = vpop.f32.mrf.mxu0 }
 0x4ae   : > { %v5807_v12 = vpop.f32.mrf.mxu0 }
 0x4b0   : > { %2649 = vrot.lane.b32.xlu0 %v5638_v20, %s6644_s13  ;;  %2627 = vrot.lane.b32.xlu1 %v5644_v13, %s6671_s12  ;;  %v5820_v24 = vpop.f32.mrf.mxu0 }
 0x4b4   : > { %2673 = vrot.lane.b32.xlu0 %v5638_v20, %s6599_s14  ;;  %2651 = vrot.lane.b32.xlu1 %v5644_v13, %s6644_s13 }
 0x4b8   : > { %2697 = vrot.lane.b32.xlu0 %v5638_v20, %s6602_s27  ;;  %2675 = vrot.lane.b32.xlu1 %v5644_v13, %s6599_s14 }
 0x4bc   : > { %2729 = vrot.lane.b32.xlu0 %v5638_v20, %s6616_s15  ;;  %2699 = vrot.lane.b32.xlu1 %v5644_v13, %s6602_s27 }
 0x4c0   : > { %2733 = vrot.lane.b32.xlu0 %v5644_v13, %s6616_s15  ;;  %2539 = vrot.lane.b32.xlu1 %v2213_v43, %s6777_s26 }
 0x4c4   : > { %2381 = vrot.lane.b32.xlu0 %v5675_v9, %s6606_s20  ;;  %2383 = vrot.lane.b32.xlu1 %v5677_v26, %s6606_s20 }
 0x4c8   : > { %2405 = vrot.lane.b32.xlu0 %v5675_v9, %s6774_s0  ;;  %2407 = vrot.lane.b32.xlu1 %v5677_v26, %s6774_s0 }
 0x4cc   : > { %2429 = vrot.lane.b32.xlu0 %v5675_v9, %s6626_s10  ;;  %2431 = vrot.lane.b32.xlu1 %v5677_v26, %s6626_s10 }
 0x4d0   : > { %2453 = vrot.lane.b32.xlu0 %v5675_v9, %s6608_s16  ;;  %2455 = vrot.lane.b32.xlu1 %v5677_v26, %s6608_s16 }
 0x4d4   : > { %2477 = vrot.lane.b32.xlu0 %v5675_v9, %s6600_s11  ;;  %2479 = vrot.lane.b32.xlu1 %v5677_v26, %s6600_s11 }
 0x4d8   : > { %2501 = vrot.lane.b32.xlu0 %v5675_v9, %s6597_s30  ;;  %2503 = vrot.lane.b32.xlu1 %v5677_v26, %s6597_s30 }
 0x4dc   : > { %2537 = vrot.lane.b32.xlu0 %v5675_v9, %s6777_s26  ;;  %2583 = vrot.lane.b32.xlu1 %v2217_v27, %s6598_s8 }
 0x4e0   : > { %2581 = vrot.lane.b32.xlu0 %v2213_v43, %s6598_s8  ;;  %2607 = vrot.lane.b32.xlu1 %v2217_v27, %s6776_s19 }
 0x4e4   : > { %2605 = vrot.lane.b32.xlu0 %v2213_v43, %s6776_s19  ;;  %2631 = vrot.lane.b32.xlu1 %v2217_v27, %s6671_s12 }
 0x4e8   : > { %2629 = vrot.lane.b32.xlu0 %v2213_v43, %s6671_s12  ;;  %2655 = vrot.lane.b32.xlu1 %v2217_v27, %s6644_s13 }
 0x4ec   : > { %2653 = vrot.lane.b32.xlu0 %v2213_v43, %s6644_s13  ;;  %2679 = vrot.lane.b32.xlu1 %v2217_v27, %s6599_s14 }
 0x4f0   : > { %2677 = vrot.lane.b32.xlu0 %v2213_v43, %s6599_s14  ;;  %2703 = vrot.lane.b32.xlu1 %v2217_v27, %s6602_s27 }
 0x4f4   : > { %2701 = vrot.lane.b32.xlu0 %v2213_v43, %s6602_s27  ;;  %2543 = vrot.lane.b32.xlu1 %v2217_v27, %s6777_s26 }
 0x4f8   : > { %2737 = vrot.lane.b32.xlu0 %v2213_v43, %s6616_s15  ;;  %2547 = vrot.lane.b32.xlu1 %v5744_v29, %s6777_s26  ;;  %v5810_v43 = vadd.f32 %v5683_v45, %v2153_v25  ;;  %v3034_v45 = vpop.f32.mrf.mxu0 }
 0x4fa   : > { %v5838_v25 = vpop.f32.mrf.mxu0 }
 0x4fb   : > { %6793 = vst [vmem:[#allocation79_spill] sm:$0xff] %v5838_v25 }
 0x4fc   : > { %2541 = vrot.lane.b32.xlu0 %v5677_v26, %s6777_s26  ;;  %2387 = vrot.lane.b32.xlu1 %v5751_v40, %s6606_s20 }
 0x4fe   : > { %v5759_v57 = vpop.permute.xlu0 %2377 }
 0x4ff   : > { %6778 = vst [vmem:[#allocation78_spill] sm:$0xff] %v5759_v57 }
 0x500   : > { %2741 = vrot.lane.b32.xlu0 %v2217_v27, %s6616_s15  ;;  %2411 = vrot.lane.b32.xlu1 %v5751_v40, %s6774_s0 }
 0x502   : > { %v5769_v11 = vpop.permute.xlu0 %2401  ;;  %v5771_v62 = vpop.permute.xlu1 %2379 }
 0x503   : > { %6779 = vst [vmem:[#allocation34_spill] sm:$0xff] %v5769_v11  ;;  %6780 = vst [vmem:[#allocation84_spill] sm:$0xff] %v5771_v62 }
 0x504   : > { %2385 = vrot.lane.b32.xlu0 %v5767_v47, %s6606_s20  ;;  %2435 = vrot.lane.b32.xlu1 %v5751_v40, %s6626_s10 }
 0x506   : > { %v5779_v1 = vpop.permute.xlu0 %2425  ;;  %v5781_v48 = vpop.permute.xlu1 %2403 }
 0x507   : > { %6781 = vst [vmem:[#allocation41_spill] sm:$0xff] %v5779_v1  ;;  %6782 = vst [vmem:[#allocation22_spill] sm:$0xff] %v5781_v48 }
 0x508   : > { %2409 = vrot.lane.b32.xlu0 %v5767_v47, %s6774_s0  ;;  %2459 = vrot.lane.b32.xlu1 %v5751_v40, %s6608_s16 }
 0x50a   : > { %v5789_v8 = vpop.permute.xlu0 %2449  ;;  %v5791_v34 = vpop.permute.xlu1 %2427 }
 0x50b   : > { %6783 = vst [vmem:[#allocation31_spill] sm:$0xff] %v5789_v8  ;;  %6784 = vst [vmem:[#allocation80_spill] sm:$0xff] %v5791_v34 }
 0x50c   : > { %2433 = vrot.lane.b32.xlu0 %v5767_v47, %s6626_s10  ;;  %2483 = vrot.lane.b32.xlu1 %v5751_v40, %s6600_s11 }
 0x50e   : > { %v5799_v52 = vpop.permute.xlu0 %2473  ;;  %v5801_v33 = vpop.permute.xlu1 %2451 }
 0x50f   : > { %6785 = vst [vmem:[#allocation86_spill] sm:$0xff] %v5799_v52  ;;  %6786 = vst [vmem:[#allocation81_spill] sm:$0xff] %v5801_v33  ;;  %v3038_v52 = vpop.f32.mrf.mxu0 }
 0x510   : > { %2457 = vrot.lane.b32.xlu0 %v5767_v47, %s6608_s16  ;;  %2507 = vrot.lane.b32.xlu1 %v5751_v40, %s6597_s30 }
 0x512   : > { %v5812_v56 = vpop.permute.xlu0 %2497  ;;  %v5814_v5 = vpop.permute.xlu1 %2475 }
 0x513   : > { %6787 = vst [vmem:[#allocation88_spill] sm:$0xff] %v5812_v56  ;;  %6788 = vst [vmem:[#allocation83_spill] sm:$0xff] %v5814_v5  ;;  %v3043_v5 = vsub.f32 0.0, %v3034_v45  ;;  %v2157_v45 = vpop.f32.mrf.mxu1 }
 0x514   : > { %2481 = vrot.lane.b32.xlu0 %v5767_v47, %s6600_s11  ;;  %2587 = vrot.lane.b32.xlu1 %v5810_v43, %s6598_s8 }
 0x515   : > { %v3047_v33 = vmul.f32 1.442695, %v3043_v5 }
 0x516   : > { %v5822_v27 = vpop.permute.xlu0 %2577  ;;  %v5824_v37 = vpop.permute.xlu1 %2499 }
 0x517   : > { %6789 = vst [vmem:[#allocation90_spill] sm:$0xff] %v5822_v27  ;;  %6790 = vst [vmem:[#allocation85_spill] sm:$0xff] %v5824_v37  ;;  %3755 = vpow2.f32 %v3047_v33 }
 0x518   : > { %2505 = vrot.lane.b32.xlu0 %v5767_v47, %s6597_s30  ;;  %2611 = vrot.lane.b32.xlu1 %v5810_v43, %s6776_s19 }
 0x51a   : > { %v5830_v41 = vpop.permute.xlu0 %2601  ;;  %v5832_v7 = vpop.permute.xlu1 %2579 }
 0x51b   : > { %6791 = vst [vmem:[#allocation82_spill] sm:$0xff] %v5830_v41  ;;  %6792 = vst [vmem:[#allocation89_spill] sm:$0xff] %v5832_v7  ;;  %v3045_v7 = vsub.f32 0.0, %v3038_v52  ;;  %v2159_v52 = vpop.f32.mrf.mxu1 }
 0x51c   : > { %2545 = vrot.lane.b32.xlu0 %v5767_v47, %s6777_s26  ;;  %2635 = vrot.lane.b32.xlu1 %v5810_v43, %s6671_s12  ;;  %v5873_v5 = vadd.f32 %v5695_v39, %v2159_v52 }
 0x51d   : > { %v2161_v33 = vpop.f32.mrf.mxu1 }
 0x51e   : > { %v5840_v53 = vpop.permute.xlu0 %2625  ;;  %v5842_v56 = vpop.permute.xlu1 %2603 }
 0x51f   : > { %6794 = vst [vmem:[#allocation76_spill] sm:$0xff] %v5840_v53  ;;  %6795 = vst [vmem:[#allocation87_spill] sm:$0xff] %v5842_v56 }
 0x520   : > { %2585 = vrot.lane.b32.xlu0 %v5744_v29, %s6598_s8  ;;  %2659 = vrot.lane.b32.xlu1 %v5810_v43, %s6644_s13 }
 0x522   : > { %v5848_v37 = vpop.permute.xlu0 %2649  ;;  %v5850_v8 = vpop.permute.xlu1 %2627 }
 0x523   : > { %6796 = vst [vmem:[#allocation21_spill] sm:$0xff] %v5848_v37  ;;  %6797 = vst [vmem:[#allocation26_spill] sm:$0xff] %v5850_v8  ;;  %v3051_v8 = vmul.f32 1.442695, %v3045_v7 }
 0x524   : > { %2609 = vrot.lane.b32.xlu0 %v5744_v29, %s6776_s19  ;;  %2683 = vrot.lane.b32.xlu1 %v5810_v43, %s6599_s14 }
 0x525   : > { %3757 = vpow2.f32 %v3051_v8 }
 0x526   : > { %v5856_v56 = vpop.permute.xlu0 %2673  ;;  %v5858_v53 = vpop.permute.xlu1 %2651 }
 0x527   : > { %6798 = vst [vmem:[#allocation72_spill] sm:$0xff] %v5856_v56  ;;  %6799 = vst [vmem:[#allocation73_spill] sm:$0xff] %v5858_v53 }
 0x528   : > { %2633 = vrot.lane.b32.xlu0 %v5744_v29, %s6671_s12  ;;  %2707 = vrot.lane.b32.xlu1 %v5810_v43, %s6602_s27 }
 0x52a   : > { %v5864_v37 = vpop.permute.xlu0 %2697  ;;  %v5866_v1 = vpop.permute.xlu1 %2675 }
 0x52b   : > { %6800 = vst [vmem:[#allocation24_spill] sm:$0xff] %v5864_v37  ;;  %6801 = vst [vmem:[#allocation27_spill] sm:$0xff] %v5866_v1  ;;  %v5884_v1 = vadd.f32 %v5701_v46, %v2161_v33  ;;  %v3756_v46 = vpop.eup %3755 }
 0x52c   : > { %2657 = vrot.lane.b32.xlu0 %v5744_v29, %s6644_s13  ;;  %2551 = vrot.lane.b32.xlu1 %v5810_v43, %s6777_s26  ;;  %v3055_v56 = vadd.f32 1.0, %v3756_v46  ;;  %v5919_v46 = vadd.f32 %v5689_v15, %v2157_v45 }
 0x52e   : > { %v5875_v53 = vpop.permute.xlu0 %2729  ;;  %v5877_v7 = vpop.permute.xlu1 %2699  ;;  %3759 = vrcp.f32 %v3055_v56  ;;  %6805 = vst [vmem:[#allocation35_spill] sm:$0xff] %v5919_v46 }
 0x52f   : > { %6802 = vst [vmem:[#allocation32_spill] sm:$0xff] %v5875_v53  ;;  %6803 = vst [vmem:[#allocation33_spill] sm:$0xff] %v5877_v7 }
 0x530   : > { %2681 = vrot.lane.b32.xlu0 %v5744_v29, %s6599_s14  ;;  %2555 = vrot.lane.b32.xlu1 %v5873_v5, %s6777_s26 }
 0x532   : > { %v5886_v37 = vpop.permute.xlu0 %2733  ;;  %v5888_v8 = vpop.permute.xlu1 %2539 }
 0x533   : > { %6804 = vst [vmem:[#allocation67_spill] sm:$0xff] %v5886_v37  ;;  %v3758_v33 = vpop.eup %3757 }
 0x534   : > { %2705 = vrot.lane.b32.xlu0 %v5744_v29, %s6602_s27  ;;  %2391 = vrot.lane.b32.xlu1 %v5884_v1, %s6606_s20  ;;  %v3057_v53 = vadd.f32 1.0, %v3758_v33  ;;  %v2163_v33 = vpop.f32.mrf.mxu1 }
 0x536   : > { %v5894_v39 = vpop.permute.xlu0 %2381  ;;  %v5896_v52 = vpop.permute.xlu1 %2383  ;;  %3761 = vrcp.f32 %v3057_v53  ;;  %v5938_v53 = vadd.f32 %v5707_v21, %v2163_v33 }
 0x538   : > { %2745 = vrot.lane.b32.xlu0 %v5744_v29, %s6616_s15  ;;  %2415 = vrot.lane.b32.xlu1 %v5884_v1, %s6774_s0 }
 0x53a   : > { %v5902_v7 = vpop.permute.xlu0 %2405  ;;  %v5904_v37 = vpop.permute.xlu1 %2407 }
 0x53b   : > { %v3760_v11 = vpop.eup %3759 }
 0x53c   : > { %2549 = vrot.lane.b32.xlu0 %v5751_v40, %s6777_s26  ;;  %2439 = vrot.lane.b32.xlu1 %v5884_v1, %s6626_s10 }
 0x53e   : > { %v5910_v27 = vpop.permute.xlu0 %2429  ;;  %v5912_v29 = vpop.permute.xlu1 %2431 }
 0x540   : > { %2749 = vrot.lane.b32.xlu0 %v5810_v43, %s6616_s15  ;;  %2463 = vrot.lane.b32.xlu1 %v5884_v1, %s6608_s16 }
 0x542   : > { %v5921_v41 = vpop.permute.xlu0 %2453  ;;  %v5923_v34 = vpop.permute.xlu1 %2455 }
 0x543   : > { %v3762_v48 = vpop.eup %3761 }
 0x544   : > { %2389 = vrot.lane.b32.xlu0 %v5919_v46, %s6606_s20  ;;  %2487 = vrot.lane.b32.xlu1 %v5884_v1, %s6600_s11  ;;  %v3063_v21 = vadd.f32 %v3762_v48, %v3760_v11 }
 0x546   : > { %v5929_v56 = vpop.permute.xlu0 %2477  ;;  %v5931_v43 = vpop.permute.xlu1 %2479  ;;  %v3064_v59 = vrot.slane %v3063_v21, 4 }
 0x548   : > { %2413 = vrot.lane.b32.xlu0 %v5919_v46, %s6774_s0  ;;  %2511 = vrot.lane.b32.xlu1 %v5884_v1, %s6597_s30  ;;  %v3065_v11 = vadd.f32 %v3064_v59, %v3063_v21 }
 0x54a   : > { %v5940_v15 = vpop.permute.xlu0 %2501  ;;  %v5942_v45 = vpop.permute.xlu1 %2503 }
 0x54c   : > { %2437 = vrot.lane.b32.xlu0 %v5919_v46, %s6626_s10  ;;  %2591 = vrot.lane.b32.xlu1 %v5938_v53, %s6598_s8 }
 0x54e   : > { %v5948_v57 = vpop.permute.xlu0 %2537  ;;  %v2584_v62 = vpop.permute.xlu1 %2583 }
 0x550   : > { %2461 = vrot.lane.b32.xlu0 %v5919_v46, %s6608_s16  ;;  %2615 = vrot.lane.b32.xlu1 %v5938_v53, %s6776_s19  ;;  %s3258_s16 = scalar_lea.sflag [#allocation4], %s4109_s7 }
 0x552   : > { %v2582_v33 = vpop.permute.xlu0 %2581  ;;  %v2608_v6 = vpop.permute.xlu1 %2607 }
 0x553   : > { %v2860_v25 = vsel %vm1349_vm9, %v2584_v62, %v2608_v6  ;;  %v3579_v6 = vpop.f32.mrf.mxu1 }
 0x554   : > { %2485 = vrot.lane.b32.xlu0 %v5919_v46, %s6600_s11  ;;  %2639 = vrot.lane.b32.xlu1 %v5938_v53, %s6671_s12  ;;  %s3468_s11 = sshll.u32 %s4008_s25, 12 }
 0x555   : > { %v2338_v21 = vpop.f32.mrf.mxu1 }
 0x556   : > { %v2606_v60 = vpop.permute.xlu0 %2605  ;;  %v2632_v17 = vpop.permute.xlu1 %2631 }
 0x557   : > { %v2859_v4 = vsel %vm1349_vm9, %v2582_v33, %v2606_v60  ;;  %v2868_v22 = vsel %vm626_vm6, %v2860_v25, %v2632_v17  ;;  %v3066_v17 = vrot.slane %v3065_v11, 2 }
 0x558   : > { %2509 = vrot.lane.b32.xlu0 %v5919_v46, %s6597_s30  ;;  %2663 = vrot.lane.b32.xlu1 %v5938_v53, %s6644_s13 }
 0x55a   : > { %v2630_v48 = vpop.permute.xlu0 %2629  ;;  %v2656_v49 = vpop.permute.xlu1 %2655 }
 0x55b   : > { %v2867_v13 = vsel %vm626_vm6, %v2859_v4, %v2630_v48  ;;  %v2876_v19 = vsel %vm1366_vm10, %v2868_v22, %v2656_v49  ;;  %v3067_v49 = vadd.f32 %v3066_v17, %v3065_v11  ;;  %v3533_v22 = vadd.f32 %v5718_v61, %v5713_v30  ;;  %v3580_v48 = vpop.f32.mrf.mxu1 }
 0x55c   : > { %2553 = vrot.lane.b32.xlu0 %v5919_v46, %s6777_s26  ;;  %2687 = vrot.lane.b32.xlu1 %v5938_v53, %s6599_s14  ;;  %v3536_v11 = vadd.f32 %v5726_v0, %v5722_v51  ;;  %v3539_v0 = vadd.f32 %v5734_v10, %v5730_v3  ;;  %v2563_v3 = vsel %vm1107_vm13, %v5948_v57, %v5888_v8 }
 0x55d   : > { %v5989_v17 = vadd.f32 %v3533_v22, %v2338_v21 }
 0x55e   : > { %v2654_v60 = vpop.permute.xlu0 %2653  ;;  %v2680_v62 = vpop.permute.xlu1 %2679 }
 0x55f   : > { %v2875_v25 = vsel %vm1366_vm10, %v2867_v13, %v2654_v60  ;;  %v2884_v59 = vsel %vm1375_vm11, %v2876_v19, %v2680_v62  ;;  %v3068_v19 = vrot.slane %v3067_v49, 1  ;;  %v2341_v60 = vpop.f32.mrf.mxu1 }
 0x560   : > { %2589 = vrot.lane.b32.xlu0 %v5873_v5, %s6598_s8  ;;  %2711 = vrot.lane.b32.xlu1 %v5938_v53, %s6602_s27 }
 0x562   : > { %v2678_v4 = vpop.permute.xlu0 %2677  ;;  %v2704_v33 = vpop.permute.xlu1 %2703 }
 0x563   : > { %v2883_v46 = vsel %vm1375_vm11, %v2875_v25, %v2678_v4  ;;  %v5981_v13 = vsel %vm1384_vm12, %v2884_v59, %v2704_v33  ;;  %v2803_v25 = vsel %vm1349_vm9, %v5675_v9, %v5894_v39  ;;  %v3069_v59 = vadd.f32 %v3068_v19, %v3067_v49 }
 0x564   : > { %2613 = vrot.lane.b32.xlu0 %v5873_v5, %s6776_s19  ;;  %2559 = vrot.lane.b32.xlu1 %v5938_v53, %s6777_s26  ;;  %v2811_v51 = vsel %vm626_vm6, %v2803_v25, %v5902_v7  ;;  %v6010_v39 = vadd.f32 %v3536_v11, %v2341_v60 }
 0x565   : > { %v2819_v9 = vsel %vm1366_vm10, %v2811_v51, %v5910_v27  ;;  %v6031_v27 = vmul.f32 0.0625, %v3069_v59 }
 0x566   : > { %v2702_v30 = vpop.permute.xlu0 %2701  ;;  %v2544_v61 = vpop.permute.xlu1 %2543  ;;  %v2827_v7 = vsel %vm1375_vm11, %v2819_v9, %v5921_v41  ;;  %v3542_v41 = vadd.f32 %v5742_v63, %v5738_v55  ;;  %v3548_v9 = vadd.f32 %v5777_v35, %v5764_v36  ;;  %v1798_v36 = vmul.f32 %v5584_v2, %v5584_v2 }
 0x567   : > { %v5992_v62 = vsel %vm1384_vm12, %v2883_v46, %v2702_v30  ;;  %v2804_v46 = vsel %vm1349_vm9, %v5677_v26, %v5896_v52  ;;  %v2835_v10 = vsel %vm1384_vm12, %v2827_v7, %v5929_v56 }
 0x568   : > { %2637 = vrot.lane.b32.xlu0 %v5873_v5, %s6671_s12  ;;  %2731 = vrot.lane.b32.xlu1 %v5989_v17, %s6616_s15  ;;  %v2812_v49 = vsel %vm626_vm6, %v2804_v46, %v5904_v37  ;;  %v2843_v57 = vsel %vm1393_vm14, %v2835_v10, %v5940_v15  ;;  %v1797_v46 = vmul.f32 %v5582_v54, %v5582_v54  ;;  %s3376_s12 = sshll.u32 %s4109_s7, 8 }
 0x569   : > { %v2820_v26 = vsel %vm1366_vm10, %v2812_v49, %v5912_v29  ;;  %v2851_v52 = vsel %vm1402_vm15, %v2843_v57, %v2563_v3  ;;  %v2347_v29 = vadd.f32 %v3579_v6, %v3539_v0  ;;  %v1796_v0 = vmul.f32 %v5580_v42, %v5580_v42  ;;  %s6390_s19 = scalar_lea.vmem [#allocation7], %s3376_s12 }
 0x56a   : > { %v6012_v21 = vpop.permute.xlu0 %2737  ;;  %v6014_v22 = vpop.permute.xlu1 %2547  ;;  %v2828_v37 = vsel %vm1375_vm11, %v2820_v26, %v5923_v34  ;;  %v6050_v55 = vmul.f32 %v6031_v27, %v2851_v52  ;;  %v1799_v52 = vmul.f32 %v5586_v14, %v5586_v14 }
 0x56b   : > { %v2836_v8 = vsel %vm1384_vm12, %v2828_v37, %v5931_v43  ;;  %v3583_v34 = vpop.f32.mrf.mxu1  ;;  %v2350_v43 = vadd.f32 %v3580_v48, %v3542_v41  ;;  %v3545_v48 = vadd.f32 %v5757_v18, %v5749_v44  ;;  %v1812_v10 = vadd.f32 %v1797_v46, %v1796_v0 }
 0x56c   : > { %2661 = vrot.lane.b32.xlu0 %v5873_v5, %s6644_s13  ;;  %2735 = vrot.lane.b32.xlu1 %v6010_v39, %s6616_s15  ;;  %v2844_v33 = vsel %vm1393_vm14, %v2836_v8, %v5942_v45 }
 0x56d   : > { %v2354_v60 = vpop.f32.mrf.mxu1  ;;  %v1813_v8 = vadd.f32 %v1812_v10, %v1798_v36 }
 0x56e   : > { %v2542_v56 = vpop.permute.xlu0 %2541  ;;  %v2388_v4 = vpop.permute.xlu1 %2387  ;;  %v2355_v44 = vadd.f32 %v3545_v48, %v2354_v60 }
 0x56f   : > { %v2564_v19 = vsel %vm1107_vm13, %v2542_v56, %v2544_v61  ;;  %v2806_v15 = vsel %vm1349_vm9, %v5751_v40, %v2388_v4  ;;  %v3584_v40 = vpop.f32.mrf.mxu1  ;;  %v3551_v56 = vadd.f32 %v5797_v23, %v5787_v50 }
 0x570   : > { %v2852_v11 = vsel %vm1402_vm15, %v2844_v33, %v2564_v19  ;;  %2685 = vrot.lane.b32.xlu0 %v5873_v5, %s6599_s14  ;;  %2739 = vrot.lane.b32.xlu1 %v2347_v29, %s6616_s15  ;;  %s6441_s14 = scalar_lea.hbm %s6504_s6, %s3468_s11 }
 0x571   : > { %v6053_v63 = vmul.f32 %v6031_v27, %v2852_v11  ;;  %v2357_v3 = vpop.f32.mrf.mxu1 }
 0x572   : > { %v6057_v45 = vpop.permute.xlu0 %2741  ;;  %v2412_v6 = vpop.permute.xlu1 %2411  ;;  %v2358_v35 = vadd.f32 %v3548_v9, %v2357_v3 }
 0x573   : > { %v2814_v61 = vsel %vm626_vm6, %v2806_v15, %v2412_v6  ;;  %v3554_v15 = vadd.f32 %v5820_v24, %v5807_v12  ;;  %v2363_v6 = vadd.f32 %v3583_v34, %v3551_v56  ;;  %v1802_v34 = vmul.f32 %v5592_v16, %v5592_v16 }
 0x574   : > { %2709 = vrot.lane.b32.xlu0 %v5873_v5, %s6602_s27  ;;  %2743 = vrot.lane.b32.xlu1 %v2350_v43, %s6616_s15 }
 0x575   : > { %v2366_v48 = vadd.f32 %v3584_v40, %v3554_v15 }
 0x576   : > { %v2386_v25 = vpop.permute.xlu0 %2385  ;;  %v2436_v59 = vpop.permute.xlu1 %2435 }
 0x577   : > { %v2822_v51 = vsel %vm1366_vm10, %v2814_v61, %v2436_v59  ;;  %v2805_v18 = vsel %vm1349_vm9, %v5767_v47, %v2386_v25 }
 0x578   : > { %2753 = vrot.lane.b32.xlu0 %v5873_v5, %s6616_s15  ;;  %2783 = vrot.lane.b32.xlu1 %v2350_v43, %s6653_s29  ;;  %v1800_v43 = vmul.f32 %v5588_v31, %v5588_v31 }
 0x57a   : > { %v2410_v49 = vpop.permute.xlu0 %2409  ;;  %v2460_v7 = vpop.permute.xlu1 %2459 }
 0x57b   : > { %v2813_v5 = vsel %vm626_vm6, %v2805_v18, %v2410_v49  ;;  %v2830_v26 = vsel %vm1375_vm11, %v2822_v51, %v2460_v7  ;;  %v1803_v49 = vmul.f32 %v5594_v58, %v5594_v58 }
 0x57c   : > { %2557 = vrot.lane.b32.xlu0 %v5884_v1, %s6777_s26  ;;  %2747 = vrot.lane.b32.xlu1 %v2355_v44, %s6616_s15 }
 0x57e   : > { %v2434_v37 = vpop.permute.xlu0 %2433  ;;  %v2484_v57 = vpop.permute.xlu1 %2483 }
 0x57f   : > { %v2821_v47 = vsel %vm1366_vm10, %v2813_v5, %v2434_v37  ;;  %v2838_v41 = vsel %vm1384_vm12, %v2830_v26, %v2484_v57  ;;  %v6806_v26 = vld [vmem:[#allocation69_spill] sm:$0xff] }
 0x580   : > { %2757 = vrot.lane.b32.xlu0 %v5938_v53, %s6616_s15  ;;  %2751 = vrot.lane.b32.xlu1 %v2358_v35, %s6616_s15  ;;  %v1814_v53 = vadd.f32 %v1813_v8, %v1799_v52  ;;  %v1804_v10 = vmul.f32 %v6806_v26, %v6806_v26  ;;  %v6808_v8 = vld [vmem:[#allocation74_spill] sm:$0xff] }
 0x582   : > { %v2458_v4 = vpop.permute.xlu0 %2457  ;;  %v2508_v33 = vpop.permute.xlu1 %2507  ;;  %v1815_v60 = vadd.f32 %v1814_v53, %v1800_v43  ;;  %v6809_v53 = vld [vmem:[#allocation29_spill] sm:$0xff] }
 0x583   : > { %v2829_v19 = vsel %vm1375_vm11, %v2821_v47, %v2458_v4  ;;  %v6097_v11 = vsel %vm1393_vm14, %v2838_v41, %v2508_v33  ;;  %v6807_v47 = vld [vmem:[#allocation71_spill] sm:$0xff] }
 0x584   : > { %2781 = vrot.lane.b32.xlu0 %v2347_v29, %s6653_s29  ;;  %2787 = vrot.lane.b32.xlu1 %v2358_v35, %s6653_s29  ;;  %v1801_v29 = vmul.f32 %v5590_v32, %v5590_v32 }
 0x586   : > { %v2482_v50 = vpop.permute.xlu0 %2481  ;;  %v2588_v23 = vpop.permute.xlu1 %2587  ;;  %v1816_v24 = vadd.f32 %v1815_v60, %v1801_v29 }
 0x587   : > { %v2837_v61 = vsel %vm1384_vm12, %v2829_v19, %v2482_v50 }
 0x588   : > { %2785 = vrot.lane.b32.xlu0 %v2355_v44, %s6653_s29  ;;  %2755 = vrot.lane.b32.xlu1 %v2363_v6, %s6616_s15  ;;  %v1817_v18 = vadd.f32 %v1816_v24, %v1802_v34 }
 0x58a   : > { %v2506_v25 = vpop.permute.xlu0 %2505  ;;  %v2612_v59 = vpop.permute.xlu1 %2611 }
 0x58b   : > { %v2845_v51 = vsel %vm1393_vm14, %v2837_v61, %v2506_v25  ;;  %v2862_v12 = vsel %vm1349_vm9, %v2588_v23, %v2612_v59  ;;  %v6810_v23 = vld [vmem:[#allocation77_spill] sm:$0xff]  ;;  %v6811_v59 = vld [vmem:[#allocation70_spill] sm:$0xff] }
 0x58c   : > { %2789 = vrot.lane.b32.xlu0 %v2363_v6, %s6653_s29  ;;  %2759 = vrot.lane.b32.xlu1 %v2366_v48, %s6616_s15  ;;  %v1807_v61 = vmul.f32 %v6810_v23, %v6810_v23  ;;  %s3272_s15 = sshll.u32 %s6390_s19, 4  ;;  %s6443_s15 = int_to_ptr.vmem [resolvable:$true] %s3272_s15 }
 0x58e   : > { %v2546_v0 = vpop.permute.xlu0 %2545  ;;  %v2636_v46 = vpop.permute.xlu1 %2635 }
 0x58f   : > { %v2565_v9 = vsel %vm1107_vm13, %v2546_v0, %v6014_v22  ;;  %v2870_v40 = vsel %vm626_vm6, %v2862_v12, %v2636_v46  ;;  %v1818_v22 = vadd.f32 %v1817_v18, %v1803_v49  ;;  %v6812_v0 = vld [vmem:[#allocation75_spill] sm:$0xff] }
 0x590   : > { %v2853_v44 = vsel %vm1402_vm15, %v2845_v51, %v2565_v9  ;;  %2529 = vrot.lane.b32.xlu0 %v5612_v28, %s6777_s26  ;;  %2791 = vrot.lane.b32.xlu1 %v2366_v48, %s6653_s29  ;;  %v1809_v46 = vmul.f32 %v6812_v0, %v6812_v0  ;;  %v3040_v9 = vpop.f32.mrf.mxu0 }
 0x591   : > { %v1819_v41 = vadd.f32 %v1818_v22, %v1804_v10  ;;  %v3046_v22 = vsub.f32 0.0, %v3040_v9 }
 0x592   : > { %v2586_v7 = vpop.permute.xlu0 %2585  ;;  %v2660_v3 = vpop.permute.xlu1 %2659 }
 0x593   : > { %v2878_v5 = vsel %vm1366_vm10, %v2870_v40, %v2660_v3 }
 0x594   : > { %2533 = vrot.lane.b32.xlu0 %v5616_v38, %s6777_s26  ;;  %2531 = vrot.lane.b32.xlu1 %v5638_v20, %s6777_s26  ;;  %v1805_v20 = vmul.f32 %v6808_v8, %v6808_v8 }
 0x596   : > { %v2610_v36 = vpop.permute.xlu0 %2609  ;;  %v2684_v35 = vpop.permute.xlu1 %2683  ;;  %v1820_v19 = vadd.f32 %v1819_v41, %v1805_v20 }
 0x597   : > { %v2861_v37 = vsel %vm1349_vm9, %v2586_v7, %v2610_v36  ;;  %v2886_v57 = vsel %vm1375_vm11, %v2878_v5, %v2684_v35  ;;  %v6813_v7 = vld [vmem:[#allocation79_spill] sm:$0xff]  ;;  %v6814_v36 = vld [vmem:[#allocation66_spill] sm:$0xff] }
 0x598   : > { %2777 = vrot.lane.b32.xlu0 %v5989_v17, %s6653_s29  ;;  %2535 = vrot.lane.b32.xlu1 %v6807_v47, %s6777_s26  ;;  %v1806_v17 = vmul.f32 %v6809_v53, %v6809_v53  ;;  %v3044_v3 = vsub.f32 0.0, %v6813_v7  ;;  %v1810_v35 = vmul.f32 %v6814_v36, %v6814_v36 }
 0x59a   : > { %v2634_v52 = vpop.permute.xlu0 %2633  ;;  %v2708_v56 = vpop.permute.xlu1 %2707  ;;  %v1821_v50 = vadd.f32 %v1820_v19, %v1806_v17  ;;  %v3049_v47 = vmul.f32 1.442695, %v3044_v3  ;;  %v6176_v17 = vmul.f32 %v6031_v27, %v2853_v44  ;;  %v6816_v44 = vld [vmem:[#allocation35_spill] sm:$0xff] }
 0x59b   : > { %v2869_v4 = vsel %vm626_vm6, %v2861_v37, %v2634_v52  ;;  %v6142_v33 = vsel %vm1384_vm12, %v2886_v57, %v2708_v56  ;;  %v3053_v52 = vmul.f32 1.442695, %v3046_v22 }
 0x59c   : > { %2779 = vrot.lane.b32.xlu1 %v6010_v39, %s6653_s29  ;;  %v1822_v25 = vadd.f32 %v1821_v50, %v1807_v61  ;;  %v1808_v39 = vmul.f32 %v6811_v59, %v6811_v59  ;;  %3763 = vpow2.f32 %v3049_v47 }
 0x59d   : > { %3765 = vpow2.f32 %v3053_v52 }
 0x59e   : > { %v2658_v43 = vpop.permute.xlu0 %2657  ;;  %v2552_v15 = vpop.permute.xlu1 %2551  ;;  %v1823_v34 = vadd.f32 %v1822_v25, %v1808_v39 }
 0x59f   : > { %v2877_v6 = vsel %vm1366_vm10, %v2869_v4, %v2658_v43  ;;  %v6815_v4 = vld [vmem:[#allocation68_spill] sm:$0xff] }
 0x5a0   : > { %v1824_v10 = vadd.f32 %v1823_v34, %v1809_v46  ;;  %v1811_v19 = vmul.f32 %v6815_v4, %v6815_v4 }
 0x5a2   : > { %v2682_v60 = vpop.permute.xlu0 %2681  ;;  %v6151_v29 = vpop.permute.xlu1 %2555  ;;  %v1825_v56 = vadd.f32 %v1824_v10, %v1810_v35 }
 0x5a3   : > { %v2885_v48 = vsel %vm1375_vm11, %v2877_v6, %v2682_v60 }
 0x5a4   : > { %v1826_v61 = vadd.f32 %v1825_v56, %v1811_v19 }
 0x5a6   : > { %v2706_v51 = vpop.permute.xlu0 %2705  ;;  %v2392_v12 = vpop.permute.xlu1 %2391 }
 0x5a7   : > { %v6157_v24 = vsel %vm1384_vm12, %v2885_v48, %v2706_v51  ;;  %v2808_v40 = vsel %vm1349_vm9, %v5884_v1, %v2392_v12 }
 0x5aa   : > { %v6163_v18 = vpop.permute.xlu0 %2745  ;;  %v2416_v49 = vpop.permute.xlu1 %2415 }
 0x5ab   : > { %v2816_v5 = vsel %vm626_vm6, %v2808_v40, %v2416_v49  ;;  %v3764_v49 = vpop.eup %3763 }
 0x5ac   : > { %v3766_v7 = vpop.eup %3765  ;;  %v3056_v22 = vadd.f32 1.0, %v3764_v49 }
 0x5ad   : > { %v3058_v10 = vadd.f32 1.0, %v3766_v7 }
 0x5ae   : > { %v2550_v37 = vpop.permute.xlu0 %2549  ;;  %v2440_v57 = vpop.permute.xlu1 %2439  ;;  %3767 = vrcp.f32 %v3056_v22 }
 0x5af   : > { %v2566_v41 = vsel %vm1107_vm13, %v2550_v37, %v2552_v15  ;;  %v2824_v20 = vsel %vm1366_vm10, %v2816_v5, %v2440_v57  ;;  %3769 = vrcp.f32 %v3058_v10 }
 0x5b0   : > { %v2854_v1 = vsel %vm1402_vm15, %v6097_v11, %v2566_v41 }
 0x5b1   : > { %v6179_v43 = vmul.f32 %v6031_v27, %v2854_v1 }
 0x5b2   : > { %v6181_v6 = vpop.permute.xlu0 %2749  ;;  %v2464_v50 = vpop.permute.xlu1 %2463 }
 0x5b3   : > { %v2832_v11 = vsel %vm1375_vm11, %v2824_v20, %v2464_v50 }
 0x5b6   : > { %v2390_v60 = vpop.permute.xlu0 %2389  ;;  %v2488_v48 = vpop.permute.xlu1 %2487 }
 0x5b7   : > { %v2840_v25 = vsel %vm1384_vm12, %v2832_v11, %v2488_v48  ;;  %1827 = vadd.xlane.f32.xlu0 %v1826_v61  ;;  %v2807_v39 = vsel %vm1349_vm9, %v6816_v44, %v2390_v60 }
 0x5ba   : > { %v2414_v51 = vpop.permute.xlu0 %2413  ;;  %v2512_v12 = vpop.permute.xlu1 %2511 }
 0x5bb   : > { %v2815_v34 = vsel %vm626_vm6, %v2807_v39, %v2414_v51  ;;  %v2848_v46 = vsel %vm1393_vm14, %v2840_v25, %v2512_v12  ;;  %v3768_v48 = vpop.eup %3767 }
 0x5bc   : > { %v3770_v25 = vpop.eup %3769 }
 0x5bd   : > { %v3070_v51 = vadd.f32 %v3770_v25, %v3768_v48 }
 0x5be   : > { %v2438_v9 = vpop.permute.xlu0 %2437  ;;  %v6191_v40 = vpop.permute.xlu1 %2591 }
 0x5bf   : > { %v2823_v41 = vsel %vm1366_vm10, %v2815_v34, %v2438_v9  ;;  %v3071_v9 = vrot.slane %v3070_v51, 4 }
 0x5c2   : > { %v2462_v3 = vpop.permute.xlu0 %2461  ;;  %v6193_v5 = vpop.permute.xlu1 %2615 }
 0x5c3   : > { %v2831_v20 = vsel %vm1375_vm11, %v2823_v41, %v2462_v3  ;;  %v3072_v3 = vadd.f32 %v3071_v9, %v3070_v51 }
 0x5c5   : > { %v3073_v10 = vrot.slane %v3072_v3, 2 }
 0x5c6   : > { %v2486_v35 = vpop.permute.xlu0 %2485  ;;  %v6195_v37 = vpop.permute.xlu1 %2639 }
 0x5c7   : > { %v2839_v1 = vsel %vm1384_vm12, %v2831_v20, %v2486_v35  ;;  %v3074_v41 = vadd.f32 %v3073_v10, %v3072_v3 }
 0x5ca   : > { %v2510_v57 = vpop.permute.xlu0 %2509  ;;  %v6197_v47 = vpop.permute.xlu1 %2663 }
 0x5cb   : > { %v2847_v19 = vsel %vm1393_vm14, %v2839_v1, %v2510_v57 }
 0x5ce   : > { %v2554_v52 = vpop.permute.xlu0 %2553  ;;  %v6202_v56 = vpop.permute.xlu1 %2687 }
 0x5cf   : > { %v2567_v50 = vsel %vm1107_vm13, %v2554_v52, %v6151_v29  ;;  %v3075_v52 = vrot.slane %v3074_v41, 1 }
 0x5d0   : > { %v2855_v11 = vsel %vm1402_vm15, %v2847_v19, %v2567_v50 }
 0x5d1   : > { %v3076_v25 = vadd.f32 %v3075_v52, %v3074_v41  ;;  %v6217_v15 = vmul.f32 %v6031_v27, %v2855_v11 }
 0x5d2   : > { %v2590_v61 = vpop.permute.xlu0 %2589  ;;  %v6208_v60 = vpop.permute.xlu1 %2711 }
 0x5d3   : > { %v6230_v41 = vmul.f32 0.0625, %v3076_v25 }
 0x5d6   : > { %v2614_v44 = vpop.permute.xlu0 %2613  ;;  %v2560_v39 = vpop.permute.xlu1 %2559 }
 0x5da   : > { %v2638_v12 = vpop.permute.xlu0 %2637  ;;  %v6210_v34 = vpop.permute.xlu1 %2731 }
 0x5de   : > { %v2662_v49 = vpop.permute.xlu0 %2661  ;;  %v6212_v7 = vpop.permute.xlu1 %2735 }
 0x5e2   : > { %v2686_v22 = vpop.permute.xlu0 %2685  ;;  %v2740_v29 = vpop.permute.xlu1 %2739 }
 0x5e3   : > { %v2763_v4 = vsel %vm1308_vm0, %v6012_v21, %v2740_v29 }
 0x5e4   : > { %v2899_v21 = vsel %vm1393_vm14, %v5992_v62, %v2763_v4 }
 0x5e6   : > { %v2710_v35 = vpop.permute.xlu0 %2709  ;;  %v2744_v57 = vpop.permute.xlu1 %2743 }
 0x5e7   : > { %v2764_v51 = vsel %vm1308_vm0, %v6057_v45, %v2744_v57 }
 0x5e8   : > { %v2900_v11 = vsel %vm1393_vm14, %v5981_v13, %v2764_v51 }
 0x5ea   : > { %v2754_v20 = vpop.permute.xlu0 %2753  ;;  %v2784_v1 = vpop.permute.xlu1 %2783 }
 0x5ee   : > { %v2558_v19 = vpop.permute.xlu0 %2557  ;;  %v2748_v50 = vpop.permute.xlu1 %2747 }
 0x5ef   : > { %v2568_v48 = vsel %vm1107_vm13, %v2558_v19, %v2560_v39  ;;  %v2765_v52 = vsel %vm1308_vm0, %v6163_v18, %v2748_v50  ;;  %v2863_v18 = vsel %vm1349_vm9, %v2590_v61, %v2614_v44 }
 0x5f0   : > { %v2856_v30 = vsel %vm1402_vm15, %v2848_v46, %v2568_v48  ;;  %v2871_v50 = vsel %vm626_vm6, %v2863_v18, %v2638_v12 }
 0x5f1   : > { %v6222_v9 = vmul.f32 %v6031_v27, %v2856_v30  ;;  %v2908_v30 = vsel %vm1402_vm15, %v2900_v11, %v2784_v1  ;;  %v2901_v1 = vsel %vm1393_vm14, %v6157_v24, %v2765_v52  ;;  %v2879_v24 = vsel %vm1366_vm10, %v2871_v50, %v2662_v49  ;;  %v6820_v50 = vld [vmem:[#allocation34_spill] sm:$0xff] }
 0x5f2   : > { %v2758_v3 = vpop.permute.xlu0 %2757  ;;  %v2752_v10 = vpop.permute.xlu1 %2751  ;;  %v6243_v19 = vmul.f32 %v6230_v41, %v2908_v30  ;;  %v2887_v61 = vsel %vm1375_vm11, %v2879_v24, %v2686_v22  ;;  %v6822_v24 = vld [vmem:[#allocation82_spill] sm:$0xff] }
 0x5f3   : > { %v3101_v39 = vpack.c.bf16 %v6222_v9, %v6217_v15  ;;  %v2766_v46 = vsel %vm1308_vm0, %v6181_v6, %v2752_v10  ;;  %v6838_v15 = vld [vmem:[#allocation67_spill] sm:$0xff] }
 0x5f4   : > { %v2902_v45 = vsel %vm1393_vm14, %v6142_v33, %v2766_v46  ;;  %v2864_v46 = vsel %vm1349_vm9, %v6191_v40, %v6193_v5  ;;  %v2762_v9 = vsel %vm1308_vm0, %v6838_v15, %v6212_v7 }
 0x5f6   : > { %v2782_v57 = vpop.permute.xlu0 %2781  ;;  %v2788_v29 = vpop.permute.xlu1 %2787 }
 0x5f7   : > { %v2907_v6 = vsel %vm1402_vm15, %v2899_v21, %v2782_v57  ;;  %v2910_v33 = vsel %vm1402_vm15, %v2902_v45, %v2788_v29  ;;  %v2872_v45 = vsel %vm626_vm6, %v2864_v46, %v6195_v37  ;;  %v2895_v21 = vsel %vm1384_vm12, %v2887_v61, %v2710_v35 }
 0x5f8   : > { %v6246_v13 = vmul.f32 %v6230_v41, %v2907_v6  ;;  %v3090_v51 = vmul.f32 %v6230_v41, %v2910_v33  ;;  %v2880_v57 = vsel %vm1366_vm10, %v2872_v45, %v6197_v47  ;;  %v6817_v6 = vld [vmem:[#allocation84_spill] sm:$0xff]  ;;  %v6818_v33 = vld [vmem:[#allocation78_spill] sm:$0xff]  ;;  %v6824_v45 = vld [vmem:[#allocation41_spill] sm:$0xff] }
 0x5f9   : > { %v2888_v40 = vsel %vm1375_vm11, %v2880_v57, %v6202_v56  ;;  %v2802_v56 = vsel %vm1349_vm9, %v5616_v38, %v6817_v6  ;;  %v6833_v6 = vld [vmem:[#allocation31_spill] sm:$0xff] }
 0x5fa   : > { %v2786_v48 = vpop.permute.xlu0 %2785  ;;  %v2756_v25 = vpop.permute.xlu1 %2755  ;;  %v3098_v62 = vpack.c.bf16 %v6243_v19, %v6246_v13  ;;  %v2896_v37 = vsel %vm1384_vm12, %v2888_v40, %v6208_v60  ;;  %v2801_v60 = vsel %vm1349_vm9, %v5612_v28, %v6818_v33  ;;  %v6825_v28 = vld [vmem:[#allocation81_spill] sm:$0xff]  ;;  %v3794_v13 = vld [vmem:[%s6503_s5] sm:$0xff]  }
 0x5fb   : > { %v2909_v4 = vsel %vm1402_vm15, %v2901_v1, %v2786_v48  ;;  %v2767_v11 = vsel %vm1308_vm0, %v2754_v20, %v2756_v25  ;;  %v6819_v48 = vld [vmem:[#allocation22_spill] sm:$0xff]  ;;  %v6834_v33 = vld [vmem:[#allocation85_spill] sm:$0xff] }
 0x5fc   : > { %v3088_v10 = vmul.f32 %v6230_v41, %v2909_v4  ;;  %v2903_v5 = vsel %vm1393_vm14, %v2895_v21, %v2767_v11  ;;  %v2810_v1 = vsel %vm626_vm6, %v2802_v56, %v6819_v48  ;;  %v6823_v11 = vld [vmem:[#allocation90_spill] sm:$0xff]  ;;  %v6827_v21 = vld [vmem:[#allocation87_spill] sm:$0xff]  ;;  %v6835_v48 = vld [vmem:[#allocation72_spill] sm:$0xff] }
 0x5fd   : > { %v2857_v38 = vsel %vm1349_vm9, %v6823_v11, %v6822_v24  ;;  %v6839_v11 = vld [vmem:[#allocation86_spill] sm:$0xff] }
 0x5fe   : > { %v2790_v44 = vpop.permute.xlu0 %2789  ;;  %v2760_v30 = vpop.permute.xlu1 %2759  ;;  %v3100_v12 = vpack.c.bf16 %v3090_v51, %v3088_v10  ;;  %v2809_v51 = vsel %vm626_vm6, %v2801_v60, %v6820_v50  ;;  %v6821_v10 = vld [vmem:[#allocation80_spill] sm:$0xff] }
 0x5ff   : > { %v2768_v29 = vsel %vm1308_vm0, %v2758_v3, %v2760_v30  ;;  %v2911_v49 = vsel %vm1402_vm15, %v2903_v5, %v2790_v44  ;;  %v2818_v46 = vsel %vm1366_vm10, %v2810_v1, %v6821_v10  ;;  %v2817_v61 = vsel %vm1366_vm10, %v2809_v51, %v6824_v45  ;;  %v6826_v30 = vld [vmem:[#allocation76_spill] sm:$0xff]  ;;  %v6829_v5 = vld [vmem:[#allocation83_spill] sm:$0xff] }
 0x600   : > { %v2904_v20 = vsel %vm1393_vm14, %v2896_v37, %v2768_v29  ;;  %v3092_v35 = vmul.f32 %v6230_v41, %v2911_v49  ;;  %v2826_v44 = vsel %vm1375_vm11, %v2818_v46, %v6825_v28  ;;  %v2865_v57 = vsel %vm626_vm6, %v2857_v38, %v6826_v30  ;;  %v6828_v29 = vld [vmem:[#allocation89_spill] sm:$0xff]  ;;  %v6840_v45 = vld [vmem:[#allocation27_spill] sm:$0xff] }
 0x601   : > { %v2858_v40 = vsel %vm1349_vm9, %v6828_v29, %v6827_v21  ;;  %v2834_v37 = vsel %vm1384_vm12, %v2826_v44, %v6829_v5  ;;  %v6830_v49 = vld [vmem:[#allocation21_spill] sm:$0xff]  ;;  %v2825_v56 = vsel %vm1375_vm11, %v2817_v61, %v6833_v6  ;;  %v6841_v44 = vld [vmem:[#allocation88_spill] sm:$0xff] }
 0x602   : > { %v2530_v22 = vpop.permute.xlu0 %2529  ;;  %v2792_v52 = vpop.permute.xlu1 %2791  ;;  %v2842_v60 = vsel %vm1393_vm14, %v2834_v37, %v6834_v33  ;;  %v2833_v38 = vsel %vm1384_vm12, %v2825_v56, %v6839_v11 }
 0x603   : > { %v2912_v47 = vsel %vm1402_vm15, %v2904_v20, %v2792_v52  ;;  %v2873_v20 = vsel %vm1366_vm10, %v2865_v57, %v6830_v49  ;;  %v6831_v52 = vld [vmem:[#allocation26_spill] sm:$0xff]  ;;  %v2841_v30 = vsel %vm1393_vm14, %v2833_v38, %v6841_v44  ;;  %v6842_v57 = vld [vmem:[#allocation33_spill] sm:$0xff] }
 0x604   : > { %v3094_v3 = vmul.f32 %v6230_v41, %v2912_v47  ;;  %v2866_v47 = vsel %vm626_vm6, %v2858_v40, %v6831_v52  ;;  %v2881_v1 = vsel %vm1375_vm11, %v2873_v20, %v6835_v48 }
 0x606   : > { %v2534_v25 = vpop.permute.xlu0 %2533  ;;  %v2532_v18 = vpop.permute.xlu1 %2531  ;;  %v3102_v4 = vpack.c.bf16 %v3094_v3, %v3092_v35  ;;  %v6832_v35 = vld [vmem:[#allocation32_spill] sm:$0xff] }
 0x607   : > { %v2761_v3 = vsel %vm1308_vm0, %v6832_v35, %v6210_v34  ;;  %v6837_v34 = vld [vmem:[#allocation24_spill] sm:$0xff] }
 0x608   : > { %3111 = vmatprep.subr.bf16.mxu1 %v3102_v4  ;;  %v6836_v4 = vld [vmem:[#allocation73_spill] sm:$0xff]  ;;  %v2889_v46 = vsel %vm1384_vm12, %v2881_v1, %v6837_v34 }
 0x609   : > { %3112 = vmatpush1.bf16.msra.mxu1 %v3101_v39  ;;  %v2874_v50 = vsel %vm1366_vm10, %v2866_v47, %v6836_v4  ;;  %v2561_v39 = vsel %vm1107_vm13, %v2530_v22, %v2532_v18 }
 0x60a   : > { %v2778_v51 = vpop.permute.xlu0 %2777  ;;  %3113 = vmatprep.subr.bf16.mxu1 %v3100_v12  ;;  %v2536_v10 = vpop.permute.xlu1 %2535  ;;  %v2882_v61 = vsel %vm1375_vm11, %v2874_v50, %v6840_v45  ;;  %v2897_v12 = vsel %vm1393_vm14, %v2889_v46, %v2761_v3  ;;  %v2849_v18 = vsel %vm1402_vm15, %v2841_v30, %v2561_v39 }
 0x60b   : > { %v2562_v24 = vsel %vm1107_vm13, %v2534_v25, %v2536_v10  ;;  %v2890_v7 = vsel %vm1384_vm12, %v2882_v61, %v6842_v57  ;;  %v2905_v22 = vsel %vm1402_vm15, %v2897_v12, %v2778_v51  ;;  %v6843_v25 = vpack.c.bf16 %v6179_v43, %v6176_v17 }
 0x60c   : > { %v2850_v28 = vsel %vm1402_vm15, %v2842_v60, %v2562_v24  ;;  %v2898_v21 = vsel %vm1393_vm14, %v2890_v7, %v2762_v9  ;;  %v3080_v37 = vmul.f32 %v6230_v41, %v2905_v22  ;;  %v3079_v17 = vmul.f32 %v6031_v27, %v2849_v18 }
 0x60d   : > { %3114 = vmatpush1.bf16.msra.mxu1 %v6843_v25  ;;  %v3081_v40 = vmul.f32 %v6031_v27, %v2850_v28  ;;  %v6844_v43 = vpack.c.bf16 %v6053_v63, %v6050_v55  ;;  %v3795_v27 = vld [vmem:[%s6503_s5 + $0x8] sm:$0xff]   ;;  %v3796_v55 = vld [vmem:[%s6503_s5 + $0x10] sm:$0xff]   ;;  %v3797_v63 = vld [vmem:[%s6503_s5 + $0x18] sm:$0xff]  }
 0x60e   : > { %3115 = vmatprep.subr.bf16.mxu1 %v3098_v62  ;;  %v2780_v29 = vpop.permute.xlu1 %2779  ;;  %v6845_v62 = vmov 0  }
 0x60f   : > { %v2906_v5 = vsel %vm1402_vm15, %v2898_v21, %v2780_v29  ;;  %v3095_v19 = vpack.c.bf16 %v3081_v40, %v3079_v17 }
 0x610   : > { %v3082_v49 = vmul.f32 %v6230_v41, %v2906_v5 }
 0x611   : > { %3116 = vmatpush1.bf16.msra.mxu1 %v6844_v43 }
 0x612   : > { %v3096_v20 = vpack.c.bf16 %v3082_v49, %v3080_v37 }
 0x614   : > { %3117 = vmatprep.subr.bf16.mxu1 %v3096_v20 }
 0x615   : > { %3118 = vmatpush1.bf16.msra.mxu1 %v3095_v19 }
 0x618   : > { %3440 = vmatmul.mubr.msk.bf16.vlgmr.msra.gmra.mxu1 %vm1375_vm11, %v3794_v13 }
 0x619   : > { %3145 = vmatprep.mubr.bf16.mxu1 %v6845_v62 }
 0x620   : > { %3441 = vmatmul.mubr.msk.bf16.gmra.mxu1 %vm1375_vm11, %v3795_v27 }
 0x621   : > { %3155 = vmatprep.mubr.bf16.mxu1 %v6845_v62 }
 0x628   : > { %3442 = vmatmul.mubr.msk.bf16.gmra.mxu1 %vm1375_vm11, %v3796_v55 }
 0x629   : > { %3165 = vmatprep.mubr.bf16.mxu1 %v6845_v62 }
 0x630   : > { %3443 = vmatmul.mubr.msk.bf16.gmra.mxu1 %vm1375_vm11, %v3797_v63 }
 0x640   : > { %v1828_v41 = vpop.xlane.xlu0 %1827 }
 0x641   : > { %v1829_v52 = vrot.slane %v1828_v41, 4 }
 0x643   : > { %v1830_v47 = vadd.f32 %v1829_v52, %v1828_v41 }
 0x645   : > { %v1831_v35 = vrot.slane %v1830_v47, 2 }
 0x647   : > { %v1832_v3 = vadd.f32 %v1831_v35, %v1830_v47 }
 0x649   : > { %v1833_v6 = vrot.slane %v1832_v3, 1 }
 0x64b   : > { %v1834_v56 = vadd.f32 %v1833_v6, %v1832_v3 }
 0x64d   : > { %3604 = vpush %v1834_v56 }
 0x67e   : > { %s3605_s20 = spop %3604 }
 0x67f   : > { %s1836_s8 = sadd.f32 1e-05, %s3605_s20  ;;  %s3852_s20 = scalar_lea.vmem %s6443_s15, 4096 }
 0x680   : > { %p3853_p5 = scmp.ne.s32.totalorder %s6443_s15, %s3852_s20 }
 0x681   : > { %s1839_s13 = smul.f32 6.1035156e-05, %s1836_s8  ;;  %s3949_s8 = smov [#allocation7]  }
 0x682   : > { %p3854_p9 = pnand %p3853_p5, %p6847_p7 }
 0x683   : > { %v1840_v33 = vstv %s1839_s13  ;;  %s3856_s13 = sshll.u32 %s3949_s8, 4  ;;  %s3857_s13 = int_to_ptr.vmem [resolvable:$false] %s3856_s13 }
 0x684   : > { %3771 = vrsqrt.f32 %v1840_v33  ;;  %p3855_p10 = pneg %p3854_p9  ;;  %s3858_s12 = scalar_lea.vmem %s3857_s13, 8192 }
 0x685   : > { %p3859_p12 = scmp.lt.s32.totalorder %s6443_s15, %s3857_s13  ;;  %p3860_p13 = scmp.lt.s32.totalorder %s3858_s12, %s3852_s20 }
 0x687   : > { %p3861_p0 = por %p3860_p13, %p3859_p12 }
 0x689   : > { %p3862_p11 = pnand %p3861_p0, %p3855_p10 }
 0x691   : > { %v3772_v60 = vpop.eup %3771 }
 0x692   : > { %3606 = vpush %v3772_v60 }
 0x6c3   : > { %s3607_s0 = spop %3606 }
 0x6c4   : > { %v1843_v48 = vstv %s3607_s0 }
 0x6c5   : > { %v1844_v1 = vmul.f32 %v1843_v48, %v5580_v42  ;;  %v1845_v4 = vmul.f32 %v1843_v48, %v5582_v54  ;;  %v1846_v50 = vmul.f32 %v1843_v48, %v5584_v2  ;;  %v1847_v51 = vmul.f32 %v1843_v48, %v5586_v14 }
 0x6c6   : > { %v1848_v10 = vmul.f32 %v1843_v48, %v5588_v31  ;;  %v1849_v34 = vmul.f32 %v1843_v48, %v5590_v32  ;;  %v1850_v46 = vmul.f32 %v1843_v48, %v5592_v16  ;;  %v1851_v15 = vmul.f32 %v1843_v48, %v5594_v58  ;;  %v6846_v32 = vld [vmem:[#allocation68_spill] sm:$0xff] }
 0x6c7   : > { %v1852_v9 = vmul.f32 %v1843_v48, %v6806_v26  ;;  %v1853_v39 = vmul.f32 %v1843_v48, %v6808_v8  ;;  %v1854_v42 = vmul.f32 %v1843_v48, %v6809_v53  ;;  %v1855_v54 = vmul.f32 %v1843_v48, %v6810_v23  ;;  %1860 = vst [vmem:[%s6390_s19] sm:$0xff] %v1844_v1 }
 0x6c8   : > { %1861 = vst [vmem:[%s6390_s19 + $0x8] sm:$0xff] %v1845_v4  ;;  %1862 = vst [vmem:[%s6390_s19 + $0x10] sm:$0xff] %v1846_v50  ;;  %v1856_v2 = vmul.f32 %v1843_v48, %v6811_v59  ;;  %v1857_v14 = vmul.f32 %v1843_v48, %v6812_v0  ;;  %v1858_v31 = vmul.f32 %v1843_v48, %v6814_v36 }
 0x6c9   : > { %1863 = vst [vmem:[%s6390_s19 + $0x18] sm:$0xff] %v1847_v51  ;;  %v1859_v16 = vmul.f32 %v1843_v48, %v6846_v32  ;;  %1864 = vst [vmem:[%s6390_s19 + $0x20] sm:$0xff] %v1848_v10 }
 0x6ca   : > { %1865 = vst [vmem:[%s6390_s19 + $0x28] sm:$0xff] %v1849_v34  ;;  %1866 = vst [vmem:[%s6390_s19 + $0x30] sm:$0xff] %v1850_v46 }
 0x6cb   : > { %1867 = vst [vmem:[%s6390_s19 + $0x38] sm:$0xff] %v1851_v15  ;;  %1868 = vst [vmem:[%s6390_s19 + $0x40] sm:$0xff] %v1852_v9 }
 0x6cc   : > { %1869 = vst [vmem:[%s6390_s19 + $0x48] sm:$0xff] %v1853_v39  ;;  %1870 = vst [vmem:[%s6390_s19 + $0x50] sm:$0xff] %v1854_v42 }
 0x6cd   : > { %1871 = vst [vmem:[%s6390_s19 + $0x58] sm:$0xff] %v1855_v54  ;;  %1872 = vst [vmem:[%s6390_s19 + $0x60] sm:$0xff] %v1856_v2 }
 0x6ce   : > { %1873 = vst [vmem:[%s6390_s19 + $0x68] sm:$0xff] %v1857_v14  ;;  %1874 = vst [vmem:[%s6390_s19 + $0x70] sm:$0xff] %v1858_v31 }
 0x6cf   : > { %1875 = vst [vmem:[%s6390_s19 + $0x78] sm:$0xff] %v1859_v16 }
 0x6d8   : > { %v6412_v58 = vpop.f32.mrf.mxu1 }
 0x6d9   : > { %v3176_v8 = vmul.f32 %v6412_v58, %v6412_v58 }
 0x6da   : > { %v6414_v26 = vpop.f32.mrf.mxu1 }
 0x6db   : > { %v3177_v53 = vmul.f32 %v6414_v26, %v6414_v26 }
 0x6dc   : > { %v6420_v23 = vpop.f32.mrf.mxu1 }
 0x6dd   : > { %v3192_v59 = vadd.f32 %v3177_v53, %v3176_v8  ;;  %v3178_v0 = vmul.f32 %v6420_v23, %v6420_v23 }
 0x6de   : > { %v6424_v36 = vpop.f32.mrf.mxu1 }
 0x6df   : > { %v3193_v24 = vadd.f32 %v3192_v59, %v3178_v0  ;;  %v3179_v11 = vmul.f32 %v6424_v36, %v6424_v36 }
 0x6e0   : > { %v3147_v38 = vpop.f32.mrf.mxu1 }
 0x6e1   : > { %v3194_v45 = vadd.f32 %v3193_v24, %v3179_v11  ;;  %v3180_v61 = vmul.f32 %v3147_v38, %v3147_v38 }
 0x6e2   : > { %v3149_v12 = vpop.f32.mrf.mxu1 }
 0x6e3   : > { %v3195_v28 = vadd.f32 %v3194_v45, %v3180_v61  ;;  %v3181_v44 = vmul.f32 %v3149_v12, %v3149_v12 }
 0x6e4   : > { %v3151_v30 = vpop.f32.mrf.mxu1 }
 0x6e5   : > { %v3196_v57 = vadd.f32 %v3195_v28, %v3181_v44  ;;  %v3182_v7 = vmul.f32 %v3151_v30, %v3151_v30 }
 0x6e6   : > { %v3153_v22 = vpop.f32.mrf.mxu1 }
 0x6e7   : > { %v3197_v25 = vadd.f32 %v3196_v57, %v3182_v7  ;;  %v3183_v18 = vmul.f32 %v3153_v22, %v3153_v22 }
 0x6e8   : > { %v3157_v21 = vpop.f32.mrf.mxu1 }
 0x6e9   : > { %v3198_v29 = vadd.f32 %v3197_v25, %v3183_v18  ;;  %v3184_v40 = vmul.f32 %v3157_v21, %v3157_v21 }
 0x6ea   : > { %v3159_v5 = vpop.f32.mrf.mxu1 }
 0x6eb   : > { %v3199_v37 = vadd.f32 %v3198_v29, %v3184_v40  ;;  %v3185_v49 = vmul.f32 %v3159_v5, %v3159_v5 }
 0x6ec   : > { %v3161_v17 = vpop.f32.mrf.mxu1 }
 0x6ed   : > { %v3200_v43 = vadd.f32 %v3199_v37, %v3185_v49  ;;  %v3186_v20 = vmul.f32 %v3161_v17, %v3161_v17 }
 0x6ee   : > { %v3163_v19 = vpop.f32.mrf.mxu1 }
 0x6ef   : > { %v3201_v13 = vadd.f32 %v3200_v43, %v3186_v20  ;;  %v3187_v62 = vmul.f32 %v3163_v19, %v3163_v19 }
 0x6f0   : > { %v3167_v27 = vpop.f32.mrf.mxu1 }
 0x6f1   : > { %v3202_v55 = vadd.f32 %v3201_v13, %v3187_v62  ;;  %v3188_v63 = vmul.f32 %v3167_v27, %v3167_v27 }
 0x6f2   : > { %v3169_v41 = vpop.f32.mrf.mxu1 }
 0x6f3   : > { %v3203_v52 = vadd.f32 %v3202_v55, %v3188_v63  ;;  %v3189_v47 = vmul.f32 %v3169_v41, %v3169_v41 }
 0x6f4   : > { %v3171_v35 = vpop.f32.mrf.mxu1 }
 0x6f5   : > { %v3204_v3 = vadd.f32 %v3203_v52, %v3189_v47  ;;  %v3190_v6 = vmul.f32 %v3171_v35, %v3171_v35 }
 0x6f6   : > { %v3173_v56 = vpop.f32.mrf.mxu1 }
 0x6f7   : > { %v3205_v33 = vadd.f32 %v3204_v3, %v3190_v6  ;;  %v3191_v60 = vmul.f32 %v3173_v56, %v3173_v56 }
 0x6f9   : > { %v3206_v48 = vadd.f32 %v3205_v33, %v3191_v60 }
 0x6fb   : > { %3207 = vadd.xlane.f32.xlu1 %v3206_v48 }
 0x784   : > { %v3208_v1 = vpop.xlane.xlu1 %3207 }
 0x785   : > { %v3209_v4 = vrot.slane %v3208_v1, 4 }
 0x787   : > { %v3210_v50 = vadd.f32 %v3209_v4, %v3208_v1 }
 0x789   : > { %v3211_v51 = vrot.slane %v3210_v50, 2 }
 0x78b   : > { %v3212_v10 = vadd.f32 %v3211_v51, %v3210_v50 }
 0x78d   : > { %v3213_v34 = vrot.slane %v3212_v10, 1 }
 0x78f   : > { %v3214_v46 = vadd.f32 %v3213_v34, %v3212_v10 }
 0x791   : > { %3608 = vpush %v3214_v46 }
 0x7c2   : > { %s3609_s26 = spop %3608 }
 0x7c3   : > { %s3216_s29 = sadd.f32 1e-05, %s3609_s26 }
 0x7c5   : > { %s3219_s27 = smul.f32 6.1035156e-05, %s3216_s29 }
 0x7c7   : > { %v3220_v15 = vstv %s3219_s27 }
 0x7c8   : > { %3773 = vrsqrt.f32 %v3220_v15 }
 0x7d5   : > { %v3774_v9 = vpop.eup %3773 }
 0x7d6   : > { %3610 = vpush %v3774_v9 }
 0x807   : > { %s3611_s30 = spop %3610 }
 0x808   : > { %v3223_v39 = vstv %s3611_s30 }
 0x809   : > { %v3224_v42 = vmul.f32 %v3223_v39, %v6412_v58  ;;  %v3225_v54 = vmul.f32 %v3223_v39, %v6414_v26  ;;  %v3226_v2 = vmul.f32 %v3223_v39, %v6420_v23  ;;  %v3227_v14 = vmul.f32 %v3223_v39, %v6424_v36 }
 0x80a   : > { %v3228_v31 = vmul.f32 %v3223_v39, %v3147_v38  ;;  %v3229_v32 = vmul.f32 %v3223_v39, %v3149_v12  ;;  %v3230_v16 = vmul.f32 %v3223_v39, %v3151_v30  ;;  %v3231_v8 = vmul.f32 %v3223_v39, %v3153_v22 }
 0x80b   : > { %v3232_v53 = vmul.f32 %v3223_v39, %v3157_v21  ;;  %v3233_v59 = vmul.f32 %v3223_v39, %v3159_v5  ;;  %v3234_v0 = vmul.f32 %v3223_v39, %v3161_v17  ;;  %v3235_v24 = vmul.f32 %v3223_v39, %v3163_v19  ;;  %3444 = vst [vmem:[%s6390_s19 + $0x80] sm:$0xff] %v3224_v42 }
 0x80c   : > { %3445 = vst [vmem:[%s6390_s19 + $0x88] sm:$0xff] %v3225_v54  ;;  %3446 = vst [vmem:[%s6390_s19 + $0x90] sm:$0xff] %v3226_v2  ;;  %v3236_v58 = vmul.f32 %v3223_v39, %v3167_v27  ;;  %v3237_v26 = vmul.f32 %v3223_v39, %v3169_v41  ;;  %v3238_v23 = vmul.f32 %v3223_v39, %v3171_v35 }
 0x80d   : > { %3447 = vst [vmem:[%s6390_s19 + $0x98] sm:$0xff] %v3227_v14  ;;  %v3239_v36 = vmul.f32 %v3223_v39, %v3173_v56  ;;  %3448 = vst [vmem:[%s6390_s19 + $0xa0] sm:$0xff] %v3228_v31 }
 0x80e   : > { %3449 = vst [vmem:[%s6390_s19 + $0xa8] sm:$0xff] %v3229_v32  ;;  %3450 = vst [vmem:[%s6390_s19 + $0xb0] sm:$0xff] %v3230_v16 }
 0x80f   : > { %3451 = vst [vmem:[%s6390_s19 + $0xb8] sm:$0xff] %v3231_v8  ;;  %3452 = vst [vmem:[%s6390_s19 + $0xc0] sm:$0xff] %v3232_v53 }
 0x810   : > { %3453 = vst [vmem:[%s6390_s19 + $0xc8] sm:$0xff] %v3233_v59  ;;  %3454 = vst [vmem:[%s6390_s19 + $0xd0] sm:$0xff] %v3234_v0 }
 0x811   : > { %3455 = vst [vmem:[%s6390_s19 + $0xd8] sm:$0xff] %v3235_v24  ;;  %3456 = vst [vmem:[%s6390_s19 + $0xe0] sm:$0xff] %v3236_v58 }
 0x812   : > { %3457 = vst [vmem:[%s6390_s19 + $0xe8] sm:$0xff] %v3237_v26  ;;  %3458 = vst [vmem:[%s6390_s19 + $0xf0] sm:$0xff] %v3238_v23 }
 0x813   : > { %3459 = vst [vmem:[%s6390_s19 + $0xf8] sm:$0xff] %v3239_v36 }
 0x814   : > { %3865 = shalt.err (!%p3862_p11)
}
 0x815   : > { %s3866_s0 = scalar_lea.hbm %s6441_s14, 4096  ;;  %s3870_s29 = scalar_lea.hbm %s6504_s6, 8192 }
 0x816   : > { %p3867_p2 = scmp.ne.s32.totalorder %s6441_s14, %s3866_s0  ;;  %p3871_p6 = scmp.lt.s32.totalorder %s6441_s14, %s6504_s6 }
 0x817   : > { %p3872_p8 = scmp.lt.s32.totalorder %s3870_s29, %s3866_s0 }
 0x818   : > { %p3868_p1 = pnand %p3867_p2, %p6847_p7 }
 0x819   : > { %p3873_p3 = por %p3872_p8, %p3871_p6 }
 0x81a   : > { %p3869_p4 = pneg %p3868_p1 }
 0x81c   : > { %p3874_p5 = pnand %p3873_p3, %p3869_p4 }
 0x81e   : > { %3877 = shalt.err (!%p3874_p5)
}
 0x81f   : > { %s3950_s11 = smov 256   ;;  %s3951_s25 = smov 16  }
 0x820   : > { %3618 = dma.vmem_to_hbm [thread:$0]  (%p6847_p7), %s6443_s15, 4096, %s6441_s14, %s3258_s16, %s3950_s11, %s3950_s11, %s3951_s25  }
 0x821 PF: > { %s3287_s10 = sand.u32 1, %s3908_s21   ;;  %p6848_p9 = scmp.ne.s32.totalorder %s6575_s28, 0 }
 0x822   : > { %p6849_p10 = scmp.ge.s32.totalorder %s3920_s24, 2  ;;  %s3288_s20 = scalar_lea.sflag [#allocation4], %s3287_s10 }
 0x824   : > { %p3629_p12 = pnand %p6849_p10, %p6848_p9 }
 0x826   : > { %p3630_p13 = pneg %p3629_p12 }
 0x828   : > { %3903 = dma.done.wait (%p3630_p13), %s3288_s20, 4096  }
 0x829   : > { %3905 = vsyncadd (%p3630_p13), %s3288_s20, 4294963200  ;;  %p20_p0 = scmp.ge.s32.totalorder %s4041_s9, 4   ;;  %s6850_s21 = smov %s3912_s22 }
 0x82a   : > { %s6851_s22 = smov %s3916_s23  ;;  %s6852_s23 = smov %s4061_s17 }
 0x82b   : > { %s6853_s24 = smov %s4041_s9  ;;  %22 = sbr.rel (!%p20_p0) target bundleno = 8 (0x8), region = 99 }
 0x830   :  { %3293 = vsyncpa [#allocation3], 1 }
 0x831   :  { %3295 = vsyncpa [#allocation3 + $0x1], 1 }
 0x832   :  { %3296 = vsyncpa [#allocation6], 1 }
 0x833   :  { %3297 = vsyncpa [#allocation4], 1 }
 0x834   :  { %3299 = vsyncpa [#allocation4 + $0x1], 1 }

</bundles_post_ra>
